<compile_context>
chip_gen: v7x
topology: tpu7x:2x2x1
jax: 0.10.0
libtpu: 0.0.40
codegen_flags: <defaults>
</compile_context>

<pallas_src>
import jax
import jax.numpy as jnp
from jax.experimental import pallas as pl
from jax.experimental.pallas import tpu as pltpu

# ----- Action configuration (mirrors the `actions` list passed to __init__) --
CONT_ACTIONS = [("move_x", -1.0, 1.0), ("move_y", 0.0, 2.0)]  # ContiniousAction
BIN_ACTIONS = ["fire"]                                        # BinaryAction
CAT_NAMES = ["left", "stay", "right"]                         # one CategoricalAction

LEN_CONT = len(CONT_ACTIONS) * 2          # (alpha, beta) per continuous action
LEN_BIN = len(BIN_ACTIONS)
LEN_CAT = len(CAT_NAMES)
OUT_DIM = LEN_CONT + LEN_BIN + LEN_CAT    # = 8

NUM = 256
LANE = 128                                # TPU lane width; narrow dims padded to this
BOTTLENECK = 10                           # grid_enc output width in the torch module
NEG_SLOPE = 0.01                          # nn.LeakyReLU default negative_slope
N_MID = 5                                 # trunk L2,L3 + action_output L1,L2,L3


def _leaky_relu(x):
    # Works in bf16 or f32 (python scalar stays weak-typed).
    return jnp.where(x > 0, x, NEG_SLOPE * x)


# ------------------------------- kernel --------------------------------------
def agent_kernel(grid_ref, extra_ref,
                 wg1, bg1, wg2, bg2,
                 wt1, bt1,
                 wmid, bmid,
                 wa4, ba4,
                 out_ref):
    f32 = jnp.float32
    bf16 = jnp.bfloat16

    def layer(x, w, b):
        # bf16 x bf16 -> f32 MXU accumulation; bias + LeakyReLU epilogue in bf16.
        acc = jnp.dot(x, w[...], preferred_element_type=f32)
        return _leaky_relu(acc.astype(bf16) + b[...])

    # --- grid_enc: Linear(G,256)+LeakyReLU + Linear(256,10->pad128)+LeakyReLU -
    x = grid_ref[...]                                   # (TB, G) bf16
    h = layer(x, wg1, bg1)                              # (TB, 256) bf16
    grid_enc = layer(h, wg2, bg2)                       # (TB, 128) bf16; lanes>=10 == 0

    # --- enc = cat([grid_enc, target, pos]) fused into ONE (TB,128)x(128,256) -
    # extra_ref carries target+pos in lanes [10, 10+extra_len), zeros elsewhere;
    # grid_enc is exactly zero on lanes >= 10, so the add is an exact concat.
    enc = grid_enc + extra_ref[...]                     # (TB, 128) bf16
    d = layer(enc, wt1, bt1)                            # (TB, 256) bf16

    # --- five identical Linear(256,256)+LeakyReLU (trunk L2,L3 + action L1-3) -
    for i in range(N_MID):
        d = layer(d, wmid[i], bmid[i])

    # --- final Linear(256, OUT_DIM -> pad 128) + torch.abs (f32 head) ---------
    params = jnp.abs(jnp.dot(d, wa4[...], preferred_element_type=f32) + ba4[...])

    # --- head: beta params raw, sigmoid(binary), per-row masked softmax(cat) --
    idx = jax.lax.broadcasted_iota(jnp.int32, params.shape, 1)
    cat_mask = (idx >= LEN_CONT + LEN_BIN) & (idx < OUT_DIM)

    masked = jnp.where(cat_mask, params, -jnp.inf)
    m = jnp.max(masked, axis=-1, keepdims=True)         # per-row max
    e = jnp.exp(masked - m)                             # 0 outside the cat lanes
    denom = jnp.sum(e, axis=-1, keepdims=True)
    cat_vals = e * pl.reciprocal(denom, approx=True)

    out_ref[...] = jnp.where(
        idx < LEN_CONT,
        params,
        jnp.where(idx < LEN_CONT + LEN_BIN, jax.nn.sigmoid(params), cat_vals),
    )


# ----------------------------- parameter init --------------------------------
def xavier_uniform(key, fan_in, fan_out):
    bound = jnp.sqrt(6.0 / (fan_in + fan_out))
    return jax.random.uniform(key, (fan_in, fan_out), jnp.float32, -bound, bound)


def init_params(key, grid_len, grid_w, target_enc_len, pos_enc_len):
    """Returns the flat list of kernel params (bf16 weights/biases, f32 head bias)."""
    G = grid_len * grid_w
    extra_len = target_enc_len + pos_enc_len
    assert BOTTLENECK + extra_len <= LANE, "target+pos encoding too wide for lane fuse"
    k = jax.random.split(key, 9)

    # Xavier init at the ORIGINAL (unpadded) shapes, matching the torch module.
    wg1 = xavier_uniform(k[0], G, NUM)
    wg2 = xavier_uniform(k[1], NUM, BOTTLENECK)
    wt1 = xavier_uniform(k[2], BOTTLENECK + extra_len, NUM)
    wt2 = xavier_uniform(k[3], NUM, NUM)
    wt3 = xavier_uniform(k[4], NUM, NUM)
    wa1 = xavier_uniform(k[5], NUM, NUM)
    wa2 = xavier_uniform(k[6], NUM, NUM)
    wa3 = xavier_uniform(k[7], NUM, NUM)
    wa4 = xavier_uniform(k[8], NUM, OUT_DIM)

    # Lane-pad the 10-wide bottleneck and OUT_DIM-wide head to 128 lanes with
    # zeros (bias m.bias.data.fill_(0.01) only on the real lanes).
    wg2_p = jnp.zeros((NUM, LANE), jnp.float32).at[:, :BOTTLENECK].set(wg2)
    bg2_p = jnp.zeros((1, LANE), jnp.float32).at[:, :BOTTLENECK].set(0.01)
    wa4_p = jnp.zeros((NUM, LANE), jnp.float32).at[:, :OUT_DIM].set(wa4)
    ba4_p = jnp.zeros((1, LANE), jnp.float32).at[:, :OUT_DIM].set(0.01)

    # Fused trunk-L1 weight: rows 0..9 act on grid_enc lanes, rows 10..10+extra
    # act on the target+pos lanes; remaining rows are zero.
    wt1_c = jnp.zeros((LANE, NUM), jnp.float32)
    wt1_c = wt1_c.at[:BOTTLENECK].set(wt1[:BOTTLENECK])
    wt1_c = wt1_c.at[BOTTLENECK:BOTTLENECK + extra_len].set(wt1[BOTTLENECK:])

    wmid = jnp.stack([wt2, wt3, wa1, wa2, wa3])          # (5, 256, 256)
    bmid = jnp.full((N_MID, 1, NUM), 0.01, jnp.float32)

    bf = jnp.bfloat16
    bias = lambda n: jnp.full((1, n), 0.01, bf)
    return [
        wg1.astype(bf), bias(NUM),
        wg2_p.astype(bf), bg2_p.astype(bf),
        wt1_c.astype(bf), bias(NUM),
        wmid.astype(bf), bmid.astype(bf),
        wa4_p.astype(bf), ba4_p,                         # head bias stays f32
    ]


# ----------------------------- input prep -------------------------------------
def _prepare_inputs(grid_vec, target, pos):
    """Flatten the grid per row; place target+pos at lanes [10, 10+extra)."""
    B = grid_vec.shape[0]
    x = grid_vec.reshape(B, -1).astype(jnp.bfloat16)            # .flatten() per row
    extra = jnp.concatenate([target.reshape(B, -1), pos.reshape(B, -1)], axis=-1)
    e = extra.shape[1]
    assert BOTTLENECK + e <= LANE, "target+pos encoding too wide for lane fuse"
    extra_p = jnp.zeros((B, LANE), jnp.bfloat16)
    extra_p = extra_p.at[:, BOTTLENECK:BOTTLENECK + e].set(extra.astype(jnp.bfloat16))
    return x, extra_p


def _auto_tile(B):
    if B <= 128:
        return max(8, ((B + 7) // 8) * 8)   # single sublane-aligned tile
    if B <= 256:
        return 128                          # keep >=2 grid steps (v7x: 2 TCs)
    return 256                              # fill the 256-wide MXU on v6e/v7x


# ----------------------------- pallas_call wrapper ----------------------------
def forward_dist_params(grid_vec, target, pos, params, *, tile_b=None):
    """Batched forward. grid_vec:(B,grid_len,grid_w), target:(B,t), pos:(B,p)."""
    B = grid_vec.shape[0]
    x, extra = _prepare_inputs(grid_vec, target, pos)
    G = x.shape[1]

    TB = tile_b if tile_b is not None else _auto_tile(B)
    B_pad = pl.cdiv(B, TB) * TB
    if B_pad != B:
        x = jnp.pad(x, ((0, B_pad - B), (0, 0)))
        extra = jnp.pad(extra, ((0, B_pad - B), (0, 0)))

    # Activations: tiled over batch. Weights: constant block index -> stay
    # VMEM-resident across every grid step (loaded once per call).
    act_specs = [
        pl.BlockSpec((TB, G), lambda i: (i, 0)),
        pl.BlockSpec((TB, LANE), lambda i: (i, 0)),
    ]
    weight_specs = [
        pl.BlockSpec(p.shape, lambda i, nd=p.ndim: (0,) * nd) for p in params
    ]

    out = pl.pallas_call(
        agent_kernel,
        out_shape=jax.ShapeDtypeStruct((B_pad, LANE), jnp.float32),
        grid_spec=pltpu.PrefetchScalarGridSpec(
            num_scalar_prefetch=0,
            grid=(B_pad // TB,),
            in_specs=act_specs + weight_specs,
            out_specs=pl.BlockSpec((TB, LANE), lambda i: (i, 0)),
        ),
        compiler_params=pltpu.CompilerParams(
            dimension_semantics=("parallel",)),     # v7x: shard batch tiles on 2 TCs
    )(x, extra, *params)

    return out[:B, :OUT_DIM]


# ----------------------------- pure-JAX reference ------------------------------
def reference_forward(grid_vec, target, pos, params):
    (wg1, bg1, wg2, bg2, wt1, bt1, wmid, bmid, wa4, ba4) = params
    bf = jnp.bfloat16
    x, extra = _prepare_inputs(grid_vec, target, pos)

    def layer(h, w, b):
        return _leaky_relu(
            jnp.dot(h, w, preferred_element_type=jnp.float32).astype(bf) + b)

    h = layer(x, wg1, bg1)
    ge = layer(h, wg2, bg2)
    d = layer(ge + extra, wt1, bt1)
    for i in range(N_MID):
        d = layer(d, wmid[i], bmid[i])
    p = jnp.abs(jnp.dot(d, wa4, preferred_element_type=jnp.float32) + ba4)[:, :OUT_DIM]
    cont = p[:, :LEN_CONT]
    binp = jax.nn.sigmoid(p[:, LEN_CONT:LEN_CONT + LEN_BIN])
    catp = jax.nn.softmax(p[:, LEN_CONT + LEN_BIN:], axis=-1)
    return jnp.concatenate([cont, binp, catp], axis=-1)


# ----------------------------- sampling glue ----------------------------------
# TODO(synk): Beta / Categorical sampling has no clean Pallas equivalent; it is
# done here in plain JAX outside the kernel (one env state / row at a time,
# mirroring the batch-1 torch forward).
def sample_actions(p, key):
    keys = jax.random.split(key, len(CONT_ACTIONS) + len(BIN_ACTIONS) + 1)
    actions = []
    ki = 0
    for i, (name, amin, amax) in enumerate(CONT_ACTIONS):
        alpha = jnp.maximum(p[2 * i], 1e-6)      # abs() can be exactly 0 -> clamp
        beta = jnp.maximum(p[2 * i + 1], 1e-6)
        x = jax.random.beta(keys[ki], alpha, beta)
        ki += 1
        val = x * (amax - amin) + amin            # ContiniousAction.scale
        actions.append(f"{name} {float(val)}")
    for j, name in enumerate(BIN_ACTIONS):
        prob0 = p[LEN_CONT + j]                   # Categorical([p, 1-p])
        act = jax.random.categorical(
            keys[ki], jnp.log(jnp.stack([prob0, 1.0 - prob0])))
        ki += 1
        actions.append(f"{name} {int(act)}")
    if CAT_NAMES:
        cat_p = p[LEN_CONT + LEN_BIN:]
        act = jax.random.categorical(keys[ki], jnp.log(cat_p))
        actions.append(CAT_NAMES[int(act)])
    return actions


if __name__ == "__main__":
    grid_len, grid_w = 16, 16
    target_enc_len, pos_enc_len = 8, 8
    B = 256                                       # batch of env states / timesteps

    key = jax.random.PRNGKey(0)
    k_param, k_grid, k_tgt, k_pos, k_sample = jax.random.split(key, 5)

    params = init_params(k_param, grid_len, grid_w, target_enc_len, pos_enc_len)
    grid_vec = jax.random.normal(k_grid, (B, grid_len, grid_w), jnp.float32)
    target = jax.random.normal(k_tgt, (B, target_enc_len), jnp.float32)
    pos = jax.random.normal(k_pos, (B, pos_enc_len), jnp.float32)

    dist_params = forward_dist_params(grid_vec, target, pos, params)
    dist_params = jax.block_until_ready(dist_params)
    assert dist_params.shape == (B, OUT_DIM)
    assert bool(jnp.all(jnp.isfinite(dist_params)))

    # Correctness check against a pure-JAX reference with the same bf16
    # pipeline; only difference is the approx softmax reciprocal.
    ref = reference_forward(grid_vec, target, pos, params)
    assert bool(jnp.allclose(dist_params, ref, atol=2e-2, rtol=2e-2))

    actions = sample_actions(dist_params[0], k_sample)
    assert len(actions) == len(CONT_ACTIONS) + len(BIN_ACTIONS) + 1
    print("KERNEL_OK")
</pallas_src>

<mosaic_0001>
module attributes {stable_mosaic.version = 11 : i64} {
  func.func @agent_kernel(%arg0: i32, %arg1: memref<128x256xbf16, #tpu.memory_space<vmem>>, %arg2: memref<128x128xbf16, #tpu.memory_space<vmem>>, %arg3: memref<256x256xbf16, #tpu.memory_space<vmem>>, %arg4: memref<1x256xbf16, #tpu.memory_space<vmem>>, %arg5: memref<256x128xbf16, #tpu.memory_space<vmem>>, %arg6: memref<1x128xbf16, #tpu.memory_space<vmem>>, %arg7: memref<128x256xbf16, #tpu.memory_space<vmem>>, %arg8: memref<1x256xbf16, #tpu.memory_space<vmem>>, %arg9: memref<5x256x256xbf16, #tpu.memory_space<vmem>>, %arg10: memref<5x1x256xbf16, #tpu.memory_space<vmem>>, %arg11: memref<256x128xbf16, #tpu.memory_space<vmem>>, %arg12: memref<1x128xf32, #tpu.memory_space<vmem>>, %arg13: memref<128x128xf32, #tpu.memory_space<vmem>>) attributes {dimension_semantics = [#tpu.dimension_semantics<parallel>], iteration_bounds = array<i64: 2>, scalar_prefetch = 0 : i64, scratch_operands = 0 : i64, tpu.core_type = #tpu.core_type<tc>, window_params = [{transform_indices = @transform_0, window_bounds = array<i64: 128, 256>}, {transform_indices = @transform_1, window_bounds = array<i64: 128, 128>}, {pipeline_mode = #tpu.pipeline_mode<synchronous>, transform_indices = @transform_2, window_bounds = array<i64: 256, 256>}, {pipeline_mode = #tpu.pipeline_mode<synchronous>, transform_indices = @transform_3, window_bounds = array<i64: 1, 256>}, {pipeline_mode = #tpu.pipeline_mode<synchronous>, transform_indices = @transform_4, window_bounds = array<i64: 256, 128>}, {pipeline_mode = #tpu.pipeline_mode<synchronous>, transform_indices = @transform_5, window_bounds = array<i64: 1, 128>}, {pipeline_mode = #tpu.pipeline_mode<synchronous>, transform_indices = @transform_6, window_bounds = array<i64: 128, 256>}, {pipeline_mode = #tpu.pipeline_mode<synchronous>, transform_indices = @transform_7, window_bounds = array<i64: 1, 256>}, {pipeline_mode = #tpu.pipeline_mode<synchronous>, transform_indices = @transform_8, window_bounds = array<i64: 5, 256, 256>}, {pipeline_mode = #tpu.pipeline_mode<synchronous>, transform_indices = @transform_9, window_bounds = array<i64: 5, 1, 256>}, {pipeline_mode = #tpu.pipeline_mode<synchronous>, transform_indices = @transform_10, window_bounds = array<i64: 256, 128>}, {pipeline_mode = #tpu.pipeline_mode<synchronous>, transform_indices = @transform_11, window_bounds = array<i64: 1, 128>}, {transform_indices = @transform_12, window_bounds = array<i64: 128, 128>}]} {
    %c0 = arith.constant 0 : index
    %c0_0 = arith.constant 0 : index
    %0 = vector.load %arg1[%c0, %c0_0] : memref<128x256xbf16, #tpu.memory_space<vmem>>, vector<128x256xbf16>
    %c0_1 = arith.constant 0 : index
    %c0_2 = arith.constant 0 : index
    %1 = vector.load %arg3[%c0_1, %c0_2] : memref<256x256xbf16, #tpu.memory_space<vmem>>, vector<256x256xbf16>
    %cst = arith.constant dense<0.000000e+00> : vector<128x256xf32>
    %2 = tpu.matmul %0, %1, %cst {dimension_numbers = #tpu.dot_dimension_numbers<[1], [0], [0], [1], [0, 0, 1, 1], [], []>} : vector<128x256xbf16>, vector<256x256xbf16>, vector<128x256xf32> -> vector<128x256xf32>
    %3 = arith.truncf %2 : vector<128x256xf32> to vector<128x256xbf16>
    %c0_3 = arith.constant 0 : index
    %c0_4 = arith.constant 0 : index
    %4 = vector.load %arg4[%c0_3, %c0_4] : memref<1x256xbf16, #tpu.memory_space<vmem>>, vector<1x256xbf16>
    %5 = vector.broadcast %4 : vector<1x256xbf16> to vector<128x256xbf16>
    %6 = arith.addf %3, %5 : vector<128x256xbf16>
    %cst_5 = arith.constant 0.000000e+00 : bf16
    %7 = vector.broadcast %cst_5 : bf16 to vector<128x256xbf16>
    %8 = arith.cmpf ogt, %6, %7 : vector<128x256xbf16>
    %cst_6 = arith.constant 1.000980e-02 : bf16
    %9 = vector.broadcast %cst_6 : bf16 to vector<128x256xbf16>
    %10 = arith.mulf %9, %6 : vector<128x256xbf16>
    %11 = arith.select %8, %6, %10 : vector<128x256xi1>, vector<128x256xbf16>
    %c0_7 = arith.constant 0 : index
    %c0_8 = arith.constant 0 : index
    %12 = vector.load %arg5[%c0_7, %c0_8] : memref<256x128xbf16, #tpu.memory_space<vmem>>, vector<256x128xbf16>
    %cst_9 = arith.constant dense<0.000000e+00> : vector<128x128xf32>
    %13 = tpu.matmul %11, %12, %cst_9 {dimension_numbers = #tpu.dot_dimension_numbers<[1], [0], [0], [1], [0, 0, 1, 1], [], []>} : vector<128x256xbf16>, vector<256x128xbf16>, vector<128x128xf32> -> vector<128x128xf32>
    %14 = arith.truncf %13 : vector<128x128xf32> to vector<128x128xbf16>
    %c0_10 = arith.constant 0 : index
    %c0_11 = arith.constant 0 : index
    %15 = vector.load %arg6[%c0_10, %c0_11] : memref<1x128xbf16, #tpu.memory_space<vmem>>, vector<1x128xbf16>
    %16 = vector.broadcast %15 : vector<1x128xbf16> to vector<128x128xbf16>
    %17 = arith.addf %14, %16 : vector<128x128xbf16>
    %cst_12 = arith.constant 0.000000e+00 : bf16
    %18 = vector.broadcast %cst_12 : bf16 to vector<128x128xbf16>
    %19 = arith.cmpf ogt, %17, %18 : vector<128x128xbf16>
    %cst_13 = arith.constant 1.000980e-02 : bf16
    %20 = vector.broadcast %cst_13 : bf16 to vector<128x128xbf16>
    %21 = arith.mulf %20, %17 : vector<128x128xbf16>
    %22 = arith.select %19, %17, %21 : vector<128x128xi1>, vector<128x128xbf16>
    %c0_14 = arith.constant 0 : index
    %c0_15 = arith.constant 0 : index
    %23 = vector.load %arg2[%c0_14, %c0_15] : memref<128x128xbf16, #tpu.memory_space<vmem>>, vector<128x128xbf16>
    %24 = arith.addf %22, %23 : vector<128x128xbf16>
    %c0_16 = arith.constant 0 : index
    %c0_17 = arith.constant 0 : index
    %25 = vector.load %arg7[%c0_16, %c0_17] : memref<128x256xbf16, #tpu.memory_space<vmem>>, vector<128x256xbf16>
    %cst_18 = arith.constant dense<0.000000e+00> : vector<128x256xf32>
    %26 = tpu.matmul %24, %25, %cst_18 {dimension_numbers = #tpu.dot_dimension_numbers<[1], [0], [0], [1], [0, 0, 1, 1], [], []>} : vector<128x128xbf16>, vector<128x256xbf16>, vector<128x256xf32> -> vector<128x256xf32>
    %27 = arith.truncf %26 : vector<128x256xf32> to vector<128x256xbf16>
    %c0_19 = arith.constant 0 : index
    %c0_20 = arith.constant 0 : index
    %28 = vector.load %arg8[%c0_19, %c0_20] : memref<1x256xbf16, #tpu.memory_space<vmem>>, vector<1x256xbf16>
    %29 = vector.broadcast %28 : vector<1x256xbf16> to vector<128x256xbf16>
    %30 = arith.addf %27, %29 : vector<128x256xbf16>
    %cst_21 = arith.constant 0.000000e+00 : bf16
    %31 = vector.broadcast %cst_21 : bf16 to vector<128x256xbf16>
    %32 = arith.cmpf ogt, %30, %31 : vector<128x256xbf16>
    %cst_22 = arith.constant 1.000980e-02 : bf16
    %33 = vector.broadcast %cst_22 : bf16 to vector<128x256xbf16>
    %34 = arith.mulf %33, %30 : vector<128x256xbf16>
    %35 = arith.select %32, %30, %34 : vector<128x256xi1>, vector<128x256xbf16>
    %c0_23 = arith.constant 0 : index
    %c0_24 = arith.constant 0 : index
    %c0_25 = arith.constant 0 : index
    %36 = vector.load %arg9[%c0_23, %c0_24, %c0_25] : memref<5x256x256xbf16, #tpu.memory_space<vmem>>, vector<1x256x256xbf16>
    %37 = vector.shape_cast %36 : vector<1x256x256xbf16> to vector<256x256xbf16>
    %c0_26 = arith.constant 0 : index
    %c0_27 = arith.constant 0 : index
    %c0_28 = arith.constant 0 : index
    %38 = vector.load %arg10[%c0_26, %c0_27, %c0_28] : memref<5x1x256xbf16, #tpu.memory_space<vmem>>, vector<1x1x256xbf16>
    %39 = vector.shape_cast %38 : vector<1x1x256xbf16> to vector<1x256xbf16>
    %cst_29 = arith.constant dense<0.000000e+00> : vector<128x256xf32>
    %40 = tpu.matmul %35, %37, %cst_29 {dimension_numbers = #tpu.dot_dimension_numbers<[1], [0], [0], [1], [0, 0, 1, 1], [], []>} : vector<128x256xbf16>, vector<256x256xbf16>, vector<128x256xf32> -> vector<128x256xf32>
    %41 = arith.truncf %40 : vector<128x256xf32> to vector<128x256xbf16>
    %42 = vector.broadcast %39 : vector<1x256xbf16> to vector<128x256xbf16>
    %43 = arith.addf %41, %42 : vector<128x256xbf16>
    %cst_30 = arith.constant 0.000000e+00 : bf16
    %44 = vector.broadcast %cst_30 : bf16 to vector<128x256xbf16>
    %45 = arith.cmpf ogt, %43, %44 : vector<128x256xbf16>
    %cst_31 = arith.constant 1.000980e-02 : bf16
    %46 = vector.broadcast %cst_31 : bf16 to vector<128x256xbf16>
    %47 = arith.mulf %46, %43 : vector<128x256xbf16>
    %48 = arith.select %45, %43, %47 : vector<128x256xi1>, vector<128x256xbf16>
    %c1 = arith.constant 1 : index
    %c0_32 = arith.constant 0 : index
    %c0_33 = arith.constant 0 : index
    %49 = vector.load %arg9[%c1, %c0_32, %c0_33] : memref<5x256x256xbf16, #tpu.memory_space<vmem>>, vector<1x256x256xbf16>
    %50 = vector.shape_cast %49 : vector<1x256x256xbf16> to vector<256x256xbf16>
    %c1_34 = arith.constant 1 : index
    %c0_35 = arith.constant 0 : index
    %c0_36 = arith.constant 0 : index
    %51 = vector.load %arg10[%c1_34, %c0_35, %c0_36] : memref<5x1x256xbf16, #tpu.memory_space<vmem>>, vector<1x1x256xbf16>
    %52 = vector.shape_cast %51 : vector<1x1x256xbf16> to vector<1x256xbf16>
    %cst_37 = arith.constant dense<0.000000e+00> : vector<128x256xf32>
    %53 = tpu.matmul %48, %50, %cst_37 {dimension_numbers = #tpu.dot_dimension_numbers<[1], [0], [0], [1], [0, 0, 1, 1], [], []>} : vector<128x256xbf16>, vector<256x256xbf16>, vector<128x256xf32> -> vector<128x256xf32>
    %54 = arith.truncf %53 : vector<128x256xf32> to vector<128x256xbf16>
    %55 = vector.broadcast %52 : vector<1x256xbf16> to vector<128x256xbf16>
    %56 = arith.addf %54, %55 : vector<128x256xbf16>
    %cst_38 = arith.constant 0.000000e+00 : bf16
    %57 = vector.broadcast %cst_38 : bf16 to vector<128x256xbf16>
    %58 = arith.cmpf ogt, %56, %57 : vector<128x256xbf16>
    %cst_39 = arith.constant 1.000980e-02 : bf16
    %59 = vector.broadcast %cst_39 : bf16 to vector<128x256xbf16>
    %60 = arith.mulf %59, %56 : vector<128x256xbf16>
    %61 = arith.select %58, %56, %60 : vector<128x256xi1>, vector<128x256xbf16>
    %c2 = arith.constant 2 : index
    %c0_40 = arith.constant 0 : index
    %c0_41 = arith.constant 0 : index
    %62 = vector.load %arg9[%c2, %c0_40, %c0_41] : memref<5x256x256xbf16, #tpu.memory_space<vmem>>, vector<1x256x256xbf16>
    %63 = vector.shape_cast %62 : vector<1x256x256xbf16> to vector<256x256xbf16>
    %c2_42 = arith.constant 2 : index
    %c0_43 = arith.constant 0 : index
    %c0_44 = arith.constant 0 : index
    %64 = vector.load %arg10[%c2_42, %c0_43, %c0_44] : memref<5x1x256xbf16, #tpu.memory_space<vmem>>, vector<1x1x256xbf16>
    %65 = vector.shape_cast %64 : vector<1x1x256xbf16> to vector<1x256xbf16>
    %cst_45 = arith.constant dense<0.000000e+00> : vector<128x256xf32>
    %66 = tpu.matmul %61, %63, %cst_45 {dimension_numbers = #tpu.dot_dimension_numbers<[1], [0], [0], [1], [0, 0, 1, 1], [], []>} : vector<128x256xbf16>, vector<256x256xbf16>, vector<128x256xf32> -> vector<128x256xf32>
    %67 = arith.truncf %66 : vector<128x256xf32> to vector<128x256xbf16>
    %68 = vector.broadcast %65 : vector<1x256xbf16> to vector<128x256xbf16>
    %69 = arith.addf %67, %68 : vector<128x256xbf16>
    %cst_46 = arith.constant 0.000000e+00 : bf16
    %70 = vector.broadcast %cst_46 : bf16 to vector<128x256xbf16>
    %71 = arith.cmpf ogt, %69, %70 : vector<128x256xbf16>
    %cst_47 = arith.constant 1.000980e-02 : bf16
    %72 = vector.broadcast %cst_47 : bf16 to vector<128x256xbf16>
    %73 = arith.mulf %72, %69 : vector<128x256xbf16>
    %74 = arith.select %71, %69, %73 : vector<128x256xi1>, vector<128x256xbf16>
    %c3 = arith.constant 3 : index
    %c0_48 = arith.constant 0 : index
    %c0_49 = arith.constant 0 : index
    %75 = vector.load %arg9[%c3, %c0_48, %c0_49] : memref<5x256x256xbf16, #tpu.memory_space<vmem>>, vector<1x256x256xbf16>
    %76 = vector.shape_cast %75 : vector<1x256x256xbf16> to vector<256x256xbf16>
    %c3_50 = arith.constant 3 : index
    %c0_51 = arith.constant 0 : index
    %c0_52 = arith.constant 0 : index
    %77 = vector.load %arg10[%c3_50, %c0_51, %c0_52] : memref<5x1x256xbf16, #tpu.memory_space<vmem>>, vector<1x1x256xbf16>
    %78 = vector.shape_cast %77 : vector<1x1x256xbf16> to vector<1x256xbf16>
    %cst_53 = arith.constant dense<0.000000e+00> : vector<128x256xf32>
    %79 = tpu.matmul %74, %76, %cst_53 {dimension_numbers = #tpu.dot_dimension_numbers<[1], [0], [0], [1], [0, 0, 1, 1], [], []>} : vector<128x256xbf16>, vector<256x256xbf16>, vector<128x256xf32> -> vector<128x256xf32>
    %80 = arith.truncf %79 : vector<128x256xf32> to vector<128x256xbf16>
    %81 = vector.broadcast %78 : vector<1x256xbf16> to vector<128x256xbf16>
    %82 = arith.addf %80, %81 : vector<128x256xbf16>
    %cst_54 = arith.constant 0.000000e+00 : bf16
    %83 = vector.broadcast %cst_54 : bf16 to vector<128x256xbf16>
    %84 = arith.cmpf ogt, %82, %83 : vector<128x256xbf16>
    %cst_55 = arith.constant 1.000980e-02 : bf16
    %85 = vector.broadcast %cst_55 : bf16 to vector<128x256xbf16>
    %86 = arith.mulf %85, %82 : vector<128x256xbf16>
    %87 = arith.select %84, %82, %86 : vector<128x256xi1>, vector<128x256xbf16>
    %c4 = arith.constant 4 : index
    %c0_56 = arith.constant 0 : index
    %c0_57 = arith.constant 0 : index
    %88 = vector.load %arg9[%c4, %c0_56, %c0_57] : memref<5x256x256xbf16, #tpu.memory_space<vmem>>, vector<1x256x256xbf16>
    %89 = vector.shape_cast %88 : vector<1x256x256xbf16> to vector<256x256xbf16>
    %c4_58 = arith.constant 4 : index
    %c0_59 = arith.constant 0 : index
    %c0_60 = arith.constant 0 : index
    %90 = vector.load %arg10[%c4_58, %c0_59, %c0_60] : memref<5x1x256xbf16, #tpu.memory_space<vmem>>, vector<1x1x256xbf16>
    %91 = vector.shape_cast %90 : vector<1x1x256xbf16> to vector<1x256xbf16>
    %cst_61 = arith.constant dense<0.000000e+00> : vector<128x256xf32>
    %92 = tpu.matmul %87, %89, %cst_61 {dimension_numbers = #tpu.dot_dimension_numbers<[1], [0], [0], [1], [0, 0, 1, 1], [], []>} : vector<128x256xbf16>, vector<256x256xbf16>, vector<128x256xf32> -> vector<128x256xf32>
    %93 = arith.truncf %92 : vector<128x256xf32> to vector<128x256xbf16>
    %94 = vector.broadcast %91 : vector<1x256xbf16> to vector<128x256xbf16>
    %95 = arith.addf %93, %94 : vector<128x256xbf16>
    %cst_62 = arith.constant 0.000000e+00 : bf16
    %96 = vector.broadcast %cst_62 : bf16 to vector<128x256xbf16>
    %97 = arith.cmpf ogt, %95, %96 : vector<128x256xbf16>
    %cst_63 = arith.constant 1.000980e-02 : bf16
    %98 = vector.broadcast %cst_63 : bf16 to vector<128x256xbf16>
    %99 = arith.mulf %98, %95 : vector<128x256xbf16>
    %100 = arith.select %97, %95, %99 : vector<128x256xi1>, vector<128x256xbf16>
    %c0_64 = arith.constant 0 : index
    %c0_65 = arith.constant 0 : index
    %101 = vector.load %arg11[%c0_64, %c0_65] : memref<256x128xbf16, #tpu.memory_space<vmem>>, vector<256x128xbf16>
    %cst_66 = arith.constant dense<0.000000e+00> : vector<128x128xf32>
    %102 = tpu.matmul %100, %101, %cst_66 {dimension_numbers = #tpu.dot_dimension_numbers<[1], [0], [0], [1], [0, 0, 1, 1], [], []>} : vector<128x256xbf16>, vector<256x128xbf16>, vector<128x128xf32> -> vector<128x128xf32>
    %c0_67 = arith.constant 0 : index
    %c0_68 = arith.constant 0 : index
    %103 = vector.load %arg12[%c0_67, %c0_68] : memref<1x128xf32, #tpu.memory_space<vmem>>, vector<1x128xf32>
    %104 = vector.broadcast %103 : vector<1x128xf32> to vector<128x128xf32>
    %105 = arith.addf %102, %104 : vector<128x128xf32>
    %106 = math.absf %105 : vector<128x128xf32>
    %107 = tpu.iota {dimensions = array<i32: 1>} : vector<128x128xi32>
    %c5_i32 = arith.constant 5 : i32
    %108 = vector.broadcast %c5_i32 : i32 to vector<128x128xi32>
    %109 = arith.cmpi sge, %107, %108 : vector<128x128xi32>
    %c8_i32 = arith.constant 8 : i32
    %110 = vector.broadcast %c8_i32 : i32 to vector<128x128xi32>
    %111 = arith.cmpi slt, %107, %110 : vector<128x128xi32>
    %112 = arith.andi %109, %111 : vector<128x128xi1>
    %cst_69 = arith.constant 0xFF800000 : f32
    %113 = vector.broadcast %cst_69 : f32 to vector<128x128xf32>
    %114 = arith.select %112, %106, %113 : vector<128x128xi1>, vector<128x128xf32>
    %cst_70 = arith.constant dense<0xFF800000> : vector<128xf32>
    %115 = vector.multi_reduction <maximumf>, %114, %cst_70 [1] : vector<128x128xf32> to vector<128xf32>
    %116 = vector.shape_cast %115 : vector<128xf32> to vector<128x1xf32>
    %117 = vector.broadcast %116 : vector<128x1xf32> to vector<128x128xf32>
    %118 = arith.subf %114, %117 : vector<128x128xf32>
    %119 = math.exp %118 : vector<128x128xf32>
    %cst_71 = arith.constant dense<0.000000e+00> : vector<128xf32>
    %120 = vector.multi_reduction <add>, %119, %cst_71 [1] : vector<128x128xf32> to vector<128xf32>
    %121 = vector.shape_cast %120 : vector<128xf32> to vector<128x1xf32>
    %122 = tpu.reciprocal %121 {approx = true} : vector<128x1xf32> -> vector<128x1xf32>
    %123 = vector.broadcast %122 : vector<128x1xf32> to vector<128x128xf32>
    %124 = arith.mulf %119, %123 : vector<128x128xf32>
    %c4_i32 = arith.constant 4 : i32
    %125 = vector.broadcast %c4_i32 : i32 to vector<128x128xi32>
    %126 = arith.cmpi slt, %107, %125 : vector<128x128xi32>
    %c5_i32_72 = arith.constant 5 : i32
    %127 = vector.broadcast %c5_i32_72 : i32 to vector<128x128xi32>
    %128 = arith.cmpi slt, %107, %127 : vector<128x128xi32>
    %129 = arith.negf %106 : vector<128x128xf32>
    %130 = math.exp %129 : vector<128x128xf32>
    %cst_73 = arith.constant 1.000000e+00 : f32
    %131 = vector.broadcast %cst_73 : f32 to vector<128x128xf32>
    %132 = arith.addf %131, %130 : vector<128x128xf32>
    %133 = arith.divf %131, %132 : vector<128x128xf32>
    %134 = arith.select %128, %133, %124 : vector<128x128xi1>, vector<128x128xf32>
    %135 = arith.select %126, %106, %134 : vector<128x128xi1>, vector<128x128xf32>
    %c0_74 = arith.constant 0 : index
    %c0_75 = arith.constant 0 : index
    %136 = vector.load %arg13[%c0_74, %c0_75] : memref<128x128xf32, #tpu.memory_space<vmem>>, vector<128x128xf32>
    tpu.vector_store %arg13[%c0_74, %c0_75], %135 {strides = array<i32>} : memref<128x128xf32, #tpu.memory_space<vmem>>, vector<128x128xf32>,
    return
  }
  func.func @transform_0(%arg0: i32) -> (i32, i32) {
    %c0_i32 = arith.constant 0 : i32
    %c0_i32_0 = arith.constant 0 : i32
    return %arg0, %c0_i32 : i32, i32
  }
  func.func @transform_1(%arg0: i32) -> (i32, i32) {
    %c0_i32 = arith.constant 0 : i32
    %c0_i32_0 = arith.constant 0 : i32
    return %arg0, %c0_i32 : i32, i32
  }
  func.func @transform_2(%arg0: i32) -> (i32, i32) {
    %c0_i32 = arith.constant 0 : i32
    %c0_i32_0 = arith.constant 0 : i32
    %c0_i32_1 = arith.constant 0 : i32
    return %c0_i32, %c0_i32_0 : i32, i32
  }
  func.func @transform_3(%arg0: i32) -> (i32, i32) {
    %c0_i32 = arith.constant 0 : i32
    %c0_i32_0 = arith.constant 0 : i32
    %c0_i32_1 = arith.constant 0 : i32
    return %c0_i32, %c0_i32_0 : i32, i32
  }
  func.func @transform_4(%arg0: i32) -> (i32, i32) {
    %c0_i32 = arith.constant 0 : i32
    %c0_i32_0 = arith.constant 0 : i32
    %c0_i32_1 = arith.constant 0 : i32
    return %c0_i32, %c0_i32_0 : i32, i32
  }
  func.func @transform_5(%arg0: i32) -> (i32, i32) {
    %c0_i32 = arith.constant 0 : i32
    %c0_i32_0 = arith.constant 0 : i32
    %c0_i32_1 = arith.constant 0 : i32
    return %c0_i32, %c0_i32_0 : i32, i32
  }
  func.func @transform_6(%arg0: i32) -> (i32, i32) {
    %c0_i32 = arith.constant 0 : i32
    %c0_i32_0 = arith.constant 0 : i32
    %c0_i32_1 = arith.constant 0 : i32
    return %c0_i32, %c0_i32_0 : i32, i32
  }
  func.func @transform_7(%arg0: i32) -> (i32, i32) {
    %c0_i32 = arith.constant 0 : i32
    %c0_i32_0 = arith.constant 0 : i32
    %c0_i32_1 = arith.constant 0 : i32
    return %c0_i32, %c0_i32_0 : i32, i32
  }
  func.func @transform_8(%arg0: i32) -> (i32, i32, i32) {
    %c0_i32 = arith.constant 0 : i32
    %c0_i32_0 = arith.constant 0 : i32
    %c0_i32_1 = arith.constant 0 : i32
    %c0_i32_2 = arith.constant 0 : i32
    return %c0_i32, %c0_i32_0, %c0_i32_1 : i32, i32, i32
  }
  func.func @transform_9(%arg0: i32) -> (i32, i32, i32) {
    %c0_i32 = arith.constant 0 : i32
    %c0_i32_0 = arith.constant 0 : i32
    %c0_i32_1 = arith.constant 0 : i32
    %c0_i32_2 = arith.constant 0 : i32
    return %c0_i32, %c0_i32_0, %c0_i32_1 : i32, i32, i32
  }
  func.func @transform_10(%arg0: i32) -> (i32, i32) {
    %c0_i32 = arith.constant 0 : i32
    %c0_i32_0 = arith.constant 0 : i32
    %c0_i32_1 = arith.constant 0 : i32
    return %c0_i32, %c0_i32_0 : i32, i32
  }
  func.func @transform_11(%arg0: i32) -> (i32, i32) {
    %c0_i32 = arith.constant 0 : i32
    %c0_i32_0 = arith.constant 0 : i32
    %c0_i32_1 = arith.constant 0 : i32
    return %c0_i32, %c0_i32_0 : i32, i32
  }
  func.func @transform_12(%arg0: i32) -> (i32, i32) {
    %c0_i32 = arith.constant 0 : i32
    %c0_i32_0 = arith.constant 0 : i32
    return %arg0, %c0_i32 : i32, i32
  }
}

</mosaic_0001>

<bundles_post_ra>
// kernel: tpu_custom_call.1
= control target key start
LH: loop header
LB: loop body
LE: loop exit
PB: predicated region body
PF: predicated region fallthrough
CT: control target
= control target key end

     0   :  { %s7008_s0 = inlined_call_operand.hbm [shape: bf16[256,256], index: 0, kind: input, shape index: {}]   ;;  %s7009_s1 = inlined_call_operand.hbm [shape: bf16[256,128], index: 1, kind: input, shape index: {}]   ;;  %s7010_s2 = inlined_call_operand.hbm [shape: bf16[256,256], index: 2, kind: input, shape index: {}]   ;;  %s7011_s3 = inlined_call_operand.vmem [shape: bf16[1,256], index: 3, kind: input, shape index: {}]   ;;  %s7012_s4 = inlined_call_operand.hbm [shape: bf16[256,128], index: 4, kind: input, shape index: {}]   ;;  %s7013_s5 = inlined_call_operand.vmem [shape: bf16[1,128], index: 5, kind: input, shape index: {}]   ;;  %s7014_s6 = inlined_call_operand.hbm [shape: bf16[128,256], index: 6, kind: input, shape index: {}]   ;;  %s7015_s7 = inlined_call_operand.vmem [shape: bf16[1,256], index: 7, kind: input, shape index: {}]   ;;  %s7016_s8 = inlined_call_operand.hbm [shape: bf16[5,256,256], index: 8, kind: input, shape index: {}]   ;;  %s7017_s9 = inlined_call_operand.vmem [shape: bf16[5,1,256], index: 9, kind: input, shape index: {}]   ;;  %s7018_s10 = inlined_call_operand.hbm [shape: bf16[256,128], index: 10, kind: input, shape index: {}]   ;;  %s7019_s11 = inlined_call_operand.vmem [shape: f32[1,128], index: 11, kind: input, shape index: {}]   ;;  %s7020_s12 = inlined_call_operand.hbm [shape: f32[256,128], index: 12, kind: output, shape index: {}]  }
   0x1   :  { %7034 = sst [smem:[#allocation23_spill]] %s7008_s0 }
   0x2   :  { %7035 = sst [smem:[#allocation24_spill]] %s7010_s2 }
   0x3   :  { %7036 = sst [smem:[#allocation25_spill]] %s7012_s4 }
   0x4   :  { %7037 = sst [smem:[#allocation26_spill]] %s7014_s6 }
   0x5   :  { %7038 = sst [smem:[#allocation27_spill]] %s7015_s7 }
   0x6   :  { %7039 = sst [smem:[#allocation28_spill]] %s7016_s8 }
   0x7   :  { %7040 = sst [smem:[#allocation29_spill]] %s7017_s9 }
   0x8   :  { %7041 = sst [smem:[#allocation30_spill]] %s7018_s10 }
   0x9   :  { %7042 = sst [smem:[#allocation31_spill]] %s7019_s11 }
   0xa   :  { %7043 = sst [smem:[#allocation32_spill]] %s7020_s12 }
   0xb   :  { %17 = vsyncpa [#allocation3], 0 }
   0xc   :  { %19 = vsyncpa [#allocation3 + $0x1], 0 }
   0xd   :  { %20 = vsyncpa [#allocation6], 0 }
   0xe   :  { %22 = vsyncpa [#allocation6 + $0x1], 0 }
   0xf   :  { %23 = vsyncpa [#allocation9], 0 }
  0x10   :  { %24 = vsyncpa [#allocation12], 0 }
  0x11   :  { %25 = vsyncpa [#allocation4], 0 }
  0x12   :  { %27 = vsyncpa [#allocation4 + $0x1], 0  ;;  %s6028_s21 = smov 0   ;;  %s6030_s22 = smov 0  }
  0x13   :  { %s6032_s23 = smov 0   ;;  %s6034_s24 = smov 0  }
  0x14 LB: > { %7044 = sst [smem:[#allocation21_spill]] %s5941_s23  ;;  %s5947_s25 = smov [#allocation7]   ;;  %s5945_s24 = sphi %s6034_s24, %s7085_s24   ;;  %s5941_s23 = sphi %s6032_s23, %s7082_s23   ;;  %s5937_s22 = sphi %s6030_s22, %s7084_s22   ;;  %s5933_s21 = sphi %s6028_s21, %s7083_s21  }
  0x15   : > { %s338_s26 = sshll.u32 %s5947_s25, 4  ;;  %s6049_s27 = sadd.s32 4294967295, %s5945_s24   ;;  %s6054_s26 = int_to_ptr.vmem [resolvable:$true] %s338_s26 }
  0x16   : > { %p4581_p0 = scmp.ge.s32.totalorder %s5945_s24, 1  ;;  %p7025_p1 = scmp.eq.s32.totalorder %s6049_s27, 0 }
  0x17   : > { %p326_p2 = scmp.lt.s32.totalorder %s5945_s24, 3  ;;  %s5948_s29 = smov [#allocation8]  }
  0x18   : > { %s354_s30 = sshll.u32 %s5948_s29, 4  ;;  %s5949_s14 = smov [#allocation11]   ;;  %s6069_s30 = int_to_ptr.vmem [resolvable:$true] %s354_s30 }
  0x19   : > { %p6056_p3 = pnand %p4581_p0, %p326_p2  ;;  %s6071_s15 = sshll.u32 %s5949_s14, 4  ;;  %s387_s15 = int_to_ptr.vmem [resolvable:$true] %s6071_s15 }
  0x1a   : > { %s7047_s2 = sld [smem:[#allocation24_spill]] }
  0x1b   : > { %s7045_s28 = scalar_select %p6056_p3, 1, 0 }
  0x1c   : > { %p5075_p5 = pneg %p6056_p3 }
  0x1e   : > { %p6065_p6 = pnand %p5075_p5, %p7025_p1 }
  0x20   : > { %s5663_s18 = scalar_lea.hbm %s7047_s2, 4096  ;;  %p6081_p8 = pneg %p6065_p6 }
  0x21   : > { %p5664_p7 = scmp.ne.s32.totalorder %s7047_s2, %s5663_s18  ;;  %p5670_p11 = scmp.lt.u32.totalorder %s5663_s18, %s7047_s2 }
  0x23   : > { %p5666_p9 = pnand %p6081_p8, %p5664_p7 }
  0x25   : > { %p5667_p10 = pneg %p5666_p9 }
  0x27   : > { %p5672_p12 = pnand %p5670_p11, %p5667_p10 }
  0x29   : > { %5675 = shalt.err (!%p5672_p12)
}
  0x2a   : > { %s5676_s16 = scalar_lea.vmem %s6054_s26, 4096  ;;  %p5684_p5 = scmp.lt.s32.totalorder %s6054_s26, %s6054_s26 }
  0x2b   : > { %p5677_p13 = scmp.ne.s32.totalorder %s6054_s26, %s5676_s16  ;;  %p5685_p4 = scmp.lt.s32.totalorder %s5676_s16, %s5676_s16 }
  0x2d   : > { %p5679_p0 = pnand %p5677_p13, %p6081_p8  ;;  %p5686_p7 = por %p5685_p4, %p5684_p5 }
  0x2f   : > { %p5680_p2 = pneg %p5679_p0 }
  0x31   : > { %p5687_p9 = pnand %p5686_p7, %p5680_p2 }
  0x33   : > { %5690 = shalt.err (!%p5687_p9)
}
  0x34   : > { %s7023_s17 = smov 128   ;;  %s7031_s18 = smov 8  }
  0x35   : > { %5078 = dma.hbm_to_vmem [thread:$0]  (!%p6065_p6), %s7047_s2, 4096, %s6054_s26, [#allocation6], %s7023_s17, %s7023_s17, %s7031_s18  }
  0x36   : > { %s7049_s4 = sld [smem:[#allocation25_spill]] }
  0x3c   : > { %s5691_s16 = scalar_lea.hbm %s7049_s4, 2048 }
  0x3d   : > { %p5692_p4 = scmp.ne.s32.totalorder %s7049_s4, %s5691_s16  ;;  %p5698_p12 = scmp.lt.u32.totalorder %s5691_s16, %s7049_s4 }
  0x3f   : > { %p5694_p10 = pnand %p5692_p4, %p6081_p8 }
  0x41   : > { %p5695_p11 = pneg %p5694_p10 }
  0x43   : > { %p5700_p13 = pnand %p5698_p12, %p5695_p11 }
  0x45   : > { %5703 = shalt.err (!%p5700_p13)
}
  0x46   : > { %s5704_s26 = scalar_lea.vmem %s6069_s30, 2048  ;;  %p5712_p7 = scmp.lt.s32.totalorder %s6069_s30, %s6069_s30 }
  0x47   : > { %p5705_p0 = scmp.ne.s32.totalorder %s6069_s30, %s5704_s26  ;;  %p5713_p9 = scmp.lt.s32.totalorder %s5704_s26, %s5704_s26 }
  0x49   : > { %p5707_p2 = pnand %p5705_p0, %p6081_p8  ;;  %p5714_p4 = por %p5713_p9, %p5712_p7 }
  0x4b   : > { %p5708_p5 = pneg %p5707_p2 }
  0x4d   : > { %p5715_p10 = pnand %p5714_p4, %p5708_p5 }
  0x4f   : > { %5718 = shalt.err (!%p5715_p10)
}
  0x50   : > { %s7027_s11 = smov 64   ;;  %s7029_s7 = smov 4  }
  0x51   : > { %5081 = dma.hbm_to_vmem [thread:$0]  (!%p6065_p6), %s7049_s4, 2048, %s6069_s30, [#allocation9], %s7027_s11, %s7027_s11, %s7029_s7  }
  0x52   : > { %s7050_s8 = sld [smem:[#allocation28_spill]] }
  0x58   : > { %s5719_s29 = scalar_lea.hbm %s7050_s8, 20480 }
  0x59   : > { %p5720_p11 = scmp.ne.s32.totalorder %s7050_s8, %s5719_s29  ;;  %p5726_p0 = scmp.lt.u32.totalorder %s5719_s29, %s7050_s8 }
  0x5b   : > { %p5722_p12 = pnand %p5720_p11, %p6081_p8 }
  0x5d   : > { %p5723_p13 = pneg %p5722_p12 }
  0x5f   : > { %p5728_p2 = pnand %p5726_p0, %p5723_p13 }
  0x61   : > { %5731 = shalt.err (!%p5728_p2)
}
  0x62   : > { %s5732_s9 = scalar_lea.vmem %s387_s15, 20480  ;;  %p5740_p4 = scmp.lt.s32.totalorder %s387_s15, %s387_s15 }
  0x63   : > { %p5733_p5 = scmp.ne.s32.totalorder %s387_s15, %s5732_s9  ;;  %p5741_p10 = scmp.lt.s32.totalorder %s5732_s9, %s5732_s9 }
  0x65   : > { %p5735_p7 = pnand %p5733_p5, %p6081_p8  ;;  %p5742_p1 = por %p5741_p10, %p5740_p4 }
  0x67   : > { %p5736_p9 = pneg %p5735_p7 }
  0x69   : > { %p5743_p3 = pnand %p5742_p1, %p5736_p9 }
  0x6b   : > { %5746 = shalt.err (!%p5743_p3)
}
  0x6c   : > { %s7051_s30 = smov 128   ;;  %s5954_s19 = smov [#allocation10]  }
  0x6d   : > { %5087 = dma.hbm_to_vmem [thread:$0]  (!%p6065_p6), %s7050_s8, 20480, %s387_s15, [#allocation12], %s7051_s30, %s7051_s30, %s7031_s18  }
  0x6e   : > { %s370_s20 = sshll.u32 %s5954_s19, 4  ;;  %s5955_s29 = smov [#allocation13]   ;;  %s371_s20 = int_to_ptr.vmem [resolvable:$true] %s370_s20 }
  0x6f   : > { %s402_s14 = sshll.u32 %s5955_s29, 4  ;;  %s7052_s6 = sld [smem:[#allocation26_spill]]  ;;  %s403_s14 = int_to_ptr.vmem [resolvable:$true] %s402_s14 }
  0x75   : > { %s5747_s9 = scalar_lea.hbm %s7052_s6, 2048 }
  0x76   : > { %p5748_p1 = scmp.ne.s32.totalorder %s7052_s6, %s5747_s9  ;;  %p5754_p12 = scmp.lt.u32.totalorder %s5747_s9, %s7052_s6 }
  0x78   : > { %p5750_p3 = pnand %p5748_p1, %p6081_p8 }
  0x7a   : > { %p5751_p11 = pneg %p5750_p3 }
  0x7c   : > { %p5756_p13 = pnand %p5754_p12, %p5751_p11 }
  0x7e   : > { %5759 = shalt.err (!%p5756_p13)
}
  0x7f   : > { %s5760_s15 = scalar_lea.vmem %s371_s20, 2048  ;;  %p5768_p7 = scmp.lt.s32.totalorder %s371_s20, %s371_s20 }
  0x80   : > { %p5761_p0 = scmp.ne.s32.totalorder %s371_s20, %s5760_s15  ;;  %p5769_p9 = scmp.lt.s32.totalorder %s5760_s15, %s5760_s15 }
  0x82   : > { %p5763_p2 = pnand %p5761_p0, %p6081_p8  ;;  %p5770_p4 = por %p5769_p9, %p5768_p7 }
  0x84   : > { %p5764_p5 = pneg %p5763_p2 }
  0x86   : > { %p5771_p10 = pnand %p5770_p4, %p5764_p5 }
  0x88   : > { %5774 = shalt.err (!%p5771_p10)
}
  0x89   : > { %5084 = dma.hbm_to_vmem [thread:$0]  (!%p6065_p6), %s7052_s6, 2048, %s371_s20, [#allocation9], %s7051_s30, %s7051_s30, %s7031_s18  }
  0x8a   : > { %s7053_s10 = sld [smem:[#allocation30_spill]] }
  0x90   : > { %s5775_s19 = scalar_lea.hbm %s7053_s10, 2048 }
  0x91   : > { %p5776_p1 = scmp.ne.s32.totalorder %s7053_s10, %s5775_s19  ;;  %p5782_p12 = scmp.lt.u32.totalorder %s5775_s19, %s7053_s10 }
  0x93   : > { %p5778_p3 = pnand %p5776_p1, %p6081_p8 }
  0x95   : > { %p5779_p11 = pneg %p5778_p3 }
  0x97   : > { %p5784_p13 = pnand %p5782_p12, %p5779_p11 }
  0x99   : > { %5787 = shalt.err (!%p5784_p13)
}
  0x9a   : > { %s5788_s17 = scalar_lea.vmem %s403_s14, 2048  ;;  %p5796_p7 = scmp.lt.s32.totalorder %s403_s14, %s403_s14 }
  0x9b   : > { %p5789_p0 = scmp.ne.s32.totalorder %s403_s14, %s5788_s17  ;;  %p5797_p9 = scmp.lt.s32.totalorder %s5788_s17, %s5788_s17 }
  0x9d   : > { %p5791_p2 = pnand %p5789_p0, %p6081_p8  ;;  %p5798_p4 = por %p5797_p9, %p5796_p7 }
  0x9f   : > { %p5792_p5 = pneg %p5791_p2 }
  0xa1   : > { %p5799_p10 = pnand %p5798_p4, %p5792_p5 }
  0xa3   : > { %5802 = shalt.err (!%p5799_p10)
}
  0xa4   : > { %s7054_s20 = smov 4   ;;  %s7055_s15 = smov 64  }
  0xa5   : > { %5090 = dma.hbm_to_vmem [thread:$0]  (!%p6065_p6), %s7053_s10, 2048, %s403_s14, [#allocation12], %s7055_s15, %s7055_s15, %s7054_s20  }
  0xa6   : > { %s4580_s13 = sadd.s32 4294967294, %s5945_s24   ;;  %s6197_s25 = sadd.s32 1, %s5945_s24  }
  0xa7   : > { %s40_s7 = sadd.s32 1, %s5941_s23  ;;  %s37_s12 = ssub.s32 %s5945_s24, %s6197_s25 }
  0xa8   : > { %p47_p8 = scmp.ne.s32.totalorder %s5941_s23, %s5937_s22  ;;  %p38_p1 = scmp.eq.s32.totalorder %s37_s12, 0 }
  0xa9   : > { %p48_p3 = scmp.eq.s32.totalorder %s5945_s24, 0  ;;  %p53_p11 = scmp.ne.s32.totalorder %s5937_s22, %s5933_s21 }
  0xaa   : > { %p313_p12 = scmp.eq.s32.totalorder %s6049_s27, 1  ;;  %p7057_p0 = scmp.eq.s32.totalorder %s6049_s27, 0 }
  0xab   : > { %s6209_s19 = scalar_select %p38_p1, %s5941_s23, %s40_s7  }
  0xac   : > { %p49_p13 = por %p48_p3, %p47_p8  ;;  %p6213_p2 = por %p7057_p0, %p53_p11 }
  0xad   : > { %7056 = sst [smem:[#allocation22_spill]] %s6209_s19  ;;  %p6217_p6 = por %p313_p12, %p47_p8 }
  0xae   : > { %p319_p5 = scmp.eq.s32.totalorder %s4580_s13, 1  ;;  %p5107_p7 = scmp.lt.s32.totalorder %s5945_s24, 2 }
  0xaf   : > { %s7059_s29 = scalar_select %p6217_p6, 1, 0 }
  0xb0   : > { %s6223_s16 = sand.u32 1, %s5941_s23   ;;  %p6225_p9 = por %p319_p5, %p53_p11 }
  0xb1   : > { %s4588_s9 = sshll.u32 %s6223_s16, 7  ;;  %s4902_s17 = sshll.u32 %s5945_s24, 11 }
  0xb2   : > { %s7060_s26 = scalar_select %p6225_p9, 1, 0 }
  0xb3   : > { %s7061_s0 = sld [smem:[#allocation23_spill]]  ;;  %s423_s13 = scalar_lea.vmem [#allocation2], %s4588_s9 }
  0xb4   : > { %s431_s12 = sshll.u32 %s423_s13, 4  ;;  %p6236_p4 = pnand %p5107_p7, %p49_p13  ;;  %s6240_s12 = int_to_ptr.vmem [resolvable:$true] %s431_s12 }
  0xb5   : > { %s420_s6 = scalar_lea.sflag [#allocation3], %s6223_s16 }
  0xb6   : > { %p5805_p8 = pneg %p6236_p4 }
  0xb9   : > { %s6234_s7 = scalar_lea.hbm %s7061_s0, %s4902_s17  ;;  %s5808_s2 = scalar_lea.hbm %s7061_s0, 4096 }
  0xba   : > { %s5803_s8 = scalar_lea.hbm %s6234_s7, 2048  ;;  %p5809_p11 = scmp.lt.u32.totalorder %s6234_s7, %s7061_s0 }
  0xbb   : > { %p5804_p10 = scmp.ne.s32.totalorder %s6234_s7, %s5803_s8  ;;  %p5810_p12 = scmp.lt.u32.totalorder %s5808_s2, %s5803_s8 }
  0xbc   : > { %p5812_p0 = scmp.lt.u32.totalorder %s5803_s8, %s6234_s7 }
  0xbd   : > { %p5806_p1 = pnand %p5805_p8, %p5804_p10  ;;  %p5811_p13 = por %p5810_p12, %p5809_p11 }
  0xbf   : > { %p5807_p3 = pneg %p5806_p1  ;;  %p5813_p5 = por %p5812_p0, %p5811_p13 }
  0xc1   : > { %p5814_p7 = pnand %p5813_p5, %p5807_p3 }
  0xc3   : > { %5817 = shalt.err (!%p5814_p7)
}
  0xc4   : > { %s5818_s4 = scalar_lea.vmem %s6240_s12, 2048  ;;  %s5956_s9 = smov [#allocation2]  }
  0xc5   : > { %p5819_p10 = scmp.ne.s32.totalorder %s6240_s12, %s5818_s4  ;;  %s5823_s17 = sshll.u32 %s5956_s9, 4  ;;  %s5824_s17 = int_to_ptr.vmem [resolvable:$false] %s5823_s17 }
  0xc6   : > { %s5825_s11 = scalar_lea.vmem %s5824_s17, 4096  ;;  %p5826_p6 = scmp.lt.s32.totalorder %s6240_s12, %s5824_s17 }
  0xc7   : > { %p5821_p1 = pnand %p5819_p10, %p5805_p8  ;;  %p5827_p11 = scmp.lt.s32.totalorder %s5825_s11, %s5818_s4 }
  0xc9   : > { %p5822_p9 = pneg %p5821_p1  ;;  %p5828_p12 = por %p5827_p11, %p5826_p6 }
  0xcb   : > { %p5829_p13 = pnand %p5828_p12, %p5822_p9 }
  0xcd   : > { %5832 = shalt.err (!%p5829_p13)
}
  0xce   : > { %s7063_s8 = smov 8   ;;  %s4592_s2 = sshll.u32 %s6223_s16, 6 }
  0xcf   : > { %5094 = dma.hbm_to_vmem [thread:$0]  (!%p6236_p4), %s6234_s7, 2048, %s6240_s12, %s420_s6, %s7051_s30, %s7051_s30, %s7063_s8  }
  0xd0   : > { %s4903_s13 = sshll.u32 %s5945_s24, 10  ;;  %s445_s11 = scalar_lea.vmem [#allocation5], %s4592_s2 }
  0xd1   : > { %s6279_s17 = scalar_lea.hbm %s7009_s1, %s4903_s13  ;;  %s452_s0 = sshll.u32 %s445_s11, 4  ;;  %s6281_s0 = int_to_ptr.vmem [resolvable:$true] %s452_s0 }
  0xd2   : > { %s7064_s10 = sand.u32 1, %s5945_s24   ;;  %s5833_s23 = scalar_lea.hbm %s6279_s17, 1024 }
  0xd3   : > { %s6285_s19 = scalar_lea.sflag [#allocation6], %s7064_s10  ;;  %p5834_p6 = scmp.ne.s32.totalorder %s6279_s17, %s5833_s23 }
  0xd4   : > { %s5838_s16 = scalar_lea.hbm %s7009_s1, 2048  ;;  %p5839_p0 = scmp.lt.u32.totalorder %s6279_s17, %s7009_s1 }
  0xd5   : > { %p5836_p9 = pnand %p5834_p6, %p5805_p8  ;;  %p5840_p5 = scmp.lt.u32.totalorder %s5838_s16, %s5833_s23 }
  0xd6   : > { %p5842_p10 = scmp.lt.u32.totalorder %s5833_s23, %s6279_s17 }
  0xd7   : > { %p5837_p3 = pneg %p5836_p9  ;;  %p5841_p7 = por %p5840_p5, %p5839_p0 }
  0xd9   : > { %p5843_p1 = por %p5842_p10, %p5841_p7 }
  0xdb   : > { %p5844_p11 = pnand %p5843_p1, %p5837_p3 }
  0xdd   : > { %5847 = shalt.err (!%p5844_p11)
}
  0xde   : > { %s5848_s10 = scalar_lea.vmem %s6281_s0, 1024  ;;  %s5957_s8 = smov [#allocation5]  }
  0xdf   : > { %p5849_p12 = scmp.ne.s32.totalorder %s6281_s0, %s5848_s10  ;;  %s5853_s2 = sshll.u32 %s5957_s8, 4  ;;  %s5854_s2 = int_to_ptr.vmem [resolvable:$false] %s5853_s2 }
  0xe0   : > { %s5855_s13 = scalar_lea.vmem %s5854_s2, 2048  ;;  %p5856_p9 = scmp.lt.s32.totalorder %s6281_s0, %s5854_s2 }
  0xe1   : > { %p5851_p13 = pnand %p5849_p12, %p5805_p8  ;;  %p5857_p0 = scmp.lt.s32.totalorder %s5855_s13, %s5848_s10 }
  0xe3   : > { %p5852_p6 = pneg %p5851_p13  ;;  %p5858_p5 = por %p5857_p0, %p5856_p9 }
  0xe5   : > { %p5859_p7 = pnand %p5858_p5, %p5852_p6 }
  0xe7   : > { %5862 = shalt.err (!%p5859_p7)
}
  0xe8   : > { %5097 = dma.hbm_to_vmem [thread:$0]  (!%p6236_p4), %s6279_s17, 1024, %s6281_s0, %s6285_s19, %s7055_s15, %s7055_s15, %s7054_s20  }
  0xe9   : > { %p7065_p8 = scmp.ne.s32.totalorder %s7045_s28, 0 }
  0xea   : > { %s6317_s23 = sand.u32 (!%p7065_p8), 1, %s5937_s22  }
  0xeb   : > { %464 = sbr.rel (%p7065_p8) target bundleno = 2715 (0xa9b), region = 68  ;;  %s4596_s4 = sshll.u32 (!%p7065_p8), %s6317_s23, 7 }
  0xec   : > { %s467_s9 = scalar_lea.sflag (!%p7065_p8), [#allocation3], %s6317_s23  ;;  %s6323_s18 = scalar_lea.vmem (!%p7065_p8), [#allocation2], %s4596_s4 }
  0xf2   : > { %5908 = dma.done.wait (%p6213_p2), %s467_s9, 2048  }
  0xf3   : > { %5910 = vsyncadd (%p6213_p2), %s467_s9, 4294965248  ;;  %s475_s0 = sand.u32 1, %s6049_s27   ;;  %s4597_s28 = sshll.u32 %s6317_s23, 6 }
  0xf4   : > { %s476_s20 = scalar_lea.sflag [#allocation6], %s475_s0  ;;  %s6331_s15 = scalar_lea.vmem [#allocation5], %s4597_s28 }
  0xf5   : > { %5912 = dma.done.wait (%p6213_p2), %s476_s20, 1024  }
  0xf6   : > { %5914 = vsyncadd (%p6213_p2), %s476_s20, 4294966272  ;;  %p7066_p4 = scmp.eq.s32.totalorder %s6049_s27, 0 }
  0xf8   : > { %5916 = dma.done.wait (%p7066_p4), [#allocation6], 4096   ;;  %p7067_p3 = pmov %p7066_p4 }
  0xfa   : > { %5918 = vsyncadd (%p7067_p3), [#allocation6], 4294963200  ;;  %p7068_p10 = pmov %p7067_p3 }
  0xfb   : > { %p7069_p1 = pmov %p7067_p3 }
  0xfc   : > { %5920 = dma.done.wait (%p7068_p10), [#allocation9], 4096  }
  0xfd   : > { %5922 = vsyncadd (%p7069_p1), [#allocation9], 4294963200  ;;  %p7070_p11 = pmov %p7069_p1 }
  0xfe   : > { %p7071_p12 = pmov %p7069_p1 }
  0xff   : > { %5924 = dma.done.wait (%p7070_p11), [#allocation12], 22528  }
 0x100   : > { %5926 = vsyncadd (%p7071_p12), [#allocation12], 4294944768  ;;  %v5159_v0 = vld [vmem:[#allocation7 + $0x4] ss:$8 sps:$4 sm:$0xff]   ;;  %v5161_v1 = vld [vmem:[#allocation7] ss:$8 sps:$4 sm:$0xff]  }
 0x101   : > { %838 = vmatprep.subr.bf16.mxu0 %v5159_v0  ;;  %v5162_v2 = vld [vmem:[#allocation7 + $0x14] ss:$8 sps:$4 sm:$0xff]   ;;  %v5164_v3 = vld [vmem:[#allocation7 + $0x10] ss:$8 sps:$4 sm:$0xff]   ;;  %v5165_v4 = vld [vmem:[#allocation7 + $0x24] ss:$8 sps:$4 sm:$0xff]  }
 0x102   : > { %839 = vmatpush1.bf16.msra.mxu0 %v5161_v1  ;;  %v5167_v5 = vld [vmem:[#allocation7 + $0x20] ss:$8 sps:$4 sm:$0xff]   ;;  %v5168_v6 = vld [vmem:[#allocation7 + $0x34] ss:$8 sps:$4 sm:$0xff]   ;;  %v5170_v7 = vld [vmem:[#allocation7 + $0x30] ss:$8 sps:$4 sm:$0xff]  }
 0x103   : > { %840 = vmatprep.subr.bf16.mxu0 %v5162_v2  ;;  %v5171_v8 = vld [vmem:[#allocation7 + $0x44] ss:$8 sps:$4 sm:$0xff]   ;;  %v5173_v9 = vld [vmem:[#allocation7 + $0x40] ss:$8 sps:$4 sm:$0xff]   ;;  %v5174_v10 = vld [vmem:[#allocation7 + $0x54] ss:$8 sps:$4 sm:$0xff]  }
 0x104   : > { %v5176_v11 = vld [vmem:[#allocation7 + $0x50] ss:$8 sps:$4 sm:$0xff]   ;;  %v5177_v12 = vld [vmem:[#allocation7 + $0x64] ss:$8 sps:$4 sm:$0xff]   ;;  %v5179_v14 = vld [vmem:[#allocation7 + $0x60] ss:$8 sps:$4 sm:$0xff]  }
 0x105   : > { %v5209_v13 = vld [vmem:[%s6323_s18 + $0x4] ss:$8 sps:$4 sm:$0xff]   ;;  %v5180_v15 = vld [vmem:[#allocation7 + $0x74] ss:$8 sps:$4 sm:$0xff]   ;;  %v5182_v16 = vld [vmem:[#allocation7 + $0x70] ss:$8 sps:$4 sm:$0xff]  }
 0x106   : > { %841 = vmatpush1.bf16.msra.mxu0 %v5164_v3  ;;  %870 = vmatprep.mubr.bf16.mxu0 %v5209_v13  ;;  %v5183_v17 = vld [vmem:[#allocation7 + $0x84] ss:$8 sps:$4 sm:$0xff]   ;;  %v5185_v18 = vld [vmem:[#allocation7 + $0x80] ss:$8 sps:$4 sm:$0xff]   ;;  %v5186_v19 = vld [vmem:[#allocation7 + $0x94] ss:$8 sps:$4 sm:$0xff]   ;;  %v980_v3 = vlaneseq }
 0x107   : > { %842 = vmatprep.subr.bf16.mxu0 %v5165_v4  ;;  %v5231_v20 = vld [vmem:[#allocation8 + $0x40] sm:$0xff]   ;;  %v5188_v21 = vld [vmem:[#allocation7 + $0x90] ss:$8 sps:$4 sm:$0xff]   ;;  %v5233_v24 = vld [vmem:[#allocation8 + $0x48] sm:$0xff]   ;;  %v5958_v1 = vmov 1966171168  }
 0x108   : > { %v5232_v22 = vld [vmem:[#allocation8] sm:$0xff]   ;;  %4905 = vmatprep.subr.bf16.mxu1 %v5231_v20  ;;  %v5234_v25 = vld [vmem:[#allocation8 + $0x8] sm:$0xff]   ;;  %v5235_v26 = vld [vmem:[#allocation8 + $0x50] sm:$0xff]   ;;  %v978_v2 = vunpack.c.l.s4 %v5958_v1  ;;  %s7072_s16 = sld [smem:[#allocation27_spill]]  ;;  %s7073_s10 = sld [smem:[#allocation29_spill]] }
 0x109   : > { %v5189_v23 = vld [vmem:[#allocation7 + $0xa4] ss:$8 sps:$4 sm:$0xff]   ;;  %4906 = vmatpush3.bf16.msra.mxu1 %v5232_v22  ;;  %v5191_v27 = vld [vmem:[#allocation7 + $0xa0] ss:$8 sps:$4 sm:$0xff]   ;;  %v5192_v28 = vld [vmem:[#allocation7 + $0xb4] ss:$8 sps:$4 sm:$0xff]  }
 0x10a   : > { %843 = vmatpush1.bf16.msra.mxu0 %v5167_v5  ;;  %4907 = vmatprep.subr.bf16.mxu1 %v5233_v24  ;;  %v5236_v29 = vld [vmem:[#allocation8 + $0x10] sm:$0xff]   ;;  %v5237_v30 = vld [vmem:[#allocation8 + $0x58] sm:$0xff]   ;;  %v5195_v33 = vld [vmem:[#allocation7 + $0xc4] ss:$8 sps:$4 sm:$0xff]   ;;  %v979_v4 = vunpack.c.0.s8 %v978_v2  ;;  %v981_v5 = vshrl.u32 %v980_v3, 7  ;;  %s7074_s14 = sld [smem:[#allocation31_spill]] }
 0x10b   : > { %844 = vmatprep.subr.bf16.mxu0 %v5168_v6  ;;  %v5194_v31 = vld [vmem:[#allocation7 + $0xb0] ss:$8 sps:$4 sm:$0xff]   ;;  %v5239_v34 = vld [vmem:[#allocation8 + $0x60] sm:$0xff]   ;;  %v5198_v37 = vld [vmem:[#allocation7 + $0xd4] ss:$8 sps:$4 sm:$0xff]   ;;  %s6843_s17 = scalar_lea.vmem [#allocation14], %s4596_s4 }
 0x10c   : > { %v5238_v32 = vld [vmem:[#allocation8 + $0x18] sm:$0xff]   ;;  %v5197_v35 = vld [vmem:[#allocation7 + $0xc0] ss:$8 sps:$4 sm:$0xff]   ;;  %v5201_v39 = vld [vmem:[#allocation7 + $0xe4] ss:$8 sps:$4 sm:$0xff]   ;;  %s4904_s4 = sshll.u32 %s6049_s27, 11 }
 0x10d   : > { %4908 = vmatpush3.bf16.msra.mxu1 %v5234_v25  ;;  %v5240_v36 = vld [vmem:[#allocation8 + $0x20] sm:$0xff]   ;;  %v5200_v38 = vld [vmem:[#allocation7 + $0xd0] ss:$8 sps:$4 sm:$0xff]   ;;  %v5204_v41 = vld [vmem:[#allocation7 + $0xf4] ss:$8 sps:$4 sm:$0xff]   ;;  %s4437_s11 = sshll.u32 %s6843_s17, 4  ;;  %s6957_s11 = int_to_ptr.vmem [resolvable:$true] %s4437_s11 }
 0x10e   : > { %845 = vmatpush1.bf16.msra.mxu0 %v5170_v7  ;;  %4909 = vmatprep.subr.bf16.mxu1 %v5235_v26  ;;  %v5203_v40 = vld [vmem:[#allocation7 + $0xe0] ss:$8 sps:$4 sm:$0xff]   ;;  %v5206_v42 = vld [vmem:[#allocation7 + $0xf0] ss:$8 sps:$4 sm:$0xff]   ;;  %v5210_v44 = vld [vmem:[%s6323_s18 + $0x14] ss:$8 sps:$4 sm:$0xff]   ;;  %v6369_v7 = vsub.s32 %v979_v4, %v981_v5 }
 0x10f   : > { %846 = vmatprep.subr.bf16.mxu0 %v5171_v8  ;;  %v5207_v43 = vld [vmem:[%s6323_s18] ss:$8 sps:$4 sm:$0xff]   ;;  %v5212_v45 = vld [vmem:[%s6323_s18 + $0x10] ss:$8 sps:$4 sm:$0xff]   ;;  %v5213_v46 = vld [vmem:[%s6323_s18 + $0x24] ss:$8 sps:$4 sm:$0xff]  }
 0x110   : > { %v5215_v47 = vld [vmem:[%s6323_s18 + $0x20] ss:$8 sps:$4 sm:$0xff]   ;;  %v5216_v48 = vld [vmem:[%s6323_s18 + $0x34] ss:$8 sps:$4 sm:$0xff]   ;;  %v5218_v49 = vld [vmem:[%s6323_s18 + $0x30] ss:$8 sps:$4 sm:$0xff]  }
 0x111   : > { %4910 = vmatpush3.bf16.msra.mxu1 %v5236_v29  ;;  %v5219_v50 = vld [vmem:[%s6323_s18 + $0x44] ss:$8 sps:$4 sm:$0xff]   ;;  %v5221_v51 = vld [vmem:[%s6323_s18 + $0x40] ss:$8 sps:$4 sm:$0xff]   ;;  %v5222_v52 = vld [vmem:[%s6323_s18 + $0x54] ss:$8 sps:$4 sm:$0xff]  }
 0x112   : > { %847 = vmatpush1.bf16.msra.mxu0 %v5173_v9  ;;  %4911 = vmatprep.subr.bf16.mxu1 %v5237_v30  ;;  %v5224_v53 = vld [vmem:[%s6323_s18 + $0x50] ss:$8 sps:$4 sm:$0xff]   ;;  %v5225_v54 = vld [vmem:[%s6323_s18 + $0x64] ss:$8 sps:$4 sm:$0xff]   ;;  %v5227_v55 = vld [vmem:[%s6323_s18 + $0x60] ss:$8 sps:$4 sm:$0xff]  }
 0x113   : > { %848 = vmatprep.subr.bf16.mxu0 %v5174_v10  ;;  %v5228_v56 = vld [vmem:[%s6323_s18 + $0x74] ss:$8 sps:$4 sm:$0xff]   ;;  %v5230_v57 = vld [vmem:[%s6323_s18 + $0x70] ss:$8 sps:$4 sm:$0xff]   ;;  %v5241_v58 = vld [vmem:[#allocation8 + $0x68] sm:$0xff]   ;;  %s4424_s27 = scalar_lea.sflag [#allocation4], %s6317_s23 }
 0x114   : > { %v5242_v59 = vld [vmem:[#allocation8 + $0x28] sm:$0xff]   ;;  %v5243_v60 = vld [vmem:[#allocation8 + $0x70] sm:$0xff]   ;;  %v5245_v62 = vld [vmem:[#allocation8 + $0x78] sm:$0xff]   ;;  %s5863_s12 = scalar_lea.vmem %s6957_s11, 2048  ;;  %p7078_p13 = scmp.ne.s32.totalorder %s7059_s29, 0 }
 0x115   : > { %4912 = vmatpush3.bf16.msra.mxu1 %v5238_v32  ;;  %v5244_v61 = vld [vmem:[#allocation8 + $0x30] sm:$0xff]   ;;  %v5246_v63 = vld [vmem:[#allocation8 + $0x38] sm:$0xff]   ;;  %v5249_v0 = vld [vmem:[#allocation10 + $0x4] ss:$8 sps:$4 sm:$0xff]   ;;  %p5864_p2 = scmp.ne.s32.totalorder %s6957_s11, %s5863_s12  ;;  %s5960_s8 = smov [#allocation14]  }
 0x116   : > { %849 = vmatpush1.bf16.msra.mxu0 %v5176_v11  ;;  %4913 = vmatprep.subr.bf16.mxu1 %v5239_v34  ;;  %v4652_v6 = vld.sshfl [vmem:[%s7011_s3] sm:$0x11 pattern:$0x75316420]  ;;  %s5867_s2 = sshll.u32 %s5960_s8, 4  ;;  %s5868_s2 = int_to_ptr.vmem [resolvable:$false] %s5867_s2 }
 0x117   : > { %850 = vmatprep.subr.bf16.mxu0 %v5177_v12  ;;  %v976_v8 = vcombine.high %v4652_v6, %v4652_v6  ;;  %v983_v9 = vrot.slane %v4652_v6, %v6369_v7  ;;  %v6373_v12 = vsub.s32 0, %v981_v5  ;;  %v5262_v6 = vld [vmem:[#allocation10 + $0x50] ss:$8 sps:$4 sm:$0xff]   ;;  %p5865_p6 = pnand %p5864_p2, %p7078_p13  ;;  %s5869_s13 = scalar_lea.vmem %s5868_s2, 4096 }
 0x118   : > { %p5870_p0 = scmp.lt.s32.totalorder %s6957_s11, %s5868_s2  ;;  %p5871_p5 = scmp.lt.s32.totalorder %s5869_s13, %s5863_s12 }
 0x119   : > { %4914 = vmatpush3.bf16.msra.mxu1 %v5240_v36  ;;  %v990_v10 = vrot.slane %v976_v8, %v6369_v7  ;;  %v992_v11 = vpack.i.b16 %v983_v9, %v983_v9  ;;  %v5267_v9 = vld [vmem:[#allocation10 + $0x64] ss:$8 sps:$4 sm:$0xff]   ;;  %p5866_p9 = pneg %p5865_p6 }
 0x11a   : > { %851 = vmatpush1.bf16.msra.mxu0 %v5179_v14  ;;  %4915 = vmatprep.subr.bf16.mxu1 %v5241_v58  ;;  %p5872_p7 = por %p5871_p5, %p5870_p0 }
 0x11b   : > { %852 = vmatprep.subr.bf16.mxu0 %v5180_v15  ;;  %v999_v13 = vpack.i.b16 %v990_v10, %v990_v10 }
 0x11c   : > { %p5873_p8 = pnand %p5872_p7, %p5866_p9 }
 0x11d   : > { %4916 = vmatpush3.bf16.msra.mxu1 %v5242_v59 }
 0x11e   : > { %853 = vmatpush1.bf16.msra.mxu0 %v5182_v16  ;;  %4917 = vmatprep.subr.bf16.mxu1 %v5243_v60  ;;  %v6376_v16 = vrot.slane %v992_v11, %v6373_v12  ;;  %v5259_v60 = vld [vmem:[#allocation10 + $0x40] ss:$8 sps:$4 sm:$0xff]  }
 0x11f   : > { %854 = vmatprep.subr.bf16.mxu0 %v5183_v17 }
 0x121   : > { %4918 = vmatpush3.bf16.msra.mxu1 %v5244_v61 }
 0x122   : > { %855 = vmatpush1.bf16.msra.mxu0 %v5185_v18  ;;  %4919 = vmatprep.subr.bf16.mxu1 %v5245_v62  ;;  %v6379_v18 = vrot.slane %v999_v13, %v6373_v12 }
 0x123   : > { %856 = vmatprep.subr.bf16.mxu0 %v5186_v19 }
 0x125   : > { %4920 = vmatpush3.bf16.msra.mxu1 %v5246_v63  ;;  %v5264_v63 = vld [vmem:[#allocation10 + $0x54] ss:$8 sps:$4 sm:$0xff]  }
 0x126   : > { %857 = vmatpush1.bf16.msra.mxu0 %v5188_v21  ;;  %1510 = vmatprep.subr.bf16.mxu1 %v5249_v0 }
 0x127   : > { %858 = vmatprep.subr.bf16.mxu0 %v5189_v23 }
 0x12a   : > { %859 = vmatpush1.bf16.msra.mxu0 %v5191_v27 }
 0x12b   : > { %860 = vmatprep.subr.bf16.mxu0 %v5192_v28  ;;  %v5247_v28 = vld [vmem:[#allocation10] ss:$8 sps:$4 sm:$0xff]  }
 0x12e   : > { %861 = vmatpush1.bf16.msra.mxu0 %v5194_v31  ;;  %v5252_v31 = vld [vmem:[#allocation10 + $0x14] ss:$8 sps:$4 sm:$0xff]  }
 0x12f   : > { %862 = vmatprep.subr.bf16.mxu0 %v5195_v33 }
 0x132   : > { %863 = vmatpush1.bf16.msra.mxu0 %v5197_v35 }
 0x133   : > { %864 = vmatprep.subr.bf16.mxu0 %v5198_v37  ;;  %v5250_v37 = vld [vmem:[#allocation10 + $0x10] ss:$8 sps:$4 sm:$0xff]  }
 0x136   : > { %865 = vmatpush1.bf16.msra.mxu0 %v5200_v38 }
 0x137   : > { %866 = vmatprep.subr.bf16.mxu0 %v5201_v39  ;;  %v5255_v39 = vld [vmem:[#allocation10 + $0x24] ss:$8 sps:$4 sm:$0xff]  }
 0x13a   : > { %867 = vmatpush1.bf16.msra.mxu0 %v5203_v40 }
 0x13b   : > { %868 = vmatprep.subr.bf16.mxu0 %v5204_v41 }
 0x13e   : > { %869 = vmatpush1.bf16.msra.mxu0 %v5206_v42 }
 0x141   : > { %871 = vmatmul.mubr.bf16.vlgmr.msra.gmra.mrb[0].mxu0 %v5207_v43 }
 0x142   : > { %880 = vmatprep.mubr.bf16.mxu0 %v5210_v44  ;;  %v5253_v44 = vld [vmem:[#allocation10 + $0x20] ss:$8 sps:$4 sm:$0xff]  }
 0x149   : > { %881 = vmatmul.mubr.bf16.gmra.mrb[4].mxu0 %v5212_v45 }
 0x14a   : > { %890 = vmatprep.mubr.bf16.mxu0 %v5213_v46 }
 0x151   : > { %891 = vmatmul.mubr.bf16.gmra.mrb[8].mxu0 %v5215_v47  ;;  %v5258_v47 = vld [vmem:[#allocation10 + $0x34] ss:$8 sps:$4 sm:$0xff]  }
 0x152   : > { %900 = vmatprep.mubr.bf16.mxu0 %v5216_v48 }
 0x159   : > { %901 = vmatmul.mubr.bf16.gmra.mrb[12].mxu0 %v5218_v49 }
 0x15a   : > { %910 = vmatprep.mubr.bf16.mxu0 %v5219_v50 }
 0x161   : > { %911 = vmatmul.mubr.bf16.gmra.mrb[16].mxu0 %v5221_v51 }
 0x162   : > { %920 = vmatprep.mubr.bf16.mxu0 %v5222_v52 }
 0x169   : > { %921 = vmatmul.mubr.bf16.gmra.mrb[20].mxu0 %v5224_v53  ;;  %v5256_v53 = vld [vmem:[#allocation10 + $0x30] ss:$8 sps:$4 sm:$0xff]  }
 0x16a   : > { %930 = vmatprep.mubr.bf16.mxu0 %v5225_v54 }
 0x171   : > { %931 = vmatmul.mubr.bf16.gmra.mrb[24].mxu0 %v5227_v55  ;;  %v5261_v55 = vld [vmem:[#allocation10 + $0x44] ss:$8 sps:$4 sm:$0xff]  }
 0x172   : > { %940 = vmatprep.mubr.bf16.mxu0 %v5228_v56 }
 0x179   : > { %941 = vmatmul.mubr.bf16.gmra.mrb[28].mxu0 %v5230_v57 }
 0x214   : > { %v872_v14 = vpop.f32.mrb[0].mxu0 }
 0x215   : > { %v874_v15 = vpop.f32.mrb[1].mxu0 }
 0x216   : > { %v876_v17 = vpop.f32.mrb[2].mxu0 }
 0x217   : > { %v951_v19 = vpack.c.bf16 %v876_v17, %v872_v14  ;;  %v878_v20 = vpop.f32.mrb[3].mxu0 }
 0x218   : > { %v952_v21 = vpack.c.bf16 %v878_v20, %v874_v15  ;;  %v5265_v15 = vld [vmem:[#allocation10 + $0x60] ss:$8 sps:$4 sm:$0xff]  }
 0x219   : > { %v1005_v22 = vadd.bf16 %v6376_v16, %v951_v19 }
 0x21a   : > { %v1006_v23 = vadd.bf16 %v6379_v18, %v952_v21 }
 0x21b   : > { %v1037_v24 = vmul.bf16 1009007652, %v1005_v22  ;;  %vm1021_vm1 = vcmp.gt.bf16.partialorder %v1005_v22, 0 }
 0x21c   : > { %v882_v25 = vpop.f32.mrb[4].mxu0  ;;  %vm1022_vm0 = vcmp.gt.bf16.partialorder %v1006_v23, 0  ;;  %v1038_v26 = vmul.bf16 1009007652, %v1006_v23 }
 0x21d   : > { %v884_v27 = vpop.f32.mrb[5].mxu0  ;;  %v1053_v34 = vsel %vm1021_vm1, %v1005_v22, %v1037_v24 }
 0x21e   : > { %v886_v29 = vpop.f32.mrb[6].mxu0  ;;  %v1054_v30 = vsel %vm1022_vm0, %v1006_v23, %v1038_v26 }
 0x21f   : > { %v953_v32 = vpack.c.bf16 %v886_v29, %v882_v25  ;;  %v888_v33 = vpop.f32.mrb[7].mxu0  ;;  %1229 = vmatprep.mubr.bf16.mxu1 %v1054_v30 }
 0x220   : > { %v954_v35 = vpack.c.bf16 %v888_v33, %v884_v27  ;;  %1230 = vmatmul.mubr.bf16.vlgmr.msra.gmra.mrb[0].mxu1 %v1053_v34 }
 0x221   : > { %v1007_v36 = vadd.bf16 %v6376_v16, %v953_v32  ;;  %1511 = vmatpush1.bf16.msra.mxu1 %v5247_v28 }
 0x222   : > { %v1008_v38 = vadd.bf16 %v6379_v18, %v954_v35  ;;  %1512 = vmatprep.subr.bf16.mxu1 %v5252_v31 }
 0x223   : > { %v1039_v40 = vmul.bf16 1009007652, %v1007_v36  ;;  %vm1023_vm3 = vcmp.gt.bf16.partialorder %v1007_v36, 0 }
 0x224   : > { %v892_v41 = vpop.f32.mrb[8].mxu0  ;;  %vm1024_vm2 = vcmp.gt.bf16.partialorder %v1008_v38, 0  ;;  %v1040_v42 = vmul.bf16 1009007652, %v1008_v38 }
 0x225   : > { %v894_v43 = vpop.f32.mrb[9].mxu0  ;;  %1513 = vmatpush1.bf16.msra.mxu1 %v5250_v37  ;;  %v1055_v50 = vsel %vm1023_vm3, %v1007_v36, %v1039_v40 }
 0x226   : > { %v896_v45 = vpop.f32.mrb[10].mxu0  ;;  %v1056_v46 = vsel %vm1024_vm2, %v1008_v38, %v1040_v42  ;;  %1514 = vmatprep.subr.bf16.mxu1 %v5255_v39 }
 0x227   : > { %v955_v48 = vpack.c.bf16 %v896_v45, %v892_v41  ;;  %v898_v49 = vpop.f32.mrb[11].mxu0  ;;  %1237 = vmatprep.mubr.bf16.mxu1 %v1056_v46 }
 0x228   : > { %v956_v51 = vpack.c.bf16 %v898_v49, %v894_v43  ;;  %1238 = vmatmul.mubr.bf16.gmra.mrb[4].mxu1 %v1055_v50 }
 0x229   : > { %v1009_v52 = vadd.bf16 %v6376_v16, %v955_v48  ;;  %1515 = vmatpush1.bf16.msra.mxu1 %v5253_v44 }
 0x22a   : > { %v1010_v54 = vadd.bf16 %v6379_v18, %v956_v51  ;;  %1516 = vmatprep.subr.bf16.mxu1 %v5258_v47 }
 0x22b   : > { %v1041_v56 = vmul.bf16 1009007652, %v1009_v52  ;;  %vm1025_vm5 = vcmp.gt.bf16.partialorder %v1009_v52, 0 }
 0x22c   : > { %v902_v57 = vpop.f32.mrb[12].mxu0  ;;  %vm1026_vm4 = vcmp.gt.bf16.partialorder %v1010_v54, 0  ;;  %v1042_v58 = vmul.bf16 1009007652, %v1010_v54 }
 0x22d   : > { %v904_v59 = vpop.f32.mrb[13].mxu0  ;;  %1517 = vmatpush1.bf16.msra.mxu1 %v5256_v53  ;;  %v1057_v2 = vsel %vm1025_vm5, %v1009_v52, %v1041_v56 }
 0x22e   : > { %v906_v61 = vpop.f32.mrb[14].mxu0  ;;  %v1058_v62 = vsel %vm1026_vm4, %v1010_v54, %v1042_v58  ;;  %1518 = vmatprep.subr.bf16.mxu1 %v5261_v55 }
 0x22f   : > { %v957_v0 = vpack.c.bf16 %v906_v61, %v902_v57  ;;  %v908_v1 = vpop.f32.mrb[15].mxu0  ;;  %1245 = vmatprep.mubr.bf16.mxu1 %v1058_v62 }
 0x230   : > { %v958_v4 = vpack.c.bf16 %v908_v1, %v904_v59  ;;  %1246 = vmatmul.mubr.bf16.gmra.mrb[8].mxu1 %v1057_v2  ;;  %v5271_v2 = vld [vmem:[#allocation10 + $0x74] ss:$8 sps:$4 sm:$0xff]  }
 0x231   : > { %v1011_v5 = vadd.bf16 %v6376_v16, %v957_v0  ;;  %1519 = vmatpush1.bf16.msra.mxu1 %v5259_v60 }
 0x232   : > { %v1012_v8 = vadd.bf16 %v6379_v18, %v958_v4  ;;  %1520 = vmatprep.subr.bf16.mxu1 %v5264_v63  ;;  %v5269_v4 = vld [vmem:[#allocation10 + $0x70] ss:$8 sps:$4 sm:$0xff]  }
 0x233   : > { %v1043_v10 = vmul.bf16 1009007652, %v1011_v5  ;;  %vm1027_vm7 = vcmp.gt.bf16.partialorder %v1011_v5, 0 }
 0x234   : > { %v912_v11 = vpop.f32.mrb[16].mxu0  ;;  %vm1028_vm6 = vcmp.gt.bf16.partialorder %v1012_v8, 0  ;;  %v1044_v13 = vmul.bf16 1009007652, %v1012_v8 }
 0x235   : > { %v914_v14 = vpop.f32.mrb[17].mxu0  ;;  %1521 = vmatpush1.bf16.msra.mxu1 %v5262_v6  ;;  %v1059_v22 = vsel %vm1027_vm7, %v1011_v5, %v1043_v10  ;;  %v5959_v5 = vmov 0   ;;  %v5279_v6 = vld [vmem:[#allocation11] ss:$8 sps:$4 sm:$0xff]  }
 0x236   : > { %v916_v17 = vpop.f32.mrb[18].mxu0  ;;  %v1060_v19 = vsel %vm1028_vm6, %v1012_v8, %v1044_v13  ;;  %1522 = vmatprep.subr.bf16.mxu1 %v5267_v9  ;;  %v5281_v8 = vld [vmem:[#allocation11 + $0x4] ss:$8 sps:$4 sm:$0xff]   ;;  %v5285_v10 = vld [vmem:[#allocation11 + $0x20] ss:$8 sps:$4 sm:$0xff]  }
 0x237   : > { %v959_v20 = vpack.c.bf16 %v916_v17, %v912_v11  ;;  %v918_v21 = vpop.f32.mrb[19].mxu0  ;;  %1253 = vmatprep.mubr.bf16.mxu1 %v1060_v19  ;;  %1934 = vmatprep.subr.bf16.mxu0 %v5281_v8  ;;  %v5287_v9 = vld [vmem:[#allocation11 + $0x24] ss:$8 sps:$4 sm:$0xff]   ;;  %v5290_v11 = vld [vmem:[#allocation11 + $0x34] ss:$8 sps:$4 sm:$0xff]  }
 0x238   : > { %v960_v23 = vpack.c.bf16 %v918_v21, %v914_v14  ;;  %1254 = vmatmul.mubr.bf16.gmra.mrb[12].mxu1 %v1059_v22  ;;  %1935 = vmatpush1.bf16.msra.mxu0 %v5279_v6  ;;  %v5288_v13 = vld [vmem:[#allocation11 + $0x30] ss:$8 sps:$4 sm:$0xff]   ;;  %v5293_v14 = vld [vmem:[#allocation11 + $0x44] ss:$8 sps:$4 sm:$0xff]   ;;  %v5296_v17 = vld [vmem:[#allocation11 + $0x54] ss:$8 sps:$4 sm:$0xff]  }
 0x239   : > { %v1013_v24 = vadd.bf16 %v6376_v16, %v959_v20  ;;  %1523 = vmatpush1.bf16.msra.mxu1 %v5265_v15  ;;  %v5291_v15 = vld [vmem:[#allocation11 + $0x40] ss:$8 sps:$4 sm:$0xff]   ;;  %v5294_v19 = vld [vmem:[#allocation11 + $0x50] ss:$8 sps:$4 sm:$0xff]   ;;  %v5299_v20 = vld [vmem:[#allocation11 + $0x64] ss:$8 sps:$4 sm:$0xff]  }
 0x23a   : > { %v1014_v25 = vadd.bf16 %v6379_v18, %v960_v23  ;;  %1524 = vmatprep.subr.bf16.mxu1 %v5271_v2  ;;  %v5297_v21 = vld [vmem:[#allocation11 + $0x60] ss:$8 sps:$4 sm:$0xff]   ;;  %v5302_v22 = vld [vmem:[#allocation11 + $0x74] ss:$8 sps:$4 sm:$0xff]   ;;  %v5300_v23 = vld [vmem:[#allocation11 + $0x70] ss:$8 sps:$4 sm:$0xff]  }
 0x23b   : > { %v1045_v26 = vmul.bf16 1009007652, %v1013_v24  ;;  %vm1029_vm9 = vcmp.gt.bf16.partialorder %v1013_v24, 0 }
 0x23c   : > { %v922_v27 = vpop.f32.mrb[20].mxu0  ;;  %vm1030_vm8 = vcmp.gt.bf16.partialorder %v1014_v25, 0  ;;  %v1046_v28 = vmul.bf16 1009007652, %v1014_v25 }
 0x23d   : > { %v924_v29 = vpop.f32.mrb[21].mxu0  ;;  %v1061_v34 = vsel %vm1029_vm9, %v1013_v24, %v1045_v26  ;;  %1525 = vmatpush1.bf16.msra.mxu1 %v5269_v4  ;;  %v5305_v24 = vld [vmem:[#allocation11 + $0x84] ss:$8 sps:$4 sm:$0xff]   ;;  %v5308_v26 = vld [vmem:[#allocation11 + $0x94] ss:$8 sps:$4 sm:$0xff]  }
 0x23e   : > { %v926_v30 = vpop.f32.mrb[22].mxu0  ;;  %v1062_v31 = vsel %vm1030_vm8, %v1014_v25, %v1046_v28  ;;  %v5303_v25 = vld [vmem:[#allocation11 + $0x80] ss:$8 sps:$4 sm:$0xff]   ;;  %v5311_v28 = vld [vmem:[#allocation11 + $0xa4] ss:$8 sps:$4 sm:$0xff]  }
 0x23f   : > { %v961_v32 = vpack.c.bf16 %v926_v30, %v922_v27  ;;  %v928_v33 = vpop.f32.mrb[23].mxu0  ;;  %1261 = vmatprep.mubr.bf16.mxu1 %v1062_v31  ;;  %v5306_v27 = vld [vmem:[#allocation11 + $0x90] ss:$8 sps:$4 sm:$0xff]   ;;  %v5314_v30 = vld [vmem:[#allocation11 + $0xb4] ss:$8 sps:$4 sm:$0xff]  }
 0x240   : > { %v962_v35 = vpack.c.bf16 %v928_v33, %v924_v29  ;;  %1262 = vmatmul.mubr.bf16.gmra.mrb[16].mxu1 %v1061_v34  ;;  %v5309_v29 = vld [vmem:[#allocation11 + $0xa0] ss:$8 sps:$4 sm:$0xff]   ;;  %v5312_v31 = vld [vmem:[#allocation11 + $0xb0] ss:$8 sps:$4 sm:$0xff]   ;;  %v5320_v34 = vld [vmem:[#allocation11 + $0xd4] ss:$8 sps:$4 sm:$0xff]  }
 0x241   : > { %v1015_v36 = vadd.bf16 %v6376_v16, %v961_v32  ;;  %v5317_v32 = vld [vmem:[#allocation11 + $0xc4] ss:$8 sps:$4 sm:$0xff]   ;;  %v5315_v33 = vld [vmem:[#allocation11 + $0xc0] ss:$8 sps:$4 sm:$0xff]  }
 0x242   : > { %v1016_v37 = vadd.bf16 %v6379_v18, %v962_v35  ;;  %v5318_v35 = vld [vmem:[#allocation11 + $0xd0] ss:$8 sps:$4 sm:$0xff]  }
 0x243   : > { %v1047_v38 = vmul.bf16 1009007652, %v1015_v36  ;;  %vm1031_vm11 = vcmp.gt.bf16.partialorder %v1015_v36, 0 }
 0x244   : > { %v932_v39 = vpop.f32.mrb[24].mxu0  ;;  %vm1032_vm10 = vcmp.gt.bf16.partialorder %v1016_v37, 0  ;;  %v1048_v40 = vmul.bf16 1009007652, %v1016_v37 }
 0x245   : > { %v934_v41 = vpop.f32.mrb[25].mxu0  ;;  %v1063_v46 = vsel %vm1031_vm11, %v1015_v36, %v1047_v38  ;;  %v1302_v36 = vld [vmem:[%s7013_s5] sm:$0x1] }
 0x246   : > { %v936_v42 = vpop.f32.mrb[26].mxu0  ;;  %v1064_v43 = vsel %vm1032_vm10, %v1016_v37, %v1048_v40  ;;  %v1304_v38 = vpack.i.b16 %v1302_v36, %v1302_v36 }
 0x247   : > { %v963_v44 = vpack.c.bf16 %v936_v42, %v932_v39  ;;  %v938_v45 = vpop.f32.mrb[27].mxu0  ;;  %1269 = vmatprep.mubr.bf16.mxu1 %v1064_v43 }
 0x248   : > { %v964_v47 = vpack.c.bf16 %v938_v45, %v934_v41  ;;  %1270 = vmatmul.mubr.bf16.gmra.mrb[20].mxu1 %v1063_v46 }
 0x249   : > { %v1017_v48 = vadd.bf16 %v6376_v16, %v963_v44  ;;  %v6402_v44 = vrot.slane %v1304_v38, %v6373_v12 }
 0x24a   : > { %v1018_v49 = vadd.bf16 %v6379_v18, %v964_v47 }
 0x24b   : > { %v1049_v50 = vmul.bf16 1009007652, %v1017_v48  ;;  %vm1033_vm13 = vcmp.gt.bf16.partialorder %v1017_v48, 0 }
 0x24c   : > { %v942_v51 = vpop.f32.mrb[28].mxu0  ;;  %vm1034_vm12 = vcmp.gt.bf16.partialorder %v1018_v49, 0  ;;  %v1050_v52 = vmul.bf16 1009007652, %v1018_v49 }
 0x24d   : > { %v944_v53 = vpop.f32.mrb[29].mxu0  ;;  %v1065_v58 = vsel %vm1033_vm13, %v1017_v48, %v1049_v50  ;;  %v5268_v48 = vld [vmem:[%s6331_s15] sm:$0xff]  }
 0x24e   : > { %v946_v54 = vpop.f32.mrb[30].mxu0  ;;  %v1066_v55 = vsel %vm1034_vm12, %v1018_v49, %v1050_v52 }
 0x24f   : > { %v965_v56 = vpack.c.bf16 %v946_v54, %v942_v51  ;;  %v948_v57 = vpop.f32.mrb[31].mxu0  ;;  %1277 = vmatprep.mubr.bf16.mxu1 %v1066_v55 }
 0x250   : > { %v966_v59 = vpack.c.bf16 %v948_v57, %v944_v53  ;;  %1278 = vmatmul.mubr.bf16.gmra.mrb[24].mxu1 %v1065_v58 }
 0x251   : > { %v1019_v60 = vadd.bf16 %v6376_v16, %v965_v56  ;;  %v5284_v16 = vld [vmem:[#allocation11 + $0x14] ss:$8 sps:$4 sm:$0xff]  }
 0x252   : > { %v1020_v61 = vadd.bf16 %v6379_v18, %v966_v59  ;;  %v5282_v18 = vld [vmem:[#allocation11 + $0x10] ss:$8 sps:$4 sm:$0xff]   ;;  %1936 = vmatprep.subr.bf16.mxu0 %v5284_v16 }
 0x253   : > { %v1051_v62 = vmul.bf16 1009007652, %v1019_v60  ;;  %vm1035_vm15 = vcmp.gt.bf16.partialorder %v1019_v60, 0  ;;  %1937 = vmatpush1.bf16.msra.mxu0 %v5282_v18 }
 0x254   : > { %vm1036_vm14 = vcmp.gt.bf16.partialorder %v1020_v61, 0  ;;  %v1052_v63 = vmul.bf16 1009007652, %v1020_v61  ;;  %1938 = vmatprep.subr.bf16.mxu0 %v5287_v9 }
 0x255   : > { %v1067_v1 = vsel %vm1035_vm15, %v1019_v60, %v1051_v62 }
 0x256   : > { %v1068_v0 = vsel %vm1036_vm14, %v1020_v61, %v1052_v63  ;;  %v5272_v61 = vld [vmem:[%s6331_s15 + $0x8] sm:$0xff]  }
 0x257   : > { %1285 = vmatprep.mubr.bf16.mxu1 %v1068_v0  ;;  %1939 = vmatpush1.bf16.msra.mxu0 %v5285_v10  ;;  %v5273_v10 = vld [vmem:[%s6331_s15 + $0x10] sm:$0xff]  }
 0x258   : > { %1286 = vmatmul.mubr.bf16.gmra.mrb[28].mxu1 %v1067_v1  ;;  %1940 = vmatprep.subr.bf16.mxu0 %v5290_v11 }
 0x259   : > { %1542 = vmatprep.mubr.bf16.mxu1 %v5959_v5 }
 0x25b   : > { %1941 = vmatpush1.bf16.msra.mxu0 %v5288_v13 }
 0x25c   : > { %1942 = vmatprep.subr.bf16.mxu0 %v5293_v14 }
 0x25f   : > { %1943 = vmatpush1.bf16.msra.mxu0 %v5291_v15 }
 0x260   : > { %1944 = vmatprep.subr.bf16.mxu0 %v5296_v17 }
 0x263   : > { %1945 = vmatpush1.bf16.msra.mxu0 %v5294_v19 }
 0x264   : > { %1946 = vmatprep.subr.bf16.mxu0 %v5299_v20 }
 0x267   : > { %1947 = vmatpush1.bf16.msra.mxu0 %v5297_v21 }
 0x268   : > { %1948 = vmatprep.subr.bf16.mxu0 %v5302_v22 }
 0x26b   : > { %1949 = vmatpush1.bf16.msra.mxu0 %v5300_v23 }
 0x26c   : > { %1950 = vmatprep.subr.bf16.mxu0 %v5305_v24 }
 0x26f   : > { %1951 = vmatpush1.bf16.msra.mxu0 %v5303_v25  ;;  %v5274_v25 = vld [vmem:[%s6331_s15 + $0x18] sm:$0xff]  }
 0x270   : > { %1952 = vmatprep.subr.bf16.mxu0 %v5308_v26 }
 0x273   : > { %1953 = vmatpush1.bf16.msra.mxu0 %v5306_v27 }
 0x274   : > { %1954 = vmatprep.subr.bf16.mxu0 %v5311_v28 }
 0x277   : > { %1955 = vmatpush1.bf16.msra.mxu0 %v5309_v29 }
 0x278   : > { %1956 = vmatprep.subr.bf16.mxu0 %v5314_v30 }
 0x27b   : > { %1957 = vmatpush1.bf16.msra.mxu0 %v5312_v31 }
 0x27c   : > { %1958 = vmatprep.subr.bf16.mxu0 %v5317_v32 }
 0x27f   : > { %1959 = vmatpush1.bf16.msra.mxu0 %v5315_v33 }
 0x280   : > { %1960 = vmatprep.subr.bf16.mxu0 %v5320_v34 }
 0x283   : > { %1961 = vmatpush1.bf16.msra.mxu0 %v5318_v35 }
 0x2f3   : > { %v4921_v37 = vpop.f32.mrb[0].mxu1 }
 0x2f4   : > { %v4922_v39 = vpop.f32.mrb[1].mxu1 }
 0x2f5   : > { %v4923_v40 = vadd.f32 %v4922_v39, %v4921_v37  ;;  %v4924_v41 = vpop.f32.mrb[2].mxu1  ;;  %v5275_v37 = vld [vmem:[%s6331_s15 + $0x20] sm:$0xff]  }
 0x2f6   : > { %v4925_v42 = vpop.f32.mrb[3].mxu1 }
 0x2f7   : > { %v4926_v43 = vadd.f32 %v4925_v42, %v4924_v41 }
 0x2f9   : > { %v1294_v45 = vpack.c.bf16 %v4926_v43, %v4923_v40 }
 0x2fb   : > { %v1310_v46 = vadd.bf16 %v6402_v44, %v1294_v45  ;;  %v4927_v47 = vpop.f32.mrb[4].mxu1 }
 0x2fc   : > { %v4928_v49 = vpop.f32.mrb[5].mxu1 }
 0x2fd   : > { %vm1318_vm0 = vcmp.gt.bf16.partialorder %v1310_v46, 0  ;;  %v1326_v50 = vmul.bf16 1009007652, %v1310_v46  ;;  %v4929_v51 = vadd.f32 %v4928_v49, %v4927_v47  ;;  %v4930_v52 = vpop.f32.mrb[6].mxu1 }
 0x2fe   : > { %v4931_v53 = vpop.f32.mrb[7].mxu1 }
 0x2ff   : > { %v1334_v54 = vsel %vm1318_vm0, %v1310_v46, %v1326_v50  ;;  %v4932_v55 = vadd.f32 %v4931_v53, %v4930_v52  ;;  %v5276_v50 = vld [vmem:[%s6331_s15 + $0x28] sm:$0xff]  }
 0x300   : > { %v1406_v56 = vadd.bf16 %v5268_v48, %v1334_v54 }
 0x301   : > { %v1295_v57 = vpack.c.bf16 %v4932_v55, %v4929_v51 }
 0x302   : > { %1543 = vmatmul.mubr.bf16.vlgmr.msra.gmra.mrb[32].mxu1 %v1406_v56 }
 0x303   : > { %v1311_v58 = vadd.bf16 %v6402_v44, %v1295_v57  ;;  %v4933_v59 = vpop.f32.mrb[8].mxu1  ;;  %1552 = vmatprep.mubr.bf16.mxu1 %v5959_v5 }
 0x304   : > { %v4934_v60 = vpop.f32.mrb[9].mxu1 }
 0x305   : > { %v1327_v62 = vmul.bf16 1009007652, %v1311_v58  ;;  %v4935_v63 = vadd.f32 %v4934_v60, %v4933_v59  ;;  %v4936_v0 = vpop.f32.mrb[10].mxu1  ;;  %vm1319_vm1 = vcmp.gt.bf16.partialorder %v1311_v58, 0 }
 0x306   : > { %v4937_v1 = vpop.f32.mrb[11].mxu1 }
 0x307   : > { %v4938_v2 = vadd.f32 %v4937_v1, %v4936_v0  ;;  %v1335_v4 = vsel %vm1319_vm1, %v1311_v58, %v1327_v62  ;;  %v5277_v62 = vld [vmem:[%s6331_s15 + $0x30] sm:$0xff]  }
 0x308   : > { %v1407_v6 = vadd.bf16 %v5272_v61, %v1335_v4 }
 0x309   : > { %v1296_v8 = vpack.c.bf16 %v4938_v2, %v4935_v63 }
 0x30a   : > { %1553 = vmatmul.mubr.bf16.gmra.mrb[36].mxu1 %v1407_v6 }
 0x30b   : > { %v1312_v16 = vadd.bf16 %v6402_v44, %v1296_v8  ;;  %v4939_v18 = vpop.f32.mrb[12].mxu1  ;;  %1562 = vmatprep.mubr.bf16.mxu1 %v5959_v5 }
 0x30c   : > { %v4940_v9 = vpop.f32.mrb[13].mxu1 }
 0x30d   : > { %v1328_v11 = vmul.bf16 1009007652, %v1312_v16  ;;  %v4941_v13 = vadd.f32 %v4940_v9, %v4939_v18  ;;  %v4942_v14 = vpop.f32.mrb[14].mxu1  ;;  %vm1320_vm2 = vcmp.gt.bf16.partialorder %v1312_v16, 0  ;;  %v5278_v9 = vld [vmem:[%s6331_s15 + $0x38] sm:$0xff]  }
 0x30e   : > { %v4943_v15 = vpop.f32.mrb[15].mxu1 }
 0x30f   : > { %v4944_v17 = vadd.f32 %v4943_v15, %v4942_v14  ;;  %v1336_v19 = vsel %vm1320_vm2, %v1312_v16, %v1328_v11  ;;  %v5323_v14 = vld [vmem:[#allocation11 + $0xe4] ss:$8 sps:$4 sm:$0xff]   ;;  %v5321_v15 = vld [vmem:[#allocation11 + $0xe0] ss:$8 sps:$4 sm:$0xff]  }
 0x310   : > { %v1408_v20 = vadd.bf16 %v5273_v10, %v1336_v19  ;;  %1962 = vmatprep.subr.bf16.mxu0 %v5323_v14  ;;  %v5324_v19 = vld [vmem:[#allocation11 + $0xf0] ss:$8 sps:$4 sm:$0xff]  }
 0x311   : > { %v1297_v21 = vpack.c.bf16 %v4944_v17, %v4941_v13  ;;  %1963 = vmatpush1.bf16.msra.mxu0 %v5321_v15  ;;  %v5326_v17 = vld [vmem:[#allocation11 + $0xf4] ss:$8 sps:$4 sm:$0xff]  }
 0x312   : > { %1563 = vmatmul.mubr.bf16.gmra.mrb[40].mxu1 %v1408_v20  ;;  %1964 = vmatprep.subr.bf16.mxu0 %v5326_v17  ;;  %v5327_v20 = vld [vmem:[#allocation11 + $0x100] ss:$8 sps:$4 sm:$0xff]  }
 0x313   : > { %v1313_v22 = vadd.bf16 %v6402_v44, %v1297_v21  ;;  %v4945_v23 = vpop.f32.mrb[16].mxu1  ;;  %1572 = vmatprep.mubr.bf16.mxu1 %v5959_v5  ;;  %v5329_v21 = vld [vmem:[#allocation11 + $0x104] ss:$8 sps:$4 sm:$0xff]  }
 0x314   : > { %v4946_v24 = vpop.f32.mrb[17].mxu1  ;;  %2359 = vmatprep.subr.bf16.mxu1 %v5329_v21 }
 0x315   : > { %v1329_v26 = vmul.bf16 1009007652, %v1313_v22  ;;  %v4947_v27 = vadd.f32 %v4946_v24, %v4945_v23  ;;  %v4948_v28 = vpop.f32.mrb[18].mxu1  ;;  %vm1321_vm3 = vcmp.gt.bf16.partialorder %v1313_v22, 0  ;;  %1965 = vmatpush1.bf16.msra.mxu0 %v5324_v19  ;;  %2360 = vmatpush1.bf16.msra.mxu1 %v5327_v20  ;;  %v5333_v23 = vld [vmem:[#allocation11 + $0x120] ss:$8 sps:$4 sm:$0xff]  }
 0x316   : > { %v4949_v29 = vpop.f32.mrb[19].mxu1  ;;  %v5338_v24 = vld [vmem:[#allocation11 + $0x134] ss:$8 sps:$4 sm:$0xff]  }
 0x317   : > { %v4950_v30 = vadd.f32 %v4949_v29, %v4948_v28  ;;  %v1337_v31 = vsel %vm1321_vm3, %v1313_v22, %v1329_v26  ;;  %v5332_v22 = vld [vmem:[#allocation11 + $0x114] ss:$8 sps:$4 sm:$0xff]   ;;  %v5341_v26 = vld [vmem:[#allocation11 + $0x144] ss:$8 sps:$4 sm:$0xff]   ;;  %v5342_v29 = vld [vmem:[#allocation11 + $0x150] ss:$8 sps:$4 sm:$0xff]  }
 0x318   : > { %v1409_v32 = vadd.bf16 %v5274_v25, %v1337_v31  ;;  %2361 = vmatprep.subr.bf16.mxu1 %v5332_v22  ;;  %v5336_v25 = vld [vmem:[#allocation11 + $0x130] ss:$8 sps:$4 sm:$0xff]   ;;  %v5344_v28 = vld [vmem:[#allocation11 + $0x154] ss:$8 sps:$4 sm:$0xff]   ;;  %v5345_v31 = vld [vmem:[#allocation11 + $0x160] ss:$8 sps:$4 sm:$0xff]  }
 0x319   : > { %v1298_v33 = vpack.c.bf16 %v4950_v30, %v4947_v27  ;;  %v5339_v27 = vld [vmem:[#allocation11 + $0x140] ss:$8 sps:$4 sm:$0xff]   ;;  %v5347_v30 = vld [vmem:[#allocation11 + $0x164] ss:$8 sps:$4 sm:$0xff]  }
 0x31a   : > { %1573 = vmatmul.mubr.bf16.gmra.mrb[44].mxu1 %v1409_v32  ;;  %v5350_v32 = vld [vmem:[#allocation11 + $0x174] ss:$8 sps:$4 sm:$0xff]  }
 0x31b   : > { %v1314_v34 = vadd.bf16 %v6402_v44, %v1298_v33  ;;  %v4951_v35 = vpop.f32.mrb[20].mxu1  ;;  %1582 = vmatprep.mubr.bf16.mxu1 %v5959_v5  ;;  %v5348_v33 = vld [vmem:[#allocation11 + $0x170] ss:$8 sps:$4 sm:$0xff]  }
 0x31c   : > { %v4952_v36 = vpop.f32.mrb[21].mxu1 }
 0x31d   : > { %v1330_v38 = vmul.bf16 1009007652, %v1314_v34  ;;  %v4953_v39 = vadd.f32 %v4952_v36, %v4951_v35  ;;  %v4954_v40 = vpop.f32.mrb[22].mxu1  ;;  %vm1322_vm4 = vcmp.gt.bf16.partialorder %v1314_v34, 0  ;;  %v5351_v35 = vld [vmem:[#allocation11 + $0x180] ss:$8 sps:$4 sm:$0xff]  }
 0x31e   : > { %v4955_v41 = vpop.f32.mrb[23].mxu1  ;;  %v5356_v36 = vld [vmem:[#allocation11 + $0x194] ss:$8 sps:$4 sm:$0xff]  }
 0x31f   : > { %v4956_v42 = vadd.f32 %v4955_v41, %v4954_v40  ;;  %v1338_v43 = vsel %vm1322_vm4, %v1314_v34, %v1330_v38  ;;  %v5353_v34 = vld [vmem:[#allocation11 + $0x184] ss:$8 sps:$4 sm:$0xff]   ;;  %v5362_v40 = vld [vmem:[#allocation11 + $0x1b4] ss:$8 sps:$4 sm:$0xff]   ;;  %v5360_v41 = vld [vmem:[#allocation11 + $0x1b0] ss:$8 sps:$4 sm:$0xff]  }
 0x320   : > { %v1410_v45 = vadd.bf16 %v5275_v37, %v1338_v43  ;;  %v5354_v37 = vld [vmem:[#allocation11 + $0x190] ss:$8 sps:$4 sm:$0xff]   ;;  %v5359_v38 = vld [vmem:[#allocation11 + $0x1a4] ss:$8 sps:$4 sm:$0xff]  }
 0x321   : > { %v1299_v46 = vpack.c.bf16 %v4956_v42, %v4953_v39  ;;  %v5357_v39 = vld [vmem:[#allocation11 + $0x1a0] ss:$8 sps:$4 sm:$0xff]   ;;  %v5365_v42 = vld [vmem:[#allocation11 + $0x1c4] ss:$8 sps:$4 sm:$0xff]  }
 0x322   : > { %1583 = vmatmul.mubr.bf16.gmra.mrb[48].mxu1 %v1410_v45  ;;  %v4693_v43 = vld.sshfl [vmem:[%s7072_s16] sm:$0x11 pattern:$0x75316420]  ;;  %s7077_s16 = sld [smem:[#allocation32_spill]] }
 0x323   : > { %v1315_v47 = vadd.bf16 %v6402_v44, %v1299_v46  ;;  %v4957_v48 = vpop.f32.mrb[24].mxu1  ;;  %1592 = vmatprep.mubr.bf16.mxu1 %v5959_v5  ;;  %v5363_v45 = vld [vmem:[#allocation11 + $0x1c0] ss:$8 sps:$4 sm:$0xff]   ;;  %v5368_v46 = vld [vmem:[#allocation11 + $0x1d4] ss:$8 sps:$4 sm:$0xff]  }
 0x324   : > { %v4958_v49 = vpop.f32.mrb[25].mxu1 }
 0x325   : > { %v1331_v51 = vmul.bf16 1009007652, %v1315_v47  ;;  %v4959_v52 = vadd.f32 %v4958_v49, %v4957_v48  ;;  %v4960_v53 = vpop.f32.mrb[26].mxu1  ;;  %vm1323_vm5 = vcmp.gt.bf16.partialorder %v1315_v47, 0  ;;  %v5366_v48 = vld [vmem:[#allocation11 + $0x1d0] ss:$8 sps:$4 sm:$0xff]   ;;  %v1655_v49 = vrot.slane %v4693_v43, %v6369_v7 }
 0x326   : > { %v4961_v54 = vpop.f32.mrb[27].mxu1 }
 0x327   : > { %v4962_v55 = vadd.f32 %v4961_v54, %v4960_v53  ;;  %v1339_v56 = vsel %vm1323_vm5, %v1315_v47, %v1331_v51  ;;  %v1648_v47 = vcombine.high %v4693_v43, %v4693_v43  ;;  %v1664_v51 = vpack.i.b16 %v1655_v49, %v1655_v49 }
 0x328   : > { %v1411_v57 = vadd.bf16 %v5276_v50, %v1339_v56  ;;  %s6955_s7 = scalar_lea.hbm %s7077_s16, %s4904_s4 }
 0x329   : > { %v1300_v58 = vpack.c.bf16 %v4962_v55, %v4959_v52  ;;  %v1662_v50 = vrot.slane %v1648_v47, %v6369_v7  ;;  %v6433_v55 = vrot.slane %v1664_v51, %v6373_v12 }
 0x32a   : > { %1593 = vmatmul.mubr.bf16.gmra.mrb[52].mxu1 %v1411_v57 }
 0x32b   : > { %v1316_v59 = vadd.bf16 %v6402_v44, %v1300_v58  ;;  %v4963_v60 = vpop.f32.mrb[28].mxu1  ;;  %1602 = vmatprep.mubr.bf16.mxu1 %v5959_v5  ;;  %v1671_v52 = vpack.i.b16 %v1662_v50, %v1662_v50 }
 0x32c   : > { %v4964_v61 = vpop.f32.mrb[29].mxu1 }
 0x32d   : > { %v1332_v63 = vmul.bf16 1009007652, %v1316_v59  ;;  %v4965_v0 = vadd.f32 %v4964_v61, %v4963_v60  ;;  %v4966_v1 = vpop.f32.mrb[30].mxu1  ;;  %vm1324_vm6 = vcmp.gt.bf16.partialorder %v1316_v59, 0  ;;  %v6436_v57 = vrot.slane %v1671_v52, %v6373_v12 }
 0x32e   : > { %v4967_v2 = vpop.f32.mrb[31].mxu1 }
 0x32f   : > { %v4968_v4 = vadd.f32 %v4967_v2, %v4966_v1  ;;  %v1340_v6 = vsel %vm1324_vm6, %v1316_v59, %v1332_v63 }
 0x330   : > { %v1412_v8 = vadd.bf16 %v5277_v62, %v1340_v6 }
 0x331   : > { %v1301_v16 = vpack.c.bf16 %v4968_v4, %v4965_v0 }
 0x332   : > { %1603 = vmatmul.mubr.bf16.gmra.mrb[56].mxu1 %v1412_v8 }
 0x333   : > { %v1317_v18 = vadd.bf16 %v6402_v44, %v1301_v16  ;;  %1612 = vmatprep.mubr.bf16.mxu1 %v5959_v5  ;;  %v5330_v5 = vld [vmem:[#allocation11 + $0x110] ss:$8 sps:$4 sm:$0xff]   ;;  %v5335_v44 = vld [vmem:[#allocation11 + $0x124] ss:$8 sps:$4 sm:$0xff]  }
 0x334   : > { %2362 = vmatpush1.bf16.msra.mxu1 %v5330_v5 }
 0x335   : > { %v1333_v10 = vmul.bf16 1009007652, %v1317_v18  ;;  %vm1325_vm7 = vcmp.gt.bf16.partialorder %v1317_v18, 0  ;;  %2363 = vmatprep.subr.bf16.mxu1 %v5335_v44 }
 0x337   : > { %v1341_v11 = vsel %vm1325_vm7, %v1317_v18, %v1333_v10 }
 0x338   : > { %v1413_v13 = vadd.bf16 %v5278_v9, %v1341_v11  ;;  %2364 = vmatpush1.bf16.msra.mxu1 %v5333_v23 }
 0x339   : > { %2365 = vmatprep.subr.bf16.mxu1 %v5338_v24 }
 0x33a   : > { %1613 = vmatmul.mubr.bf16.gmra.mrb[60].mxu1 %v1413_v13 }
 0x33c   : > { %2366 = vmatpush1.bf16.msra.mxu1 %v5336_v25 }
 0x33d   : > { %2367 = vmatprep.subr.bf16.mxu1 %v5341_v26 }
 0x340   : > { %2368 = vmatpush1.bf16.msra.mxu1 %v5339_v27 }
 0x341   : > { %2369 = vmatprep.subr.bf16.mxu1 %v5344_v28 }
 0x344   : > { %2370 = vmatpush1.bf16.msra.mxu1 %v5342_v29 }
 0x345   : > { %2371 = vmatprep.subr.bf16.mxu1 %v5347_v30 }
 0x348   : > { %2372 = vmatpush1.bf16.msra.mxu1 %v5345_v31 }
 0x349   : > { %2373 = vmatprep.subr.bf16.mxu1 %v5350_v32 }
 0x34c   : > { %2374 = vmatpush1.bf16.msra.mxu1 %v5348_v33 }
 0x34d   : > { %2375 = vmatprep.subr.bf16.mxu1 %v5353_v34 }
 0x350   : > { %2376 = vmatpush1.bf16.msra.mxu1 %v5351_v35 }
 0x351   : > { %2377 = vmatprep.subr.bf16.mxu1 %v5356_v36 }
 0x354   : > { %2378 = vmatpush1.bf16.msra.mxu1 %v5354_v37 }
 0x355   : > { %2379 = vmatprep.subr.bf16.mxu1 %v5359_v38 }
 0x358   : > { %2380 = vmatpush1.bf16.msra.mxu1 %v5357_v39 }
 0x359   : > { %2381 = vmatprep.subr.bf16.mxu1 %v5362_v40 }
 0x35c   : > { %2382 = vmatpush1.bf16.msra.mxu1 %v5360_v41 }
 0x35d   : > { %2383 = vmatprep.subr.bf16.mxu1 %v5365_v42 }
 0x360   : > { %2384 = vmatpush1.bf16.msra.mxu1 %v5363_v45 }
 0x361   : > { %2385 = vmatprep.subr.bf16.mxu1 %v5368_v46 }
 0x364   : > { %2386 = vmatpush1.bf16.msra.mxu1 %v5366_v48 }
 0x3d5   : > { %v1544_v53 = vpop.f32.mrb[32].mxu1 }
 0x3d6   : > { %v1546_v54 = vpop.f32.mrb[33].mxu1 }
 0x3d7   : > { %v1548_v56 = vpop.f32.mrb[34].mxu1 }
 0x3d8   : > { %v1623_v58 = vpack.c.bf16 %v1548_v56, %v1544_v53  ;;  %v1550_v59 = vpop.f32.mrb[35].mxu1 }
 0x3d9   : > { %v1624_v60 = vpack.c.bf16 %v1550_v59, %v1546_v54 }
 0x3da   : > { %v1677_v61 = vadd.bf16 %v6433_v55, %v1623_v58 }
 0x3db   : > { %v1678_v62 = vadd.bf16 %v6436_v57, %v1624_v60 }
 0x3dc   : > { %v1709_v63 = vmul.bf16 1009007652, %v1677_v61  ;;  %vm1693_vm8 = vcmp.gt.bf16.partialorder %v1677_v61, 0 }
 0x3dd   : > { %v1554_v0 = vpop.f32.mrb[36].mxu1  ;;  %vm1694_vm9 = vcmp.gt.bf16.partialorder %v1678_v62, 0  ;;  %v1710_v1 = vmul.bf16 1009007652, %v1678_v62 }
 0x3de   : > { %v1556_v2 = vpop.f32.mrb[37].mxu1  ;;  %v1725_v18 = vsel %vm1693_vm8, %v1677_v61, %v1709_v63 }
 0x3df   : > { %v1558_v4 = vpop.f32.mrb[38].mxu1  ;;  %v1726_v6 = vsel %vm1694_vm9, %v1678_v62, %v1710_v1 }
 0x3e0   : > { %v1625_v8 = vpack.c.bf16 %v1558_v4, %v1554_v0  ;;  %v1560_v16 = vpop.f32.mrb[39].mxu1  ;;  %1966 = vmatprep.mubr.bf16.mxu0 %v1726_v6 }
 0x3e1   : > { %v1626_v9 = vpack.c.bf16 %v1560_v16, %v1556_v2  ;;  %1967 = vmatmul.mubr.bf16.vlgmr.msra.gmra.mrb[32].mxu0 %v1725_v18 }
 0x3e2   : > { %v1679_v10 = vadd.bf16 %v6433_v55, %v1625_v8 }
 0x3e3   : > { %v1680_v11 = vadd.bf16 %v6436_v57, %v1626_v9 }
 0x3e4   : > { %v1711_v13 = vmul.bf16 1009007652, %v1679_v10  ;;  %vm1695_vm11 = vcmp.gt.bf16.partialorder %v1679_v10, 0 }
 0x3e5   : > { %v1564_v14 = vpop.f32.mrb[40].mxu1  ;;  %vm1696_vm10 = vcmp.gt.bf16.partialorder %v1680_v11, 0  ;;  %v1712_v15 = vmul.bf16 1009007652, %v1680_v11 }
 0x3e6   : > { %v1566_v17 = vpop.f32.mrb[41].mxu1  ;;  %v1727_v5 = vsel %vm1695_vm11, %v1679_v10, %v1711_v13 }
 0x3e7   : > { %v1568_v19 = vpop.f32.mrb[42].mxu1  ;;  %v1728_v20 = vsel %vm1696_vm10, %v1680_v11, %v1712_v15 }
 0x3e8   : > { %v1627_v21 = vpack.c.bf16 %v1568_v19, %v1564_v14  ;;  %v1570_v22 = vpop.f32.mrb[43].mxu1  ;;  %1976 = vmatprep.mubr.bf16.mxu0 %v1728_v20 }
 0x3e9   : > { %v1628_v44 = vpack.c.bf16 %v1570_v22, %v1566_v17  ;;  %1977 = vmatmul.mubr.bf16.gmra.mrb[36].mxu0 %v1727_v5 }
 0x3ea   : > { %v1681_v23 = vadd.bf16 %v6433_v55, %v1627_v21 }
 0x3eb   : > { %v1682_v24 = vadd.bf16 %v6436_v57, %v1628_v44 }
 0x3ec   : > { %v1713_v25 = vmul.bf16 1009007652, %v1681_v23  ;;  %vm1697_vm13 = vcmp.gt.bf16.partialorder %v1681_v23, 0 }
 0x3ed   : > { %v1574_v26 = vpop.f32.mrb[44].mxu1  ;;  %vm1698_vm12 = vcmp.gt.bf16.partialorder %v1682_v24, 0  ;;  %v1714_v27 = vmul.bf16 1009007652, %v1682_v24 }
 0x3ee   : > { %v1576_v28 = vpop.f32.mrb[45].mxu1  ;;  %v1729_v33 = vsel %vm1697_vm13, %v1681_v23, %v1713_v25 }
 0x3ef   : > { %v1578_v29 = vpop.f32.mrb[46].mxu1  ;;  %v1730_v30 = vsel %vm1698_vm12, %v1682_v24, %v1714_v27 }
 0x3f0   : > { %v1629_v31 = vpack.c.bf16 %v1578_v29, %v1574_v26  ;;  %v1580_v32 = vpop.f32.mrb[47].mxu1  ;;  %1986 = vmatprep.mubr.bf16.mxu0 %v1730_v30  ;;  %v5371_v30 = vld [vmem:[#allocation11 + $0x1e4] ss:$8 sps:$4 sm:$0xff]  }
 0x3f1   : > { %v1630_v34 = vpack.c.bf16 %v1580_v32, %v1576_v28  ;;  %1987 = vmatmul.mubr.bf16.gmra.mrb[40].mxu0 %v1729_v33  ;;  %2387 = vmatprep.subr.bf16.mxu1 %v5371_v30  ;;  %v5374_v32 = vld [vmem:[#allocation11 + $0x1f4] ss:$8 sps:$4 sm:$0xff]   ;;  %v5372_v33 = vld [vmem:[#allocation11 + $0x1f0] ss:$8 sps:$4 sm:$0xff]  }
 0x3f2   : > { %v1683_v35 = vadd.bf16 %v6433_v55, %v1629_v31  ;;  %v5369_v31 = vld [vmem:[#allocation11 + $0x1e0] ss:$8 sps:$4 sm:$0xff]  }
 0x3f3   : > { %v1684_v36 = vadd.bf16 %v6436_v57, %v1630_v34  ;;  %2388 = vmatpush1.bf16.msra.mxu1 %v5369_v31  ;;  %v5375_v34 = vld [vmem:[#allocation11 + $0x200] ss:$8 sps:$4 sm:$0xff]  }
 0x3f4   : > { %v1715_v37 = vmul.bf16 1009007652, %v1683_v35  ;;  %vm1699_vm15 = vcmp.gt.bf16.partialorder %v1683_v35, 0  ;;  %2389 = vmatprep.subr.bf16.mxu1 %v5374_v32 }
 0x3f5   : > { %v1584_v38 = vpop.f32.mrb[48].mxu1  ;;  %vm1700_vm14 = vcmp.gt.bf16.partialorder %v1684_v36, 0  ;;  %v1716_v39 = vmul.bf16 1009007652, %v1684_v36 }
 0x3f6   : > { %v1586_v40 = vpop.f32.mrb[49].mxu1  ;;  %v1731_v46 = vsel %vm1699_vm15, %v1683_v35, %v1715_v37  ;;  %v5380_v35 = vld [vmem:[#allocation11 + $0x214] ss:$8 sps:$4 sm:$0xff]   ;;  %v5381_v37 = vld [vmem:[#allocation11 + $0x220] ss:$8 sps:$4 sm:$0xff]  }
 0x3f7   : > { %v1588_v41 = vpop.f32.mrb[50].mxu1  ;;  %v1732_v42 = vsel %vm1700_vm14, %v1684_v36, %v1716_v39  ;;  %2390 = vmatpush1.bf16.msra.mxu1 %v5372_v33  ;;  %v5383_v36 = vld [vmem:[#allocation11 + $0x224] ss:$8 sps:$4 sm:$0xff]   ;;  %v5384_v39 = vld [vmem:[#allocation11 + $0x230] ss:$8 sps:$4 sm:$0xff]  }
 0x3f8   : > { %v1631_v43 = vpack.c.bf16 %v1588_v41, %v1584_v38  ;;  %v1590_v45 = vpop.f32.mrb[51].mxu1  ;;  %1996 = vmatprep.mubr.bf16.mxu0 %v1732_v42  ;;  %v5386_v38 = vld [vmem:[#allocation11 + $0x234] ss:$8 sps:$4 sm:$0xff]   ;;  %v5387_v41 = vld [vmem:[#allocation11 + $0x240] ss:$8 sps:$4 sm:$0xff]  }
 0x3f9   : > { %v1632_v47 = vpack.c.bf16 %v1590_v45, %v1586_v40  ;;  %1997 = vmatmul.mubr.bf16.gmra.mrb[44].mxu0 %v1731_v46  ;;  %v5389_v40 = vld [vmem:[#allocation11 + $0x244] ss:$8 sps:$4 sm:$0xff]   ;;  %v5392_v42 = vld [vmem:[#allocation11 + $0x254] ss:$8 sps:$4 sm:$0xff]   ;;  %v5393_v46 = vld [vmem:[#allocation11 + $0x260] ss:$8 sps:$4 sm:$0xff]  }
 0x3fa   : > { %v1685_v48 = vadd.bf16 %v6433_v55, %v1631_v43  ;;  %v5390_v43 = vld [vmem:[#allocation11 + $0x250] ss:$8 sps:$4 sm:$0xff]   ;;  %v5395_v45 = vld [vmem:[#allocation11 + $0x264] ss:$8 sps:$4 sm:$0xff]  }
 0x3fb   : > { %v1686_v49 = vadd.bf16 %v6436_v57, %v1632_v47  ;;  %v5398_v47 = vld [vmem:[#allocation11 + $0x274] ss:$8 sps:$4 sm:$0xff]  }
 0x3fc   : > { %v1717_v50 = vmul.bf16 1009007652, %v1685_v48  ;;  %vm1701_vm1 = vcmp.gt.bf16.partialorder %v1685_v48, 0 }
 0x3fd   : > { %v1594_v51 = vpop.f32.mrb[52].mxu1  ;;  %vm1702_vm0 = vcmp.gt.bf16.partialorder %v1686_v49, 0  ;;  %v1718_v52 = vmul.bf16 1009007652, %v1686_v49 }
 0x3fe   : > { %v1596_v53 = vpop.f32.mrb[53].mxu1  ;;  %v1733_v60 = vsel %vm1701_vm1, %v1685_v48, %v1717_v50  ;;  %v5396_v48 = vld [vmem:[#allocation11 + $0x270] ss:$8 sps:$4 sm:$0xff]   ;;  %v5399_v50 = vld [vmem:[#allocation11 + $0x280] ss:$8 sps:$4 sm:$0xff]  }
 0x3ff   : > { %v1598_v54 = vpop.f32.mrb[54].mxu1  ;;  %v1734_v56 = vsel %vm1702_vm0, %v1686_v49, %v1718_v52  ;;  %v5401_v49 = vld [vmem:[#allocation11 + $0x284] ss:$8 sps:$4 sm:$0xff]   ;;  %v5402_v52 = vld [vmem:[#allocation11 + $0x290] ss:$8 sps:$4 sm:$0xff]  }
 0x400   : > { %v1633_v58 = vpack.c.bf16 %v1598_v54, %v1594_v51  ;;  %v1600_v59 = vpop.f32.mrb[55].mxu1  ;;  %2006 = vmatprep.mubr.bf16.mxu0 %v1734_v56  ;;  %v5404_v51 = vld [vmem:[#allocation11 + $0x294] ss:$8 sps:$4 sm:$0xff]   ;;  %v5405_v54 = vld [vmem:[#allocation11 + $0x2a0] ss:$8 sps:$4 sm:$0xff]  }
 0x401   : > { %v1634_v61 = vpack.c.bf16 %v1600_v59, %v1596_v53  ;;  %2007 = vmatmul.mubr.bf16.gmra.mrb[48].mxu0 %v1733_v60  ;;  %v5407_v53 = vld [vmem:[#allocation11 + $0x2a4] ss:$8 sps:$4 sm:$0xff]   ;;  %v5410_v56 = vld [vmem:[#allocation11 + $0x2b4] ss:$8 sps:$4 sm:$0xff]  }
 0x402   : > { %v1687_v62 = vadd.bf16 %v6433_v55, %v1633_v58  ;;  %v5408_v58 = vld [vmem:[#allocation11 + $0x2b0] ss:$8 sps:$4 sm:$0xff]   ;;  %v5413_v59 = vld [vmem:[#allocation11 + $0x2c4] ss:$8 sps:$4 sm:$0xff]  }
 0x403   : > { %v1688_v63 = vadd.bf16 %v6436_v57, %v1634_v61  ;;  %v4726_v60 = vld.sshfl [vmem:[%s7073_s10] sm:$0x11 pattern:$0x75316420] }
 0x404   : > { %v1719_v0 = vmul.bf16 1009007652, %v1687_v62  ;;  %vm1703_vm3 = vcmp.gt.bf16.partialorder %v1687_v62, 0  ;;  %v5411_v61 = vld [vmem:[#allocation11 + $0x2c0] ss:$8 sps:$4 sm:$0xff]  }
 0x405   : > { %v1604_v1 = vpop.f32.mrb[56].mxu1  ;;  %vm1704_vm2 = vcmp.gt.bf16.partialorder %v1688_v63, 0  ;;  %v1720_v2 = vmul.bf16 1009007652, %v1688_v63 }
 0x406   : > { %v1606_v4 = vpop.f32.mrb[57].mxu1  ;;  %v1735_v9 = vsel %vm1703_vm3, %v1687_v62, %v1719_v0  ;;  %v5416_v62 = vld [vmem:[#allocation11 + $0x2d4] ss:$8 sps:$4 sm:$0xff]   ;;  %v5414_v0 = vld [vmem:[#allocation11 + $0x2d0] ss:$8 sps:$4 sm:$0xff]  }
 0x407   : > { %v1608_v6 = vpop.f32.mrb[58].mxu1  ;;  %v1736_v8 = vsel %vm1704_vm2, %v1688_v63, %v1720_v2  ;;  %v2071_v63 = vcombine.high %v4726_v60, %v4726_v60 }
 0x408   : > { %v1635_v16 = vpack.c.bf16 %v1608_v6, %v1604_v1  ;;  %v1610_v18 = vpop.f32.mrb[59].mxu1  ;;  %2016 = vmatprep.mubr.bf16.mxu0 %v1736_v8  ;;  %v2078_v1 = vrot.slane %v4726_v60, %v6369_v7 }
 0x409   : > { %v1636_v10 = vpack.c.bf16 %v1610_v18, %v1606_v4  ;;  %2017 = vmatmul.mubr.bf16.gmra.mrb[52].mxu0 %v1735_v9  ;;  %v2085_v2 = vrot.slane %v2071_v63, %v6369_v7 }
 0x40a   : > { %v1689_v11 = vadd.bf16 %v6433_v55, %v1635_v16  ;;  %v2087_v4 = vpack.i.b16 %v2078_v1, %v2078_v1 }
 0x40b   : > { %v1690_v13 = vadd.bf16 %v6436_v57, %v1636_v10  ;;  %v2094_v6 = vpack.i.b16 %v2085_v2, %v2085_v2 }
 0x40c   : > { %v1721_v14 = vmul.bf16 1009007652, %v1689_v11  ;;  %vm1705_vm5 = vcmp.gt.bf16.partialorder %v1689_v11, 0  ;;  %v6460_v18 = vrot.slane %v2087_v4, %v6373_v12 }
 0x40d   : > { %v1614_v15 = vpop.f32.mrb[60].mxu1  ;;  %vm1706_vm4 = vcmp.gt.bf16.partialorder %v1690_v13, 0  ;;  %v1722_v17 = vmul.bf16 1009007652, %v1690_v13  ;;  %v6463_v10 = vrot.slane %v2094_v6, %v6373_v12 }
 0x40e   : > { %v1616_v19 = vpop.f32.mrb[61].mxu1  ;;  %v1737_v44 = vsel %vm1705_vm5, %v1689_v11, %v1721_v14 }
 0x40f   : > { %v1618_v20 = vpop.f32.mrb[62].mxu1  ;;  %v1738_v21 = vsel %vm1706_vm4, %v1690_v13, %v1722_v17 }
 0x410   : > { %v1637_v22 = vpack.c.bf16 %v1618_v20, %v1614_v15  ;;  %v1620_v5 = vpop.f32.mrb[63].mxu1  ;;  %2026 = vmatprep.mubr.bf16.mxu0 %v1738_v21 }
 0x411   : > { %v1638_v23 = vpack.c.bf16 %v1620_v5, %v1616_v19  ;;  %2027 = vmatmul.mubr.bf16.gmra.mrb[56].mxu0 %v1737_v44 }
 0x412   : > { %v1691_v24 = vadd.bf16 %v6433_v55, %v1637_v22  ;;  %v5377_v55 = vld [vmem:[#allocation11 + $0x204] ss:$8 sps:$4 sm:$0xff]  }
 0x413   : > { %v1692_v25 = vadd.bf16 %v6436_v57, %v1638_v23  ;;  %2784 = vmatprep.subr.bf16.mxu0 %v5377_v55  ;;  %v5378_v57 = vld [vmem:[#allocation11 + $0x210] ss:$8 sps:$4 sm:$0xff]  }
 0x414   : > { %v1723_v26 = vmul.bf16 1009007652, %v1691_v24  ;;  %vm1707_vm7 = vcmp.gt.bf16.partialorder %v1691_v24, 0  ;;  %2785 = vmatpush1.bf16.msra.mxu0 %v5375_v34 }
 0x415   : > { %vm1708_vm6 = vcmp.gt.bf16.partialorder %v1692_v25, 0  ;;  %v1724_v27 = vmul.bf16 1009007652, %v1692_v25  ;;  %2786 = vmatprep.subr.bf16.mxu0 %v5380_v35 }
 0x416   : > { %v1739_v29 = vsel %vm1707_vm7, %v1691_v24, %v1723_v26 }
 0x417   : > { %v1740_v28 = vsel %vm1708_vm6, %v1692_v25, %v1724_v27 }
 0x418   : > { %2036 = vmatprep.mubr.bf16.mxu0 %v1740_v28  ;;  %2787 = vmatpush1.bf16.msra.mxu0 %v5378_v57 }
 0x419   : > { %2037 = vmatmul.mubr.bf16.gmra.mrb[60].mxu0 %v1739_v29  ;;  %2788 = vmatprep.subr.bf16.mxu0 %v5383_v36 }
 0x41c   : > { %2789 = vmatpush1.bf16.msra.mxu0 %v5381_v37 }
 0x41d   : > { %2790 = vmatprep.subr.bf16.mxu0 %v5386_v38 }
 0x420   : > { %2791 = vmatpush1.bf16.msra.mxu0 %v5384_v39 }
 0x421   : > { %2792 = vmatprep.subr.bf16.mxu0 %v5389_v40 }
 0x424   : > { %2793 = vmatpush1.bf16.msra.mxu0 %v5387_v41 }
 0x425   : > { %2794 = vmatprep.subr.bf16.mxu0 %v5392_v42 }
 0x428   : > { %2795 = vmatpush1.bf16.msra.mxu0 %v5390_v43 }
 0x429   : > { %2796 = vmatprep.subr.bf16.mxu0 %v5395_v45 }
 0x42c   : > { %2797 = vmatpush1.bf16.msra.mxu0 %v5393_v46 }
 0x42d   : > { %2798 = vmatprep.subr.bf16.mxu0 %v5398_v47 }
 0x430   : > { %2799 = vmatpush1.bf16.msra.mxu0 %v5396_v48 }
 0x431   : > { %2800 = vmatprep.subr.bf16.mxu0 %v5401_v49 }
 0x434   : > { %2801 = vmatpush1.bf16.msra.mxu0 %v5399_v50 }
 0x435   : > { %2802 = vmatprep.subr.bf16.mxu0 %v5404_v51 }
 0x438   : > { %2803 = vmatpush1.bf16.msra.mxu0 %v5402_v52 }
 0x439   : > { %2804 = vmatprep.subr.bf16.mxu0 %v5407_v53 }
 0x43c   : > { %2805 = vmatpush1.bf16.msra.mxu0 %v5405_v54 }
 0x43d   : > { %2806 = vmatprep.subr.bf16.mxu0 %v5410_v56 }
 0x440   : > { %2807 = vmatpush1.bf16.msra.mxu0 %v5408_v58 }
 0x441   : > { %2808 = vmatprep.subr.bf16.mxu0 %v5413_v59 }
 0x444   : > { %2809 = vmatpush1.bf16.msra.mxu0 %v5411_v61 }
 0x445   : > { %2810 = vmatprep.subr.bf16.mxu0 %v5416_v62 }
 0x448   : > { %2811 = vmatpush1.bf16.msra.mxu0 %v5414_v0 }
 0x4b4   : > { %v1968_v8 = vpop.f32.mrb[32].mxu0 }
 0x4b5   : > { %v1970_v16 = vpop.f32.mrb[33].mxu0 }
 0x4b6   : > { %v1972_v9 = vpop.f32.mrb[34].mxu0 }
 0x4b7   : > { %v2047_v11 = vpack.c.bf16 %v1972_v9, %v1968_v8  ;;  %v1974_v13 = vpop.f32.mrb[35].mxu0 }
 0x4b8   : > { %v2048_v14 = vpack.c.bf16 %v1974_v13, %v1970_v16 }
 0x4b9   : > { %v2100_v15 = vadd.bf16 %v6460_v18, %v2047_v11 }
 0x4ba   : > { %v2101_v17 = vadd.bf16 %v6463_v10, %v2048_v14 }
 0x4bb   : > { %v2132_v19 = vmul.bf16 1009007652, %v2100_v15  ;;  %vm2116_vm8 = vcmp.gt.bf16.partialorder %v2100_v15, 0 }
 0x4bc   : > { %v1978_v20 = vpop.f32.mrb[36].mxu0  ;;  %vm2117_vm9 = vcmp.gt.bf16.partialorder %v2101_v17, 0  ;;  %v2133_v21 = vmul.bf16 1009007652, %v2101_v17 }
 0x4bd   : > { %v1980_v22 = vpop.f32.mrb[37].mxu0  ;;  %v2148_v25 = vsel %vm2116_vm8, %v2100_v15, %v2132_v19 }
 0x4be   : > { %v1982_v5 = vpop.f32.mrb[38].mxu0  ;;  %v2149_v44 = vsel %vm2117_vm9, %v2101_v17, %v2133_v21 }
 0x4bf   : > { %v2049_v23 = vpack.c.bf16 %v1982_v5, %v1978_v20  ;;  %v1984_v24 = vpop.f32.mrb[39].mxu0  ;;  %2391 = vmatprep.mubr.bf16.mxu1 %v2149_v44 }
 0x4c0   : > { %v2050_v26 = vpack.c.bf16 %v1984_v24, %v1980_v22  ;;  %2392 = vmatmul.mubr.bf16.vlgmr.msra.gmra.mrb[64].mxu1 %v2148_v25 }
 0x4c1   : > { %v2102_v27 = vadd.bf16 %v6460_v18, %v2049_v23 }
 0x4c2   : > { %v2103_v28 = vadd.bf16 %v6463_v10, %v2050_v26 }
 0x4c3   : > { %v2134_v29 = vmul.bf16 1009007652, %v2102_v27  ;;  %vm2118_vm11 = vcmp.gt.bf16.partialorder %v2102_v27, 0 }
 0x4c4   : > { %v1988_v30 = vpop.f32.mrb[40].mxu0  ;;  %vm2119_vm10 = vcmp.gt.bf16.partialorder %v2103_v28, 0  ;;  %v2135_v31 = vmul.bf16 1009007652, %v2103_v28 }
 0x4c5   : > { %v1990_v32 = vpop.f32.mrb[41].mxu0  ;;  %v2150_v57 = vsel %vm2118_vm11, %v2102_v27, %v2134_v29 }
 0x4c6   : > { %v1992_v33 = vpop.f32.mrb[42].mxu0  ;;  %v2151_v34 = vsel %vm2119_vm10, %v2103_v28, %v2135_v31 }
 0x4c7   : > { %v2051_v55 = vpack.c.bf16 %v1992_v33, %v1988_v30  ;;  %v1994_v35 = vpop.f32.mrb[43].mxu0  ;;  %2401 = vmatprep.mubr.bf16.mxu1 %v2151_v34 }
 0x4c8   : > { %v2052_v36 = vpack.c.bf16 %v1994_v35, %v1990_v32  ;;  %2402 = vmatmul.mubr.bf16.gmra.mrb[68].mxu1 %v2150_v57 }
 0x4c9   : > { %v2104_v37 = vadd.bf16 %v6460_v18, %v2051_v55 }
 0x4ca   : > { %v2105_v38 = vadd.bf16 %v6463_v10, %v2052_v36 }
 0x4cb   : > { %v2136_v39 = vmul.bf16 1009007652, %v2104_v37  ;;  %vm2120_vm13 = vcmp.gt.bf16.partialorder %v2104_v37, 0 }
 0x4cc   : > { %v1998_v40 = vpop.f32.mrb[44].mxu0  ;;  %vm2121_vm12 = vcmp.gt.bf16.partialorder %v2105_v38, 0  ;;  %v2137_v41 = vmul.bf16 1009007652, %v2105_v38 }
 0x4cd   : > { %v2000_v42 = vpop.f32.mrb[45].mxu0  ;;  %v2152_v48 = vsel %vm2120_vm13, %v2104_v37, %v2136_v39 }
 0x4ce   : > { %v2002_v43 = vpop.f32.mrb[46].mxu0  ;;  %v2153_v45 = vsel %vm2121_vm12, %v2105_v38, %v2137_v41 }
 0x4cf   : > { %v2053_v46 = vpack.c.bf16 %v2002_v43, %v1998_v40  ;;  %v2004_v47 = vpop.f32.mrb[47].mxu0  ;;  %2411 = vmatprep.mubr.bf16.mxu1 %v2153_v45  ;;  %v5419_v45 = vld [vmem:[#allocation11 + $0x2e4] ss:$8 sps:$4 sm:$0xff]  }
 0x4d0   : > { %v2054_v49 = vpack.c.bf16 %v2004_v47, %v2000_v42  ;;  %2412 = vmatmul.mubr.bf16.gmra.mrb[72].mxu1 %v2152_v48  ;;  %2812 = vmatprep.subr.bf16.mxu0 %v5419_v45  ;;  %v5422_v47 = vld [vmem:[#allocation11 + $0x2f4] ss:$8 sps:$4 sm:$0xff]   ;;  %v5420_v48 = vld [vmem:[#allocation11 + $0x2f0] ss:$8 sps:$4 sm:$0xff]  }
 0x4d1   : > { %v2106_v50 = vadd.bf16 %v6460_v18, %v2053_v46  ;;  %v5417_v46 = vld [vmem:[#allocation11 + $0x2e0] ss:$8 sps:$4 sm:$0xff]  }
 0x4d2   : > { %v2107_v51 = vadd.bf16 %v6463_v10, %v2054_v49  ;;  %2813 = vmatpush1.bf16.msra.mxu0 %v5417_v46  ;;  %v5423_v49 = vld [vmem:[#allocation11 + $0x300] ss:$8 sps:$4 sm:$0xff]  }
 0x4d3   : > { %v2138_v52 = vmul.bf16 1009007652, %v2106_v50  ;;  %vm2122_vm15 = vcmp.gt.bf16.partialorder %v2106_v50, 0  ;;  %2814 = vmatprep.subr.bf16.mxu0 %v5422_v47 }
 0x4d4   : > { %v2008_v53 = vpop.f32.mrb[48].mxu0  ;;  %vm2123_vm14 = vcmp.gt.bf16.partialorder %v2107_v51, 0  ;;  %v2139_v54 = vmul.bf16 1009007652, %v2107_v51 }
 0x4d5   : > { %v2010_v56 = vpop.f32.mrb[49].mxu0  ;;  %v2154_v62 = vsel %vm2122_vm15, %v2106_v50, %v2138_v52  ;;  %v5428_v50 = vld [vmem:[#allocation11 + $0x314] ss:$8 sps:$4 sm:$0xff]   ;;  %v5429_v52 = vld [vmem:[#allocation11 + $0x320] ss:$8 sps:$4 sm:$0xff]  }
 0x4d6   : > { %v2012_v58 = vpop.f32.mrb[50].mxu0  ;;  %v2155_v59 = vsel %vm2123_vm14, %v2107_v51, %v2139_v54  ;;  %2815 = vmatpush1.bf16.msra.mxu0 %v5420_v48  ;;  %v5431_v51 = vld [vmem:[#allocation11 + $0x324] ss:$8 sps:$4 sm:$0xff]   ;;  %v5432_v54 = vld [vmem:[#allocation11 + $0x330] ss:$8 sps:$4 sm:$0xff]  }
 0x4d7   : > { %v2055_v60 = vpack.c.bf16 %v2012_v58, %v2008_v53  ;;  %v2014_v61 = vpop.f32.mrb[51].mxu0  ;;  %2421 = vmatprep.mubr.bf16.mxu1 %v2155_v59  ;;  %v5434_v53 = vld [vmem:[#allocation11 + $0x334] ss:$8 sps:$4 sm:$0xff]   ;;  %v5435_v58 = vld [vmem:[#allocation11 + $0x340] ss:$8 sps:$4 sm:$0xff]  }
 0x4d8   : > { %v2056_v63 = vpack.c.bf16 %v2014_v61, %v2010_v56  ;;  %2422 = vmatmul.mubr.bf16.gmra.mrb[76].mxu1 %v2154_v62  ;;  %v5437_v56 = vld [vmem:[#allocation11 + $0x344] ss:$8 sps:$4 sm:$0xff]   ;;  %v5440_v59 = vld [vmem:[#allocation11 + $0x354] ss:$8 sps:$4 sm:$0xff]   ;;  %v5441_v62 = vld [vmem:[#allocation11 + $0x360] ss:$8 sps:$4 sm:$0xff]  }
 0x4d9   : > { %v2108_v0 = vadd.bf16 %v6460_v18, %v2055_v60  ;;  %v5438_v60 = vld [vmem:[#allocation11 + $0x350] ss:$8 sps:$4 sm:$0xff]   ;;  %v5443_v61 = vld [vmem:[#allocation11 + $0x364] ss:$8 sps:$4 sm:$0xff]  }
 0x4da   : > { %v2109_v1 = vadd.bf16 %v6463_v10, %v2056_v63  ;;  %v5446_v63 = vld [vmem:[#allocation11 + $0x374] ss:$8 sps:$4 sm:$0xff]  }
 0x4db   : > { %v2140_v2 = vmul.bf16 1009007652, %v2108_v0  ;;  %vm2124_vm1 = vcmp.gt.bf16.partialorder %v2108_v0, 0 }
 0x4dc   : > { %v2018_v4 = vpop.f32.mrb[52].mxu0  ;;  %vm2125_vm0 = vcmp.gt.bf16.partialorder %v2109_v1, 0  ;;  %v2141_v6 = vmul.bf16 1009007652, %v2109_v1 }
 0x4dd   : > { %v2020_v8 = vpop.f32.mrb[53].mxu0  ;;  %v2156_v14 = vsel %vm2124_vm1, %v2108_v0, %v2140_v2  ;;  %v5444_v0 = vld [vmem:[#allocation11 + $0x370] ss:$8 sps:$4 sm:$0xff]   ;;  %v5447_v2 = vld [vmem:[#allocation11 + $0x380] ss:$8 sps:$4 sm:$0xff]  }
 0x4de   : > { %v2022_v16 = vpop.f32.mrb[54].mxu0  ;;  %v2157_v9 = vsel %vm2125_vm0, %v2109_v1, %v2141_v6  ;;  %v5449_v1 = vld [vmem:[#allocation11 + $0x384] ss:$8 sps:$4 sm:$0xff]   ;;  %v5450_v6 = vld [vmem:[#allocation11 + $0x390] ss:$8 sps:$4 sm:$0xff]  }
 0x4df   : > { %v2057_v11 = vpack.c.bf16 %v2022_v16, %v2018_v4  ;;  %v2024_v13 = vpop.f32.mrb[55].mxu0  ;;  %2431 = vmatprep.mubr.bf16.mxu1 %v2157_v9  ;;  %v5452_v4 = vld [vmem:[#allocation11 + $0x394] ss:$8 sps:$4 sm:$0xff]   ;;  %v5453_v16 = vld [vmem:[#allocation11 + $0x3a0] ss:$8 sps:$4 sm:$0xff]  }
 0x4e0   : > { %v2058_v15 = vpack.c.bf16 %v2024_v13, %v2020_v8  ;;  %2432 = vmatmul.mubr.bf16.gmra.mrb[80].mxu1 %v2156_v14  ;;  %v5455_v8 = vld [vmem:[#allocation11 + $0x3a4] ss:$8 sps:$4 sm:$0xff]   ;;  %v5458_v9 = vld [vmem:[#allocation11 + $0x3b4] ss:$8 sps:$4 sm:$0xff]  }
 0x4e1   : > { %v2110_v17 = vadd.bf16 %v6460_v18, %v2057_v11  ;;  %v5456_v11 = vld [vmem:[#allocation11 + $0x3b0] ss:$8 sps:$4 sm:$0xff]   ;;  %v5461_v13 = vld [vmem:[#allocation11 + $0x3c4] ss:$8 sps:$4 sm:$0xff]  }
 0x4e2   : > { %v2111_v19 = vadd.bf16 %v6463_v10, %v2058_v15  ;;  %v4760_v14 = vld.sshfl [vmem:[%s7073_s10 + $0x2] sm:$0x11 pattern:$0x75316420] }
 0x4e3   : > { %v2142_v20 = vmul.bf16 1009007652, %v2110_v17  ;;  %vm2126_vm3 = vcmp.gt.bf16.partialorder %v2110_v17, 0  ;;  %v5459_v15 = vld [vmem:[#allocation11 + $0x3c0] ss:$8 sps:$4 sm:$0xff]  }
 0x4e4   : > { %v2028_v21 = vpop.f32.mrb[56].mxu0  ;;  %vm2127_vm2 = vcmp.gt.bf16.partialorder %v2111_v19, 0  ;;  %v2143_v22 = vmul.bf16 1009007652, %v2111_v19 }
 0x4e5   : > { %v2030_v5 = vpop.f32.mrb[57].mxu0  ;;  %v2158_v26 = vsel %vm2126_vm3, %v2110_v17, %v2142_v20  ;;  %v5464_v17 = vld [vmem:[#allocation11 + $0x3d4] ss:$8 sps:$4 sm:$0xff]   ;;  %v5462_v20 = vld [vmem:[#allocation11 + $0x3d0] ss:$8 sps:$4 sm:$0xff]  }
 0x4e6   : > { %v2032_v44 = vpop.f32.mrb[58].mxu0  ;;  %v2159_v23 = vsel %vm2127_vm2, %v2111_v19, %v2143_v22  ;;  %v2496_v19 = vcombine.high %v4760_v14, %v4760_v14 }
 0x4e7   : > { %v2059_v24 = vpack.c.bf16 %v2032_v44, %v2028_v21  ;;  %v2034_v25 = vpop.f32.mrb[59].mxu0  ;;  %2441 = vmatprep.mubr.bf16.mxu1 %v2159_v23  ;;  %v2503_v21 = vrot.slane %v4760_v14, %v6369_v7 }
 0x4e8   : > { %v2060_v27 = vpack.c.bf16 %v2034_v25, %v2030_v5  ;;  %2442 = vmatmul.mubr.bf16.gmra.mrb[84].mxu1 %v2158_v26  ;;  %v2510_v22 = vrot.slane %v2496_v19, %v6369_v7 }
 0x4e9   : > { %v2112_v28 = vadd.bf16 %v6460_v18, %v2059_v24  ;;  %v2512_v5 = vpack.i.b16 %v2503_v21, %v2503_v21 }
 0x4ea   : > { %v2113_v29 = vadd.bf16 %v6463_v10, %v2060_v27  ;;  %v2519_v44 = vpack.i.b16 %v2510_v22, %v2510_v22 }
 0x4eb   : > { %v2144_v30 = vmul.bf16 1009007652, %v2112_v28  ;;  %vm2128_vm5 = vcmp.gt.bf16.partialorder %v2112_v28, 0  ;;  %v6487_v25 = vrot.slane %v2512_v5, %v6373_v12 }
 0x4ec   : > { %v2038_v31 = vpop.f32.mrb[60].mxu0  ;;  %vm2129_vm4 = vcmp.gt.bf16.partialorder %v2113_v29, 0  ;;  %v2145_v32 = vmul.bf16 1009007652, %v2113_v29  ;;  %v6490_v27 = vrot.slane %v2519_v44, %v6373_v12 }
 0x4ed   : > { %v2040_v33 = vpop.f32.mrb[61].mxu0  ;;  %v2160_v36 = vsel %vm2128_vm5, %v2112_v28, %v2144_v30 }
 0x4ee   : > { %v2042_v34 = vpop.f32.mrb[62].mxu0  ;;  %v2161_v55 = vsel %vm2129_vm4, %v2113_v29, %v2145_v32 }
 0x4ef   : > { %v2061_v35 = vpack.c.bf16 %v2042_v34, %v2038_v31  ;;  %v2044_v57 = vpop.f32.mrb[63].mxu0  ;;  %2451 = vmatprep.mubr.bf16.mxu1 %v2161_v55 }
 0x4f0   : > { %v2062_v37 = vpack.c.bf16 %v2044_v57, %v2040_v33  ;;  %2452 = vmatmul.mubr.bf16.gmra.mrb[88].mxu1 %v2160_v36 }
 0x4f1   : > { %v2114_v38 = vadd.bf16 %v6460_v18, %v2061_v35  ;;  %v5425_v18 = vld [vmem:[#allocation11 + $0x304] ss:$8 sps:$4 sm:$0xff]  }
 0x4f2   : > { %v2115_v39 = vadd.bf16 %v6463_v10, %v2062_v37  ;;  %3209 = vmatprep.subr.bf16.mxu1 %v5425_v18  ;;  %v5426_v10 = vld [vmem:[#allocation11 + $0x310] ss:$8 sps:$4 sm:$0xff]  }
 0x4f3   : > { %v2146_v40 = vmul.bf16 1009007652, %v2114_v38  ;;  %vm2130_vm7 = vcmp.gt.bf16.partialorder %v2114_v38, 0  ;;  %3210 = vmatpush1.bf16.msra.mxu1 %v5423_v49 }
 0x4f4   : > { %vm2131_vm6 = vcmp.gt.bf16.partialorder %v2115_v39, 0  ;;  %v2147_v41 = vmul.bf16 1009007652, %v2115_v39  ;;  %3211 = vmatprep.subr.bf16.mxu1 %v5428_v50 }
 0x4f5   : > { %v2162_v43 = vsel %vm2130_vm7, %v2114_v38, %v2146_v40 }
 0x4f6   : > { %v2163_v42 = vsel %vm2131_vm6, %v2115_v39, %v2147_v41 }
 0x4f7   : > { %2461 = vmatprep.mubr.bf16.mxu1 %v2163_v42  ;;  %3212 = vmatpush1.bf16.msra.mxu1 %v5426_v10 }
 0x4f8   : > { %2462 = vmatmul.mubr.bf16.gmra.mrb[92].mxu1 %v2162_v43  ;;  %3213 = vmatprep.subr.bf16.mxu1 %v5431_v51 }
 0x4fb   : > { %3214 = vmatpush1.bf16.msra.mxu1 %v5429_v52 }
 0x4fc   : > { %3215 = vmatprep.subr.bf16.mxu1 %v5434_v53 }
 0x4ff   : > { %3216 = vmatpush1.bf16.msra.mxu1 %v5432_v54 }
 0x500   : > { %3217 = vmatprep.subr.bf16.mxu1 %v5437_v56 }
 0x503   : > { %3218 = vmatpush1.bf16.msra.mxu1 %v5435_v58 }
 0x504   : > { %3219 = vmatprep.subr.bf16.mxu1 %v5440_v59 }
 0x507   : > { %3220 = vmatpush1.bf16.msra.mxu1 %v5438_v60 }
 0x508   : > { %3221 = vmatprep.subr.bf16.mxu1 %v5443_v61 }
 0x50b   : > { %3222 = vmatpush1.bf16.msra.mxu1 %v5441_v62 }
 0x50c   : > { %3223 = vmatprep.subr.bf16.mxu1 %v5446_v63 }
 0x50f   : > { %3224 = vmatpush1.bf16.msra.mxu1 %v5444_v0 }
 0x510   : > { %3225 = vmatprep.subr.bf16.mxu1 %v5449_v1 }
 0x513   : > { %3226 = vmatpush1.bf16.msra.mxu1 %v5447_v2 }
 0x514   : > { %3227 = vmatprep.subr.bf16.mxu1 %v5452_v4 }
 0x517   : > { %3228 = vmatpush1.bf16.msra.mxu1 %v5450_v6 }
 0x518   : > { %3229 = vmatprep.subr.bf16.mxu1 %v5455_v8 }
 0x51b   : > { %3230 = vmatpush1.bf16.msra.mxu1 %v5453_v16 }
 0x51c   : > { %3231 = vmatprep.subr.bf16.mxu1 %v5458_v9 }
 0x51f   : > { %3232 = vmatpush1.bf16.msra.mxu1 %v5456_v11 }
 0x520   : > { %3233 = vmatprep.subr.bf16.mxu1 %v5461_v13 }
 0x523   : > { %3234 = vmatpush1.bf16.msra.mxu1 %v5459_v15 }
 0x524   : > { %3235 = vmatprep.subr.bf16.mxu1 %v5464_v17 }
 0x527   : > { %3236 = vmatpush1.bf16.msra.mxu1 %v5462_v20 }
 0x593   : > { %v2393_v23 = vpop.f32.mrb[64].mxu1 }
 0x594   : > { %v2395_v24 = vpop.f32.mrb[65].mxu1 }
 0x595   : > { %v2397_v26 = vpop.f32.mrb[66].mxu1 }
 0x596   : > { %v2472_v28 = vpack.c.bf16 %v2397_v26, %v2393_v23  ;;  %v2399_v29 = vpop.f32.mrb[67].mxu1 }
 0x597   : > { %v2473_v30 = vpack.c.bf16 %v2399_v29, %v2395_v24 }
 0x598   : > { %v2525_v31 = vadd.bf16 %v6487_v25, %v2472_v28 }
 0x599   : > { %v2526_v32 = vadd.bf16 %v6490_v27, %v2473_v30 }
 0x59a   : > { %v2557_v33 = vmul.bf16 1009007652, %v2525_v31  ;;  %vm2541_vm8 = vcmp.gt.bf16.partialorder %v2525_v31, 0 }
 0x59b   : > { %v2403_v34 = vpop.f32.mrb[68].mxu1  ;;  %vm2542_vm9 = vcmp.gt.bf16.partialorder %v2526_v32, 0  ;;  %v2558_v55 = vmul.bf16 1009007652, %v2526_v32 }
 0x59c   : > { %v2405_v35 = vpop.f32.mrb[69].mxu1  ;;  %v2573_v39 = vsel %vm2541_vm8, %v2525_v31, %v2557_v33 }
 0x59d   : > { %v2407_v57 = vpop.f32.mrb[70].mxu1  ;;  %v2574_v36 = vsel %vm2542_vm9, %v2526_v32, %v2558_v55 }
 0x59e   : > { %v2474_v37 = vpack.c.bf16 %v2407_v57, %v2403_v34  ;;  %v2409_v38 = vpop.f32.mrb[71].mxu1  ;;  %2816 = vmatprep.mubr.bf16.mxu0 %v2574_v36 }
 0x59f   : > { %v2475_v40 = vpack.c.bf16 %v2409_v38, %v2405_v35  ;;  %2817 = vmatmul.mubr.bf16.vlgmr.msra.gmra.mrb[64].mxu0 %v2573_v39 }
 0x5a0   : > { %v2527_v41 = vadd.bf16 %v6487_v25, %v2474_v37 }
 0x5a1   : > { %v2528_v42 = vadd.bf16 %v6490_v27, %v2475_v40 }
 0x5a2   : > { %v2559_v43 = vmul.bf16 1009007652, %v2527_v41  ;;  %vm2543_vm11 = vcmp.gt.bf16.partialorder %v2527_v41, 0 }
 0x5a3   : > { %v2413_v45 = vpop.f32.mrb[72].mxu1  ;;  %vm2544_vm10 = vcmp.gt.bf16.partialorder %v2528_v42, 0  ;;  %v2560_v46 = vmul.bf16 1009007652, %v2528_v42 }
 0x5a4   : > { %v2415_v47 = vpop.f32.mrb[73].mxu1  ;;  %v2575_v10 = vsel %vm2543_vm11, %v2527_v41, %v2559_v43 }
 0x5a5   : > { %v2417_v48 = vpop.f32.mrb[74].mxu1  ;;  %v2576_v49 = vsel %vm2544_vm10, %v2528_v42, %v2560_v46 }
 0x5a6   : > { %v2476_v18 = vpack.c.bf16 %v2417_v48, %v2413_v45  ;;  %v2419_v50 = vpop.f32.mrb[75].mxu1  ;;  %2826 = vmatprep.mubr.bf16.mxu0 %v2576_v49 }
 0x5a7   : > { %v2477_v51 = vpack.c.bf16 %v2419_v50, %v2415_v47  ;;  %2827 = vmatmul.mubr.bf16.gmra.mrb[68].mxu0 %v2575_v10 }
 0x5a8   : > { %v2529_v52 = vadd.bf16 %v6487_v25, %v2476_v18 }
 0x5a9   : > { %v2530_v53 = vadd.bf16 %v6490_v27, %v2477_v51 }
 0x5aa   : > { %v2561_v54 = vmul.bf16 1009007652, %v2529_v52  ;;  %vm2545_vm13 = vcmp.gt.bf16.partialorder %v2529_v52, 0 }
 0x5ab   : > { %v2423_v56 = vpop.f32.mrb[76].mxu1  ;;  %vm2546_vm12 = vcmp.gt.bf16.partialorder %v2530_v53, 0  ;;  %v2562_v58 = vmul.bf16 1009007652, %v2530_v53 }
 0x5ac   : > { %v2425_v59 = vpop.f32.mrb[77].mxu1  ;;  %v2577_v0 = vsel %vm2545_vm13, %v2529_v52, %v2561_v54 }
 0x5ad   : > { %v2427_v60 = vpop.f32.mrb[78].mxu1  ;;  %v2578_v61 = vsel %vm2546_vm12, %v2530_v53, %v2562_v58 }
 0x5ae   : > { %v2478_v62 = vpack.c.bf16 %v2427_v60, %v2423_v56  ;;  %v2429_v63 = vpop.f32.mrb[79].mxu1  ;;  %2836 = vmatprep.mubr.bf16.mxu0 %v2578_v61  ;;  %v5467_v61 = vld [vmem:[#allocation11 + $0x3e4] ss:$8 sps:$4 sm:$0xff]  }
 0x5af   : > { %v2479_v1 = vpack.c.bf16 %v2429_v63, %v2425_v59  ;;  %2837 = vmatmul.mubr.bf16.gmra.mrb[72].mxu0 %v2577_v0  ;;  %3237 = vmatprep.subr.bf16.mxu1 %v5467_v61  ;;  %v5470_v63 = vld [vmem:[#allocation11 + $0x3f4] ss:$8 sps:$4 sm:$0xff]   ;;  %v5468_v0 = vld [vmem:[#allocation11 + $0x3f0] ss:$8 sps:$4 sm:$0xff]  }
 0x5b0   : > { %v2531_v2 = vadd.bf16 %v6487_v25, %v2478_v62  ;;  %v5465_v62 = vld [vmem:[#allocation11 + $0x3e0] ss:$8 sps:$4 sm:$0xff]  }
 0x5b1   : > { %v2532_v4 = vadd.bf16 %v6490_v27, %v2479_v1  ;;  %3238 = vmatpush1.bf16.msra.mxu1 %v5465_v62  ;;  %v5471_v1 = vld [vmem:[#allocation11 + $0x400] ss:$8 sps:$4 sm:$0xff]  }
 0x5b2   : > { %v2563_v6 = vmul.bf16 1009007652, %v2531_v2  ;;  %vm2547_vm15 = vcmp.gt.bf16.partialorder %v2531_v2, 0  ;;  %3239 = vmatprep.subr.bf16.mxu1 %v5470_v63 }
 0x5b3   : > { %v2433_v8 = vpop.f32.mrb[80].mxu1  ;;  %vm2548_vm14 = vcmp.gt.bf16.partialorder %v2532_v4, 0  ;;  %v2564_v16 = vmul.bf16 1009007652, %v2532_v4 }
 0x5b4   : > { %v2435_v9 = vpop.f32.mrb[81].mxu1  ;;  %v2579_v17 = vsel %vm2547_vm15, %v2531_v2, %v2563_v6  ;;  %v5476_v2 = vld [vmem:[#allocation11 + $0x414] ss:$8 sps:$4 sm:$0xff]   ;;  %v5477_v6 = vld [vmem:[#allocation11 + $0x420] ss:$8 sps:$4 sm:$0xff]  }
 0x5b5   : > { %v2437_v11 = vpop.f32.mrb[82].mxu1  ;;  %v2580_v13 = vsel %vm2548_vm14, %v2532_v4, %v2564_v16  ;;  %3240 = vmatpush1.bf16.msra.mxu1 %v5468_v0  ;;  %v5479_v4 = vld [vmem:[#allocation11 + $0x424] ss:$8 sps:$4 sm:$0xff]   ;;  %v5480_v16 = vld [vmem:[#allocation11 + $0x430] ss:$8 sps:$4 sm:$0xff]  }
 0x5b6   : > { %v2480_v14 = vpack.c.bf16 %v2437_v11, %v2433_v8  ;;  %v2439_v15 = vpop.f32.mrb[83].mxu1  ;;  %2846 = vmatprep.mubr.bf16.mxu0 %v2580_v13  ;;  %v5482_v8 = vld [vmem:[#allocation11 + $0x434] ss:$8 sps:$4 sm:$0xff]   ;;  %v5483_v11 = vld [vmem:[#allocation11 + $0x440] ss:$8 sps:$4 sm:$0xff]  }
 0x5b7   : > { %v2481_v19 = vpack.c.bf16 %v2439_v15, %v2435_v9  ;;  %2847 = vmatmul.mubr.bf16.gmra.mrb[76].mxu0 %v2579_v17  ;;  %v5485_v9 = vld [vmem:[#allocation11 + $0x444] ss:$8 sps:$4 sm:$0xff]   ;;  %v5488_v13 = vld [vmem:[#allocation11 + $0x454] ss:$8 sps:$4 sm:$0xff]   ;;  %v5489_v17 = vld [vmem:[#allocation11 + $0x460] ss:$8 sps:$4 sm:$0xff]  }
 0x5b8   : > { %v2533_v20 = vadd.bf16 %v6487_v25, %v2480_v14  ;;  %v5486_v14 = vld [vmem:[#allocation11 + $0x450] ss:$8 sps:$4 sm:$0xff]   ;;  %v5491_v15 = vld [vmem:[#allocation11 + $0x464] ss:$8 sps:$4 sm:$0xff]  }
 0x5b9   : > { %v2534_v21 = vadd.bf16 %v6490_v27, %v2481_v19  ;;  %v5494_v19 = vld [vmem:[#allocation11 + $0x474] ss:$8 sps:$4 sm:$0xff]  }
 0x5ba   : > { %v2565_v22 = vmul.bf16 1009007652, %v2533_v20  ;;  %vm2549_vm1 = vcmp.gt.bf16.partialorder %v2533_v20, 0 }
 0x5bb   : > { %v2443_v5 = vpop.f32.mrb[84].mxu1  ;;  %vm2550_vm0 = vcmp.gt.bf16.partialorder %v2534_v21, 0  ;;  %v2566_v44 = vmul.bf16 1009007652, %v2534_v21 }
 0x5bc   : > { %v2445_v23 = vpop.f32.mrb[85].mxu1  ;;  %v2581_v30 = vsel %vm2549_vm1, %v2533_v20, %v2565_v22  ;;  %v5492_v20 = vld [vmem:[#allocation11 + $0x470] ss:$8 sps:$4 sm:$0xff]   ;;  %v5495_v22 = vld [vmem:[#allocation11 + $0x480] ss:$8 sps:$4 sm:$0xff]  }
 0x5bd   : > { %v2447_v24 = vpop.f32.mrb[86].mxu1  ;;  %v2582_v26 = vsel %vm2550_vm0, %v2534_v21, %v2566_v44  ;;  %v5497_v21 = vld [vmem:[#allocation11 + $0x484] ss:$8 sps:$4 sm:$0xff]   ;;  %v5498_v44 = vld [vmem:[#allocation11 + $0x490] ss:$8 sps:$4 sm:$0xff]  }
 0x5be   : > { %v2482_v28 = vpack.c.bf16 %v2447_v24, %v2443_v5  ;;  %v2449_v29 = vpop.f32.mrb[87].mxu1  ;;  %2856 = vmatprep.mubr.bf16.mxu0 %v2582_v26  ;;  %v5500_v5 = vld [vmem:[#allocation11 + $0x494] ss:$8 sps:$4 sm:$0xff]   ;;  %v5501_v24 = vld [vmem:[#allocation11 + $0x4a0] ss:$8 sps:$4 sm:$0xff]  }
 0x5bf   : > { %v2483_v31 = vpack.c.bf16 %v2449_v29, %v2445_v23  ;;  %2857 = vmatmul.mubr.bf16.gmra.mrb[80].mxu0 %v2581_v30  ;;  %v5503_v23 = vld [vmem:[#allocation11 + $0x4a4] ss:$8 sps:$4 sm:$0xff]   ;;  %v5506_v26 = vld [vmem:[#allocation11 + $0x4b4] ss:$8 sps:$4 sm:$0xff]  }
 0x5c0   : > { %v2535_v32 = vadd.bf16 %v6487_v25, %v2482_v28  ;;  %v5504_v28 = vld [vmem:[#allocation11 + $0x4b0] ss:$8 sps:$4 sm:$0xff]   ;;  %v5509_v29 = vld [vmem:[#allocation11 + $0x4c4] ss:$8 sps:$4 sm:$0xff]  }
 0x5c1   : > { %v2536_v33 = vadd.bf16 %v6490_v27, %v2483_v31  ;;  %v4794_v30 = vld.sshfl [vmem:[%s7073_s10 + $0x4] sm:$0x11 pattern:$0x75316420]  ;;  %v5507_v31 = vld [vmem:[#allocation11 + $0x4c0] ss:$8 sps:$4 sm:$0xff]  }
 0x5c2   : > { %v2567_v34 = vmul.bf16 1009007652, %v2535_v32  ;;  %vm2551_vm3 = vcmp.gt.bf16.partialorder %v2535_v32, 0 }
 0x5c3   : > { %v2453_v55 = vpop.f32.mrb[88].mxu1  ;;  %vm2552_vm2 = vcmp.gt.bf16.partialorder %v2536_v33, 0  ;;  %v2568_v35 = vmul.bf16 1009007652, %v2536_v33 }
 0x5c4   : > { %v2455_v57 = vpop.f32.mrb[89].mxu1  ;;  %v2583_v40 = vsel %vm2551_vm3, %v2535_v32, %v2567_v34  ;;  %v5512_v32 = vld [vmem:[#allocation11 + $0x4d4] ss:$8 sps:$4 sm:$0xff]   ;;  %v5510_v34 = vld [vmem:[#allocation11 + $0x4d0] ss:$8 sps:$4 sm:$0xff]  }
 0x5c5   : > { %v2457_v36 = vpop.f32.mrb[90].mxu1  ;;  %v2584_v37 = vsel %vm2552_vm2, %v2536_v33, %v2568_v35  ;;  %v2921_v33 = vcombine.high %v4794_v30, %v4794_v30 }
 0x5c6   : > { %v2484_v38 = vpack.c.bf16 %v2457_v36, %v2453_v55  ;;  %v2459_v39 = vpop.f32.mrb[91].mxu1  ;;  %2866 = vmatprep.mubr.bf16.mxu0 %v2584_v37  ;;  %v2928_v55 = vrot.slane %v4794_v30, %v6369_v7 }
 0x5c7   : > { %v2485_v41 = vpack.c.bf16 %v2459_v39, %v2455_v57  ;;  %2867 = vmatmul.mubr.bf16.gmra.mrb[84].mxu0 %v2583_v40  ;;  %v2935_v35 = vrot.slane %v2921_v33, %v6369_v7 }
 0x5c8   : > { %v2537_v42 = vadd.bf16 %v6487_v25, %v2484_v38  ;;  %v2937_v57 = vpack.i.b16 %v2928_v55, %v2928_v55 }
 0x5c9   : > { %v2538_v43 = vadd.bf16 %v6490_v27, %v2485_v41  ;;  %v2944_v36 = vpack.i.b16 %v2935_v35, %v2935_v35 }
 0x5ca   : > { %v2569_v45 = vmul.bf16 1009007652, %v2537_v42  ;;  %vm2553_vm5 = vcmp.gt.bf16.partialorder %v2537_v42, 0  ;;  %v6514_v39 = vrot.slane %v2937_v57, %v6373_v12 }
 0x5cb   : > { %v2463_v46 = vpop.f32.mrb[92].mxu1  ;;  %vm2554_vm4 = vcmp.gt.bf16.partialorder %v2538_v43, 0  ;;  %v2570_v47 = vmul.bf16 1009007652, %v2538_v43  ;;  %v6517_v41 = vrot.slane %v2944_v36, %v6373_v12 }
 0x5cc   : > { %v2465_v48 = vpop.f32.mrb[93].mxu1  ;;  %v2585_v51 = vsel %vm2553_vm5, %v2537_v42, %v2569_v45 }
 0x5cd   : > { %v2467_v49 = vpop.f32.mrb[94].mxu1  ;;  %v2586_v18 = vsel %vm2554_vm4, %v2538_v43, %v2570_v47 }
 0x5ce   : > { %v2486_v50 = vpack.c.bf16 %v2467_v49, %v2463_v46  ;;  %v2469_v10 = vpop.f32.mrb[95].mxu1  ;;  %2876 = vmatprep.mubr.bf16.mxu0 %v2586_v18 }
 0x5cf   : > { %v2487_v52 = vpack.c.bf16 %v2469_v10, %v2465_v48  ;;  %2877 = vmatmul.mubr.bf16.gmra.mrb[88].mxu0 %v2585_v51 }
 0x5d0   : > { %v2539_v53 = vadd.bf16 %v6487_v25, %v2486_v50  ;;  %v5473_v25 = vld [vmem:[#allocation11 + $0x404] ss:$8 sps:$4 sm:$0xff]  }
 0x5d1   : > { %v2540_v54 = vadd.bf16 %v6490_v27, %v2487_v52  ;;  %3634 = vmatprep.subr.bf16.mxu0 %v5473_v25  ;;  %v5474_v27 = vld [vmem:[#allocation11 + $0x410] ss:$8 sps:$4 sm:$0xff]  }
 0x5d2   : > { %v2571_v56 = vmul.bf16 1009007652, %v2539_v53  ;;  %vm2555_vm7 = vcmp.gt.bf16.partialorder %v2539_v53, 0  ;;  %3635 = vmatpush1.bf16.msra.mxu0 %v5471_v1 }
 0x5d3   : > { %vm2556_vm6 = vcmp.gt.bf16.partialorder %v2540_v54, 0  ;;  %v2572_v58 = vmul.bf16 1009007652, %v2540_v54  ;;  %3636 = vmatprep.subr.bf16.mxu0 %v5476_v2 }
 0x5d4   : > { %v2587_v60 = vsel %vm2555_vm7, %v2539_v53, %v2571_v56 }
 0x5d5   : > { %v2588_v59 = vsel %vm2556_vm6, %v2540_v54, %v2572_v58 }
 0x5d6   : > { %2886 = vmatprep.mubr.bf16.mxu0 %v2588_v59  ;;  %3637 = vmatpush1.bf16.msra.mxu0 %v5474_v27 }
 0x5d7   : > { %2887 = vmatmul.mubr.bf16.gmra.mrb[92].mxu0 %v2587_v60  ;;  %3638 = vmatprep.subr.bf16.mxu0 %v5479_v4 }
 0x5da   : > { %3639 = vmatpush1.bf16.msra.mxu0 %v5477_v6 }
 0x5db   : > { %3640 = vmatprep.subr.bf16.mxu0 %v5482_v8 }
 0x5de   : > { %3641 = vmatpush1.bf16.msra.mxu0 %v5480_v16 }
 0x5df   : > { %3642 = vmatprep.subr.bf16.mxu0 %v5485_v9 }
 0x5e2   : > { %3643 = vmatpush1.bf16.msra.mxu0 %v5483_v11 }
 0x5e3   : > { %3644 = vmatprep.subr.bf16.mxu0 %v5488_v13 }
 0x5e6   : > { %3645 = vmatpush1.bf16.msra.mxu0 %v5486_v14 }
 0x5e7   : > { %3646 = vmatprep.subr.bf16.mxu0 %v5491_v15 }
 0x5ea   : > { %3647 = vmatpush1.bf16.msra.mxu0 %v5489_v17 }
 0x5eb   : > { %3648 = vmatprep.subr.bf16.mxu0 %v5494_v19 }
 0x5ee   : > { %3649 = vmatpush1.bf16.msra.mxu0 %v5492_v20 }
 0x5ef   : > { %3650 = vmatprep.subr.bf16.mxu0 %v5497_v21 }
 0x5f2   : > { %3651 = vmatpush1.bf16.msra.mxu0 %v5495_v22 }
 0x5f3   : > { %3652 = vmatprep.subr.bf16.mxu0 %v5500_v5 }
 0x5f6   : > { %3653 = vmatpush1.bf16.msra.mxu0 %v5498_v44 }
 0x5f7   : > { %3654 = vmatprep.subr.bf16.mxu0 %v5503_v23 }
 0x5fa   : > { %3655 = vmatpush1.bf16.msra.mxu0 %v5501_v24 }
 0x5fb   : > { %3656 = vmatprep.subr.bf16.mxu0 %v5506_v26 }
 0x5fe   : > { %3657 = vmatpush1.bf16.msra.mxu0 %v5504_v28 }
 0x5ff   : > { %3658 = vmatprep.subr.bf16.mxu0 %v5509_v29 }
 0x602   : > { %3659 = vmatpush1.bf16.msra.mxu0 %v5507_v31 }
 0x603   : > { %3660 = vmatprep.subr.bf16.mxu0 %v5512_v32 }
 0x606   : > { %3661 = vmatpush1.bf16.msra.mxu0 %v5510_v34 }
 0x672   : > { %v2818_v37 = vpop.f32.mrb[64].mxu0 }
 0x673   : > { %v2820_v38 = vpop.f32.mrb[65].mxu0 }
 0x674   : > { %v2822_v40 = vpop.f32.mrb[66].mxu0 }
 0x675   : > { %v2897_v42 = vpack.c.bf16 %v2822_v40, %v2818_v37  ;;  %v2824_v43 = vpop.f32.mrb[67].mxu0 }
 0x676   : > { %v2898_v45 = vpack.c.bf16 %v2824_v43, %v2820_v38 }
 0x677   : > { %v2950_v46 = vadd.bf16 %v6514_v39, %v2897_v42 }
 0x678   : > { %v2951_v47 = vadd.bf16 %v6517_v41, %v2898_v45 }
 0x679   : > { %v2982_v48 = vmul.bf16 1009007652, %v2950_v46  ;;  %vm2966_vm8 = vcmp.gt.bf16.partialorder %v2950_v46, 0 }
 0x67a   : > { %v2828_v49 = vpop.f32.mrb[68].mxu0  ;;  %vm2967_vm9 = vcmp.gt.bf16.partialorder %v2951_v47, 0  ;;  %v2983_v18 = vmul.bf16 1009007652, %v2951_v47 }
 0x67b   : > { %v2830_v50 = vpop.f32.mrb[69].mxu0  ;;  %v2998_v54 = vsel %vm2966_vm8, %v2950_v46, %v2982_v48 }
 0x67c   : > { %v2832_v10 = vpop.f32.mrb[70].mxu0  ;;  %v2999_v51 = vsel %vm2967_vm9, %v2951_v47, %v2983_v18 }
 0x67d   : > { %v2899_v52 = vpack.c.bf16 %v2832_v10, %v2828_v49  ;;  %v2834_v53 = vpop.f32.mrb[71].mxu0  ;;  %3241 = vmatprep.mubr.bf16.mxu1 %v2999_v51 }
 0x67e   : > { %v2900_v56 = vpack.c.bf16 %v2834_v53, %v2830_v50  ;;  %3242 = vmatmul.mubr.bf16.vlgmr.msra.gmra.mrb[96].mxu1 %v2998_v54 }
 0x67f   : > { %v2952_v58 = vadd.bf16 %v6514_v39, %v2899_v52 }
 0x680   : > { %v2953_v59 = vadd.bf16 %v6517_v41, %v2900_v56 }
 0x681   : > { %v2984_v60 = vmul.bf16 1009007652, %v2952_v58  ;;  %vm2968_vm11 = vcmp.gt.bf16.partialorder %v2952_v58, 0 }
 0x682   : > { %v2838_v61 = vpop.f32.mrb[72].mxu0  ;;  %vm2969_vm10 = vcmp.gt.bf16.partialorder %v2953_v59, 0  ;;  %v2985_v62 = vmul.bf16 1009007652, %v2953_v59 }
 0x683   : > { %v2840_v63 = vpop.f32.mrb[73].mxu0  ;;  %v3000_v27 = vsel %vm2968_vm11, %v2952_v58, %v2984_v60 }
 0x684   : > { %v2842_v0 = vpop.f32.mrb[74].mxu0  ;;  %v3001_v1 = vsel %vm2969_vm10, %v2953_v59, %v2985_v62 }
 0x685   : > { %v2901_v25 = vpack.c.bf16 %v2842_v0, %v2838_v61  ;;  %v2844_v2 = vpop.f32.mrb[75].mxu0  ;;  %3251 = vmatprep.mubr.bf16.mxu1 %v3001_v1 }
 0x686   : > { %v2902_v4 = vpack.c.bf16 %v2844_v2, %v2840_v63  ;;  %3252 = vmatmul.mubr.bf16.gmra.mrb[100].mxu1 %v3000_v27 }
 0x687   : > { %v2954_v6 = vadd.bf16 %v6514_v39, %v2901_v25 }
 0x688   : > { %v2955_v8 = vadd.bf16 %v6517_v41, %v2902_v4 }
 0x689   : > { %v2986_v16 = vmul.bf16 1009007652, %v2954_v6  ;;  %vm2970_vm13 = vcmp.gt.bf16.partialorder %v2954_v6, 0 }
 0x68a   : > { %v2848_v9 = vpop.f32.mrb[76].mxu0  ;;  %vm2971_vm12 = vcmp.gt.bf16.partialorder %v2955_v8, 0  ;;  %v2987_v11 = vmul.bf16 1009007652, %v2955_v8 }
 0x68b   : > { %v2850_v13 = vpop.f32.mrb[77].mxu0  ;;  %v3002_v20 = vsel %vm2970_vm13, %v2954_v6, %v2986_v16 }
 0x68c   : > { %v2852_v14 = vpop.f32.mrb[78].mxu0  ;;  %v3003_v15 = vsel %vm2971_vm12, %v2955_v8, %v2987_v11 }
 0x68d   : > { %v2903_v17 = vpack.c.bf16 %v2852_v14, %v2848_v9  ;;  %v2854_v19 = vpop.f32.mrb[79].mxu0  ;;  %3261 = vmatprep.mubr.bf16.mxu1 %v3003_v15  ;;  %v5515_v15 = vld [vmem:[#allocation11 + $0x4e4] ss:$8 sps:$4 sm:$0xff]  }
 0x68e   : > { %v2904_v21 = vpack.c.bf16 %v2854_v19, %v2850_v13  ;;  %3262 = vmatmul.mubr.bf16.gmra.mrb[104].mxu1 %v3002_v20  ;;  %3662 = vmatprep.subr.bf16.mxu0 %v5515_v15  ;;  %v5518_v19 = vld [vmem:[#allocation11 + $0x4f4] ss:$8 sps:$4 sm:$0xff]   ;;  %v5516_v20 = vld [vmem:[#allocation11 + $0x4f0] ss:$8 sps:$4 sm:$0xff]  }
 0x68f   : > { %v2956_v22 = vadd.bf16 %v6514_v39, %v2903_v17  ;;  %v5513_v17 = vld [vmem:[#allocation11 + $0x4e0] ss:$8 sps:$4 sm:$0xff]  }
 0x690   : > { %v2957_v5 = vadd.bf16 %v6517_v41, %v2904_v21  ;;  %3663 = vmatpush1.bf16.msra.mxu0 %v5513_v17  ;;  %v5519_v21 = vld [vmem:[#allocation13 + $0x40] sm:$0xff]  }
 0x691   : > { %v2988_v44 = vmul.bf16 1009007652, %v2956_v22  ;;  %vm2972_vm15 = vcmp.gt.bf16.partialorder %v2956_v22, 0  ;;  %3664 = vmatprep.subr.bf16.mxu0 %v5518_v19  ;;  %5033 = vmatprep.subr.bf16.mxu1 %v5519_v21 }
 0x692   : > { %v2858_v23 = vpop.f32.mrb[80].mxu0  ;;  %vm2973_vm14 = vcmp.gt.bf16.partialorder %v2957_v5, 0  ;;  %v2989_v24 = vmul.bf16 1009007652, %v2957_v5 }
 0x693   : > { %v2860_v26 = vpop.f32.mrb[81].mxu0  ;;  %v3004_v32 = vsel %vm2972_vm15, %v2956_v22, %v2988_v44  ;;  %v5522_v22 = vld [vmem:[#allocation13 + $0x8] sm:$0xff]   ;;  %v5524_v44 = vld [vmem:[#allocation13 + $0x10] sm:$0xff]  }
 0x694   : > { %v2862_v28 = vpop.f32.mrb[82].mxu0  ;;  %v3005_v29 = vsel %vm2973_vm14, %v2957_v5, %v2989_v24  ;;  %3665 = vmatpush1.bf16.msra.mxu0 %v5516_v20  ;;  %v5523_v5 = vld [vmem:[#allocation13 + $0x50] sm:$0xff]   ;;  %v6535_v24 = vld [vmem:[#allocation13 + $0x18] sm:$0xff]  }
 0x695   : > { %v2905_v30 = vpack.c.bf16 %v2862_v28, %v2858_v23  ;;  %v2864_v31 = vpop.f32.mrb[83].mxu0  ;;  %3271 = vmatprep.mubr.bf16.mxu1 %v3005_v29  ;;  %4969 = vmatprep.subr.bf16.mxu0 %v5519_v21  ;;  %v5525_v23 = vld [vmem:[#allocation13 + $0x58] sm:$0xff]   ;;  %v6541_v28 = vld [vmem:[#allocation13 + $0x20] sm:$0xff]  }
 0x696   : > { %v2906_v33 = vpack.c.bf16 %v2864_v31, %v2860_v26  ;;  %3272 = vmatmul.mubr.bf16.gmra.mrb[108].mxu1 %v3004_v32  ;;  %v6537_v26 = vld [vmem:[#allocation13 + $0x60] sm:$0xff]  }
 0x697   : > { %v2958_v34 = vadd.bf16 %v6514_v39, %v2905_v30  ;;  %v4828_v29 = vld.sshfl [vmem:[%s7073_s10 + $0x6] sm:$0x11 pattern:$0x75316420] }
 0x698   : > { %v2959_v55 = vadd.bf16 %v6517_v41, %v2906_v33  ;;  %v3346_v30 = vcombine.high %v4828_v29, %v4828_v29  ;;  %v3353_v31 = vrot.slane %v4828_v29, %v6369_v7 }
 0x699   : > { %v2990_v35 = vmul.bf16 1009007652, %v2958_v34  ;;  %vm2974_vm1 = vcmp.gt.bf16.partialorder %v2958_v34, 0 }
 0x69a   : > { %v2868_v57 = vpop.f32.mrb[84].mxu0  ;;  %vm2975_vm0 = vcmp.gt.bf16.partialorder %v2959_v55, 0  ;;  %v2991_v36 = vmul.bf16 1009007652, %v2959_v55  ;;  %v3360_v32 = vrot.slane %v3346_v30, %v6369_v7  ;;  %v3362_v33 = vpack.i.b16 %v3353_v31, %v3353_v31 }
 0x69b   : > { %v2870_v37 = vpop.f32.mrb[85].mxu0  ;;  %v3006_v45 = vsel %vm2974_vm1, %v2958_v34, %v2990_v35 }
 0x69c   : > { %v2872_v38 = vpop.f32.mrb[86].mxu0  ;;  %v3007_v40 = vsel %vm2975_vm0, %v2959_v55, %v2991_v36  ;;  %v3369_v34 = vpack.i.b16 %v3360_v32, %v3360_v32 }
 0x69d   : > { %v2907_v42 = vpack.c.bf16 %v2872_v38, %v2868_v57  ;;  %v2874_v43 = vpop.f32.mrb[87].mxu0  ;;  %3281 = vmatprep.mubr.bf16.mxu1 %v3007_v40  ;;  %v6550_v57 = vrot.slane %v3362_v33, %v6373_v12 }
 0x69e   : > { %v2908_v46 = vpack.c.bf16 %v2874_v43, %v2870_v37  ;;  %3282 = vmatmul.mubr.bf16.gmra.mrb[112].mxu1 %v3006_v45  ;;  %v6553_v37 = vrot.slane %v3369_v34, %v6373_v12 }
 0x69f   : > { %v2960_v47 = vadd.bf16 %v6514_v39, %v2907_v42 }
 0x6a0   : > { %v2961_v48 = vadd.bf16 %v6517_v41, %v2908_v46 }
 0x6a1   : > { %v2992_v49 = vmul.bf16 1009007652, %v2960_v47  ;;  %vm2976_vm3 = vcmp.gt.bf16.partialorder %v2960_v47, 0 }
 0x6a2   : > { %v2878_v18 = vpop.f32.mrb[88].mxu0  ;;  %vm2977_vm2 = vcmp.gt.bf16.partialorder %v2961_v48, 0  ;;  %v2993_v50 = vmul.bf16 1009007652, %v2961_v48 }
 0x6a3   : > { %v2880_v10 = vpop.f32.mrb[89].mxu0  ;;  %v3008_v56 = vsel %vm2976_vm3, %v2960_v47, %v2992_v49 }
 0x6a4   : > { %v2882_v51 = vpop.f32.mrb[90].mxu0  ;;  %v3009_v52 = vsel %vm2977_vm2, %v2961_v48, %v2993_v50 }
 0x6a5   : > { %v2909_v53 = vpack.c.bf16 %v2882_v51, %v2878_v18  ;;  %v2884_v54 = vpop.f32.mrb[91].mxu0  ;;  %3291 = vmatprep.mubr.bf16.mxu1 %v3009_v52 }
 0x6a6   : > { %v2910_v58 = vpack.c.bf16 %v2884_v54, %v2880_v10  ;;  %3292 = vmatmul.mubr.bf16.gmra.mrb[116].mxu1 %v3008_v56 }
 0x6a7   : > { %v2962_v59 = vadd.bf16 %v6514_v39, %v2909_v53 }
 0x6a8   : > { %v2963_v60 = vadd.bf16 %v6517_v41, %v2910_v58 }
 0x6a9   : > { %v2994_v61 = vmul.bf16 1009007652, %v2962_v59  ;;  %vm2978_vm5 = vcmp.gt.bf16.partialorder %v2962_v59, 0 }
 0x6aa   : > { %v2888_v62 = vpop.f32.mrb[92].mxu0  ;;  %vm2979_vm4 = vcmp.gt.bf16.partialorder %v2963_v60, 0  ;;  %v2995_v63 = vmul.bf16 1009007652, %v2963_v60 }
 0x6ab   : > { %v2890_v0 = vpop.f32.mrb[93].mxu0  ;;  %v3010_v4 = vsel %vm2978_vm5, %v2962_v59, %v2994_v61 }
 0x6ac   : > { %v2892_v1 = vpop.f32.mrb[94].mxu0  ;;  %v3011_v25 = vsel %vm2979_vm4, %v2963_v60, %v2995_v63 }
 0x6ad   : > { %v2911_v2 = vpack.c.bf16 %v2892_v1, %v2888_v62  ;;  %v2894_v27 = vpop.f32.mrb[95].mxu0  ;;  %3301 = vmatprep.mubr.bf16.mxu1 %v3011_v25 }
 0x6ae   : > { %v2912_v6 = vpack.c.bf16 %v2894_v27, %v2890_v0  ;;  %3302 = vmatmul.mubr.bf16.gmra.mrb[120].mxu1 %v3010_v4 }
 0x6af   : > { %v2964_v8 = vadd.bf16 %v6514_v39, %v2911_v2  ;;  %v5520_v39 = vld [vmem:[#allocation13] sm:$0xff]  }
 0x6b0   : > { %v2965_v16 = vadd.bf16 %v6517_v41, %v2912_v6  ;;  %v5521_v41 = vld [vmem:[#allocation13 + $0x48] sm:$0xff]   ;;  %5041 = vmatpush3.bf16.msra.mxu1 %v5520_v39 }
 0x6b1   : > { %v2996_v9 = vmul.bf16 1009007652, %v2964_v8  ;;  %vm2980_vm7 = vcmp.gt.bf16.partialorder %v2964_v8, 0  ;;  %5034 = vmatprep.subr.bf16.mxu1 %v5521_v41 }
 0x6b2   : > { %vm2981_vm6 = vcmp.gt.bf16.partialorder %v2965_v16, 0  ;;  %v2997_v11 = vmul.bf16 1009007652, %v2965_v16 }
 0x6b3   : > { %v3012_v14 = vsel %vm2980_vm7, %v2964_v8, %v2996_v9 }
 0x6b4   : > { %v3013_v13 = vsel %vm2981_vm6, %v2965_v16, %v2997_v11  ;;  %5042 = vmatpush3.bf16.msra.mxu1 %v5522_v22 }
 0x6b5   : > { %3311 = vmatprep.mubr.bf16.mxu1 %v3013_v13  ;;  %5035 = vmatprep.subr.bf16.mxu1 %v5523_v5 }
 0x6b6   : > { %3312 = vmatmul.mubr.bf16.gmra.mrb[124].mxu1 %v3012_v14 }
 0x6b8   : > { %5043 = vmatpush3.bf16.msra.mxu1 %v5524_v44 }
 0x6b9   : > { %5036 = vmatprep.subr.bf16.mxu1 %v5525_v23 }
 0x6bc   : > { %5044 = vmatpush3.bf16.msra.mxu1 %v6535_v24 }
 0x6bd   : > { %5037 = vmatprep.subr.bf16.mxu1 %v6537_v26 }
 0x6c0   : > { %5045 = vmatpush3.bf16.msra.mxu1 %v6541_v28 }
 0x751   : > { %v3243_v55 = vpop.f32.mrb[96].mxu1 }
 0x752   : > { %v3245_v35 = vpop.f32.mrb[97].mxu1 }
 0x753   : > { %v3247_v36 = vpop.f32.mrb[98].mxu1 }
 0x754   : > { %v3322_v38 = vpack.c.bf16 %v3247_v36, %v3243_v55  ;;  %v3249_v40 = vpop.f32.mrb[99].mxu1 }
 0x755   : > { %v3323_v42 = vpack.c.bf16 %v3249_v40, %v3245_v35 }
 0x756   : > { %v3375_v43 = vadd.bf16 %v6550_v57, %v3322_v38 }
 0x757   : > { %v3376_v45 = vadd.bf16 %v6553_v37, %v3323_v42 }
 0x758   : > { %v3407_v46 = vmul.bf16 1009007652, %v3375_v43  ;;  %vm3391_vm8 = vcmp.gt.bf16.partialorder %v3375_v43, 0 }
 0x759   : > { %v3253_v47 = vpop.f32.mrb[100].mxu1  ;;  %vm3392_vm9 = vcmp.gt.bf16.partialorder %v3376_v45, 0  ;;  %v3408_v48 = vmul.bf16 1009007652, %v3376_v45 }
 0x75a   : > { %v3255_v49 = vpop.f32.mrb[101].mxu1  ;;  %v3423_v52 = vsel %vm3391_vm8, %v3375_v43, %v3407_v46 }
 0x75b   : > { %v3257_v18 = vpop.f32.mrb[102].mxu1  ;;  %v3424_v50 = vsel %vm3392_vm9, %v3376_v45, %v3408_v48 }
 0x75c   : > { %v3324_v10 = vpack.c.bf16 %v3257_v18, %v3253_v47  ;;  %v3259_v51 = vpop.f32.mrb[103].mxu1  ;;  %3666 = vmatprep.mubr.bf16.mxu0 %v3424_v50 }
 0x75d   : > { %v3325_v53 = vpack.c.bf16 %v3259_v51, %v3255_v49  ;;  %3667 = vmatmul.mubr.bf16.vlgmr.msra.gmra.mrb[96].mxu0 %v3423_v52 }
 0x75e   : > { %v3377_v54 = vadd.bf16 %v6550_v57, %v3324_v10  ;;  %4970 = vmatpush3.bf16.msra.mxu0 %v5520_v39 }
 0x75f   : > { %v3378_v56 = vadd.bf16 %v6553_v37, %v3325_v53  ;;  %4971 = vmatprep.subr.bf16.mxu0 %v5521_v41 }
 0x760   : > { %v3409_v58 = vmul.bf16 1009007652, %v3377_v54  ;;  %vm3393_vm11 = vcmp.gt.bf16.partialorder %v3377_v54, 0 }
 0x761   : > { %v3263_v59 = vpop.f32.mrb[104].mxu1  ;;  %vm3394_vm10 = vcmp.gt.bf16.partialorder %v3378_v56, 0  ;;  %v3410_v60 = vmul.bf16 1009007652, %v3378_v56 }
 0x762   : > { %v3265_v61 = vpop.f32.mrb[105].mxu1  ;;  %4972 = vmatpush3.bf16.msra.mxu0 %v5522_v22  ;;  %v3425_v25 = vsel %vm3393_vm11, %v3377_v54, %v3409_v58 }
 0x763   : > { %v3267_v62 = vpop.f32.mrb[106].mxu1  ;;  %v3426_v63 = vsel %vm3394_vm10, %v3378_v56, %v3410_v60  ;;  %4973 = vmatprep.subr.bf16.mxu0 %v5523_v5 }
 0x764   : > { %v3326_v0 = vpack.c.bf16 %v3267_v62, %v3263_v59  ;;  %v3269_v1 = vpop.f32.mrb[107].mxu1  ;;  %3676 = vmatprep.mubr.bf16.mxu0 %v3426_v63 }
 0x765   : > { %v3327_v2 = vpack.c.bf16 %v3269_v1, %v3265_v61  ;;  %3677 = vmatmul.mubr.bf16.gmra.mrb[100].mxu0 %v3425_v25 }
 0x766   : > { %v3379_v27 = vadd.bf16 %v6550_v57, %v3326_v0  ;;  %4974 = vmatpush3.bf16.msra.mxu0 %v5524_v44 }
 0x767   : > { %v3380_v4 = vadd.bf16 %v6553_v37, %v3327_v2  ;;  %4975 = vmatprep.subr.bf16.mxu0 %v5525_v23 }
 0x768   : > { %v3411_v6 = vmul.bf16 1009007652, %v3379_v27  ;;  %vm3395_vm13 = vcmp.gt.bf16.partialorder %v3379_v27, 0 }
 0x769   : > { %v3273_v8 = vpop.f32.mrb[108].mxu1  ;;  %vm3396_vm12 = vcmp.gt.bf16.partialorder %v3380_v4, 0  ;;  %v3412_v16 = vmul.bf16 1009007652, %v3380_v4 }
 0x76a   : > { %v3275_v9 = vpop.f32.mrb[109].mxu1  ;;  %4976 = vmatpush3.bf16.msra.mxu0 %v6535_v24  ;;  %v3427_v17 = vsel %vm3395_vm13, %v3379_v27, %v3411_v6 }
 0x76b   : > { %v3277_v11 = vpop.f32.mrb[110].mxu1  ;;  %v3428_v13 = vsel %vm3396_vm12, %v3380_v4, %v3412_v16  ;;  %4977 = vmatprep.subr.bf16.mxu0 %v6537_v26 }
 0x76c   : > { %v3328_v14 = vpack.c.bf16 %v3277_v11, %v3273_v8  ;;  %v3279_v15 = vpop.f32.mrb[111].mxu1  ;;  %3686 = vmatprep.mubr.bf16.mxu0 %v3428_v13  ;;  %v5529_v13 = vld [vmem:[#allocation13 + $0x68] sm:$0xff]  }
 0x76d   : > { %v3329_v19 = vpack.c.bf16 %v3279_v15, %v3275_v9  ;;  %3687 = vmatmul.mubr.bf16.gmra.mrb[104].mxu0 %v3427_v17  ;;  %5038 = vmatprep.subr.bf16.mxu1 %v5529_v13  ;;  %v5531_v15 = vld [vmem:[#allocation13 + $0x70] sm:$0xff]  }
 0x76e   : > { %v3381_v20 = vadd.bf16 %v6550_v57, %v3328_v14  ;;  %4978 = vmatpush3.bf16.msra.mxu0 %v6541_v28  ;;  %v5530_v14 = vld [vmem:[#allocation13 + $0x28] sm:$0xff]   ;;  %v5532_v17 = vld [vmem:[#allocation13 + $0x30] sm:$0xff]  }
 0x76f   : > { %v3382_v21 = vadd.bf16 %v6553_v37, %v3329_v19  ;;  %4979 = vmatprep.subr.bf16.mxu0 %v5529_v13  ;;  %5046 = vmatpush3.bf16.msra.mxu1 %v5530_v14  ;;  %v4862_v19 = vld.sshfl [vmem:[%s7073_s10 + $0x8] sm:$0x11 pattern:$0x75316420] }
 0x770   : > { %v3413_v39 = vmul.bf16 1009007652, %v3381_v20  ;;  %vm3397_vm15 = vcmp.gt.bf16.partialorder %v3381_v20, 0  ;;  %5039 = vmatprep.subr.bf16.mxu1 %v5531_v15 }
 0x771   : > { %v3283_v41 = vpop.f32.mrb[112].mxu1  ;;  %vm3398_vm14 = vcmp.gt.bf16.partialorder %v3382_v21, 0  ;;  %v3414_v22 = vmul.bf16 1009007652, %v3382_v21 }
 0x772   : > { %v3285_v5 = vpop.f32.mrb[113].mxu1  ;;  %v3429_v29 = vsel %vm3397_vm15, %v3381_v20, %v3413_v39  ;;  %4980 = vmatpush3.bf16.msra.mxu0 %v5530_v14  ;;  %v3771_v20 = vcombine.high %v4862_v19, %v4862_v19 }
 0x773   : > { %v3287_v44 = vpop.f32.mrb[114].mxu1  ;;  %v3430_v23 = vsel %vm3398_vm14, %v3382_v21, %v3414_v22  ;;  %4981 = vmatprep.subr.bf16.mxu0 %v5531_v15  ;;  %5047 = vmatpush3.bf16.msra.mxu1 %v5532_v17  ;;  %v3778_v21 = vrot.slane %v4862_v19, %v6369_v7 }
 0x774   : > { %v3330_v24 = vpack.c.bf16 %v3287_v44, %v3283_v41  ;;  %v3289_v26 = vpop.f32.mrb[115].mxu1  ;;  %3696 = vmatprep.mubr.bf16.mxu0 %v3430_v23  ;;  %v3785_v39 = vrot.slane %v3771_v20, %v6369_v7 }
 0x775   : > { %v3331_v30 = vpack.c.bf16 %v3289_v26, %v3285_v5  ;;  %3697 = vmatmul.mubr.bf16.gmra.mrb[108].mxu0 %v3429_v29  ;;  %v3787_v41 = vpack.i.b16 %v3778_v21, %v3778_v21 }
 0x776   : > { %v3383_v31 = vadd.bf16 %v6550_v57, %v3330_v24  ;;  %4982 = vmatpush3.bf16.msra.mxu0 %v5532_v17  ;;  %v3794_v22 = vpack.i.b16 %v3785_v39, %v3785_v39 }
 0x777   : > { %v3384_v28 = vadd.bf16 %v6553_v37, %v3331_v30  ;;  %v6580_v23 = vrot.slane %v3787_v41, %v6373_v12 }
 0x778   : > { %v3415_v32 = vmul.bf16 1009007652, %v3383_v31  ;;  %vm3399_vm1 = vcmp.gt.bf16.partialorder %v3383_v31, 0  ;;  %v6583_v26 = vrot.slane %v3794_v22, %v6373_v12 }
 0x779   : > { %v3293_v33 = vpop.f32.mrb[116].mxu1  ;;  %vm3400_vm0 = vcmp.gt.bf16.partialorder %v3384_v28, 0  ;;  %v3416_v34 = vmul.bf16 1009007652, %v3384_v28 }
 0x77a   : > { %v3295_v55 = vpop.f32.mrb[117].mxu1  ;;  %v3431_v42 = vsel %vm3399_vm1, %v3383_v31, %v3415_v32 }
 0x77b   : > { %v3297_v35 = vpop.f32.mrb[118].mxu1  ;;  %v3432_v36 = vsel %vm3400_vm0, %v3384_v28, %v3416_v34 }
 0x77c   : > { %v3332_v38 = vpack.c.bf16 %v3297_v35, %v3293_v33  ;;  %v3299_v40 = vpop.f32.mrb[119].mxu1  ;;  %3706 = vmatprep.mubr.bf16.mxu0 %v3432_v36 }
 0x77d   : > { %v3333_v43 = vpack.c.bf16 %v3299_v40, %v3295_v55  ;;  %3707 = vmatmul.mubr.bf16.gmra.mrb[112].mxu0 %v3431_v42 }
 0x77e   : > { %v3385_v45 = vadd.bf16 %v6550_v57, %v3332_v38 }
 0x77f   : > { %v3386_v46 = vadd.bf16 %v6553_v37, %v3333_v43 }
 0x780   : > { %v3417_v47 = vmul.bf16 1009007652, %v3385_v45  ;;  %vm3401_vm3 = vcmp.gt.bf16.partialorder %v3385_v45, 0 }
 0x781   : > { %v3303_v48 = vpop.f32.mrb[120].mxu1  ;;  %vm3402_vm2 = vcmp.gt.bf16.partialorder %v3386_v46, 0  ;;  %v3418_v49 = vmul.bf16 1009007652, %v3386_v46 }
 0x782   : > { %v3305_v18 = vpop.f32.mrb[121].mxu1  ;;  %v3433_v53 = vsel %vm3401_vm3, %v3385_v45, %v3417_v47 }
 0x783   : > { %v3307_v50 = vpop.f32.mrb[122].mxu1  ;;  %v3434_v10 = vsel %vm3402_vm2, %v3386_v46, %v3418_v49 }
 0x784   : > { %v3334_v51 = vpack.c.bf16 %v3307_v50, %v3303_v48  ;;  %v3309_v52 = vpop.f32.mrb[123].mxu1  ;;  %3716 = vmatprep.mubr.bf16.mxu0 %v3434_v10 }
 0x785   : > { %v3335_v54 = vpack.c.bf16 %v3309_v52, %v3305_v18  ;;  %3717 = vmatmul.mubr.bf16.gmra.mrb[116].mxu0 %v3433_v53 }
 0x786   : > { %v3387_v56 = vadd.bf16 %v6550_v57, %v3334_v51 }
 0x787   : > { %v3388_v58 = vadd.bf16 %v6553_v37, %v3335_v54 }
 0x788   : > { %v3419_v59 = vmul.bf16 1009007652, %v3387_v56  ;;  %vm3403_vm5 = vcmp.gt.bf16.partialorder %v3387_v56, 0 }
 0x789   : > { %v3313_v60 = vpop.f32.mrb[124].mxu1  ;;  %vm3404_vm4 = vcmp.gt.bf16.partialorder %v3388_v58, 0  ;;  %v3420_v61 = vmul.bf16 1009007652, %v3388_v58 }
 0x78a   : > { %v3315_v62 = vpop.f32.mrb[125].mxu1  ;;  %v3435_v2 = vsel %vm3403_vm5, %v3387_v56, %v3419_v59 }
 0x78b   : > { %v3317_v63 = vpop.f32.mrb[126].mxu1  ;;  %v3436_v0 = vsel %vm3404_vm4, %v3388_v58, %v3420_v61 }
 0x78c   : > { %v3336_v1 = vpack.c.bf16 %v3317_v63, %v3313_v60  ;;  %v3319_v25 = vpop.f32.mrb[127].mxu1  ;;  %3726 = vmatprep.mubr.bf16.mxu0 %v3436_v0 }
 0x78d   : > { %v3337_v27 = vpack.c.bf16 %v3319_v25, %v3315_v62  ;;  %3727 = vmatmul.mubr.bf16.gmra.mrb[120].mxu0 %v3435_v2 }
 0x78e   : > { %v3389_v4 = vadd.bf16 %v6550_v57, %v3336_v1  ;;  %v5533_v57 = vld [vmem:[#allocation13 + $0x78] sm:$0xff]  }
 0x78f   : > { %v3390_v6 = vadd.bf16 %v6553_v37, %v3337_v27  ;;  %v5534_v37 = vld [vmem:[#allocation13 + $0x38] sm:$0xff]   ;;  %4983 = vmatprep.subr.bf16.mxu0 %v5533_v57  ;;  %5040 = vmatprep.subr.bf16.mxu1 %v5533_v57 }
 0x790   : > { %v3421_v8 = vmul.bf16 1009007652, %v3389_v4  ;;  %vm3405_vm7 = vcmp.gt.bf16.partialorder %v3389_v4, 0  ;;  %4984 = vmatpush3.bf16.msra.mxu0 %v5534_v37  ;;  %5048 = vmatpush3.bf16.msra.mxu1 %v5534_v37 }
 0x791   : > { %vm3406_vm6 = vcmp.gt.bf16.partialorder %v3390_v6, 0  ;;  %v3422_v16 = vmul.bf16 1009007652, %v3390_v6 }
 0x792   : > { %v3437_v11 = vsel %vm3405_vm7, %v3389_v4, %v3421_v8 }
 0x793   : > { %v3438_v9 = vsel %vm3406_vm6, %v3390_v6, %v3422_v16 }
 0x794   : > { %3736 = vmatprep.mubr.bf16.mxu0 %v3438_v9 }
 0x795   : > { %3737 = vmatmul.mubr.bf16.gmra.mrb[124].mxu0 %v3437_v11 }
 0x830   : > { %v3668_v5 = vpop.f32.mrb[96].mxu0 }
 0x831   : > { %v3670_v44 = vpop.f32.mrb[97].mxu0 }
 0x832   : > { %v3672_v24 = vpop.f32.mrb[98].mxu0 }
 0x833   : > { %v3747_v29 = vpack.c.bf16 %v3672_v24, %v3668_v5  ;;  %v3674_v30 = vpop.f32.mrb[99].mxu0 }
 0x834   : > { %v3748_v31 = vpack.c.bf16 %v3674_v30, %v3670_v44 }
 0x835   : > { %v3800_v28 = vadd.bf16 %v6580_v23, %v3747_v29 }
 0x836   : > { %v3801_v32 = vadd.bf16 %v6583_v26, %v3748_v31 }
 0x837   : > { %v3832_v33 = vmul.bf16 1009007652, %v3800_v28  ;;  %vm3816_vm8 = vcmp.gt.bf16.partialorder %v3800_v28, 0 }
 0x838   : > { %v3678_v7 = vpop.f32.mrb[100].mxu0  ;;  %vm3817_vm9 = vcmp.gt.bf16.partialorder %v3801_v32, 0  ;;  %v3833_v34 = vmul.bf16 1009007652, %v3801_v32 }
 0x839   : > { %v3680_v55 = vpop.f32.mrb[101].mxu0  ;;  %v3848_v12 = vsel %vm3816_vm8, %v3800_v28, %v3832_v33 }
 0x83a   : > { %v3682_v35 = vpop.f32.mrb[102].mxu0  ;;  %v3849_v36 = vsel %vm3817_vm9, %v3801_v32, %v3833_v34 }
 0x83b   : > { %v3749_v38 = vpack.c.bf16 %v3682_v35, %v3678_v7  ;;  %v3684_v40 = vpop.f32.mrb[103].mxu0  ;;  %4031 = vmatprep.mubr.bf16.mxu0 %v3849_v36 }
 0x83c   : > { %v3750_v42 = vpack.c.bf16 %v3684_v40, %v3680_v55  ;;  %4032 = vmatmul.mubr.bf16.vlgmr.msra.gmra.mrb[128].mxu0 %v3848_v12 }
 0x83d   : > { %v3802_v43 = vadd.bf16 %v6580_v23, %v3749_v38 }
 0x83e   : > { %v3803_v45 = vadd.bf16 %v6583_v26, %v3750_v42 }
 0x83f   : > { %v3834_v46 = vmul.bf16 1009007652, %v3802_v43  ;;  %vm3818_vm11 = vcmp.gt.bf16.partialorder %v3802_v43, 0 }
 0x840   : > { %v3688_v47 = vpop.f32.mrb[104].mxu0  ;;  %vm3819_vm10 = vcmp.gt.bf16.partialorder %v3803_v45, 0  ;;  %v3835_v48 = vmul.bf16 1009007652, %v3803_v45 }
 0x841   : > { %v3690_v49 = vpop.f32.mrb[105].mxu0  ;;  %v3850_v52 = vsel %vm3818_vm11, %v3802_v43, %v3834_v46 }
 0x842   : > { %v3692_v18 = vpop.f32.mrb[106].mxu0  ;;  %v3851_v50 = vsel %vm3819_vm10, %v3803_v45, %v3835_v48 }
 0x843   : > { %v3751_v10 = vpack.c.bf16 %v3692_v18, %v3688_v47  ;;  %v3694_v51 = vpop.f32.mrb[107].mxu0  ;;  %4039 = vmatprep.mubr.bf16.mxu0 %v3851_v50 }
 0x844   : > { %v3752_v53 = vpack.c.bf16 %v3694_v51, %v3690_v49  ;;  %4040 = vmatmul.mubr.bf16.gmra.mrb[132].mxu0 %v3850_v52 }
 0x845   : > { %v3804_v54 = vadd.bf16 %v6580_v23, %v3751_v10 }
 0x846   : > { %v3805_v56 = vadd.bf16 %v6583_v26, %v3752_v53 }
 0x847   : > { %v3836_v58 = vmul.bf16 1009007652, %v3804_v54  ;;  %vm3820_vm12 = vcmp.gt.bf16.partialorder %v3804_v54, 0 }
 0x848   : > { %v3698_v59 = vpop.f32.mrb[108].mxu0  ;;  %vm3821_vm13 = vcmp.gt.bf16.partialorder %v3805_v56, 0  ;;  %v3837_v60 = vmul.bf16 1009007652, %v3805_v56 }
 0x849   : > { %v3700_v61 = vpop.f32.mrb[109].mxu0  ;;  %v3852_v25 = vsel %vm3820_vm12, %v3804_v54, %v3836_v58 }
 0x84a   : > { %v3702_v62 = vpop.f32.mrb[110].mxu0  ;;  %v3853_v63 = vsel %vm3821_vm13, %v3805_v56, %v3837_v60 }
 0x84b   : > { %v3753_v0 = vpack.c.bf16 %v3702_v62, %v3698_v59  ;;  %v3704_v1 = vpop.f32.mrb[111].mxu0  ;;  %4047 = vmatprep.mubr.bf16.mxu1 %v3853_v63  ;;  %v6607_v63 = vld [vmem:[%s7074_s14] ss:$0 sm:$0xff] }
 0x84c   : > { %v3754_v2 = vpack.c.bf16 %v3704_v1, %v3700_v61  ;;  %4048 = vmatmul.mubr.bf16.vlgmr.msra.gmra.mrb[128].mxu1 %v3852_v25  ;;  %v6602_v61 = vand.u32 127, %v980_v3 }
 0x84d   : > { %v3806_v27 = vadd.bf16 %v6580_v23, %v3753_v0 }
 0x84e   : > { %v3807_v4 = vadd.bf16 %v6583_v26, %v3754_v2  ;;  %vm4114_vm8 = vcmp.ge.s32.totalorder %v6602_v61, 5  ;;  %vm4115_vm9 = vcmp.lt.s32.totalorder %v6602_v61, 8  ;;  %vm4278_vm11 = vcmp.lt.s32.totalorder %v6602_v61, 5 }
 0x84f   : > { %v3838_v6 = vmul.bf16 1009007652, %v3806_v27  ;;  %vm3822_vm15 = vcmp.gt.bf16.partialorder %v3806_v27, 0  ;;  %vm6612_vm10 = vmand %vm4114_vm8, %vm4115_vm9  ;;  %vm4277_vm12 = vcmp.lt.s32.totalorder %v6602_v61, 4 }
 0x850   : > { %v3708_v8 = vpop.f32.mrb[112].mxu0  ;;  %vm3823_vm14 = vcmp.gt.bf16.partialorder %v3807_v4, 0  ;;  %v3839_v16 = vmul.bf16 1009007652, %v3807_v4 }
 0x851   : > { %v3710_v9 = vpop.f32.mrb[113].mxu0  ;;  %v3854_v17 = vsel %vm3822_vm15, %v3806_v27, %v3838_v6 }
 0x852   : > { %v3712_v11 = vpop.f32.mrb[114].mxu0  ;;  %v3855_v13 = vsel %vm3823_vm14, %v3807_v4, %v3839_v16 }
 0x853   : > { %v3755_v14 = vpack.c.bf16 %v3712_v11, %v3708_v8  ;;  %v3714_v15 = vpop.f32.mrb[115].mxu0  ;;  %4055 = vmatprep.mubr.bf16.mxu1 %v3855_v13 }
 0x854   : > { %v3756_v57 = vpack.c.bf16 %v3714_v15, %v3710_v9  ;;  %4056 = vmatmul.mubr.bf16.gmra.mrb[132].mxu1 %v3854_v17 }
 0x855   : > { %v3808_v37 = vadd.bf16 %v6580_v23, %v3755_v14 }
 0x856   : > { %v3809_v19 = vadd.bf16 %v6583_v26, %v3756_v57 }
 0x857   : > { %v3840_v20 = vmul.bf16 1009007652, %v3808_v37  ;;  %vm3824_vm1 = vcmp.gt.bf16.partialorder %v3808_v37, 0 }
 0x858   : > { %v3718_v21 = vpop.f32.mrb[116].mxu0  ;;  %vm3825_vm0 = vcmp.gt.bf16.partialorder %v3809_v19, 0  ;;  %v3841_v39 = vmul.bf16 1009007652, %v3809_v19 }
 0x859   : > { %v3720_v41 = vpop.f32.mrb[117].mxu0  ;;  %v3856_v29 = vsel %vm3824_vm1, %v3808_v37, %v3840_v20 }
 0x85a   : > { %v3722_v22 = vpop.f32.mrb[118].mxu0  ;;  %v3857_v5 = vsel %vm3825_vm0, %v3809_v19, %v3841_v39 }
 0x85b   : > { %v3757_v44 = vpack.c.bf16 %v3722_v22, %v3718_v21  ;;  %v3724_v24 = vpop.f32.mrb[119].mxu0  ;;  %4063 = vmatprep.mubr.bf16.mxu1 %v3857_v5 }
 0x85c   : > { %v3758_v30 = vpack.c.bf16 %v3724_v24, %v3720_v41  ;;  %4064 = vmatmul.mubr.bf16.gmra.mrb[136].mxu1 %v3856_v29 }
 0x85d   : > { %v3810_v31 = vadd.bf16 %v6580_v23, %v3757_v44 }
 0x85e   : > { %v3811_v28 = vadd.bf16 %v6583_v26, %v3758_v30 }
 0x85f   : > { %v3842_v32 = vmul.bf16 1009007652, %v3810_v31  ;;  %vm3826_vm3 = vcmp.gt.bf16.partialorder %v3810_v31, 0 }
 0x860   : > { %v3728_v33 = vpop.f32.mrb[120].mxu0  ;;  %vm3827_vm2 = vcmp.gt.bf16.partialorder %v3811_v28, 0  ;;  %v3843_v7 = vmul.bf16 1009007652, %v3811_v28 }
 0x861   : > { %v3730_v34 = vpop.f32.mrb[121].mxu0  ;;  %v3858_v40 = vsel %vm3826_vm3, %v3810_v31, %v3842_v32 }
 0x862   : > { %v3732_v55 = vpop.f32.mrb[122].mxu0  ;;  %v3859_v35 = vsel %vm3827_vm2, %v3811_v28, %v3843_v7 }
 0x863   : > { %v3759_v36 = vpack.c.bf16 %v3732_v55, %v3728_v33  ;;  %v3734_v38 = vpop.f32.mrb[123].mxu0  ;;  %4071 = vmatprep.mubr.bf16.mxu1 %v3859_v35 }
 0x864   : > { %v3760_v12 = vpack.c.bf16 %v3734_v38, %v3730_v34  ;;  %4072 = vmatmul.mubr.bf16.gmra.mrb[140].mxu1 %v3858_v40 }
 0x865   : > { %v3812_v42 = vadd.bf16 %v6580_v23, %v3759_v36 }
 0x866   : > { %v3813_v43 = vadd.bf16 %v6583_v26, %v3760_v12 }
 0x867   : > { %v3844_v45 = vmul.bf16 1009007652, %v3812_v42  ;;  %vm3828_vm5 = vcmp.gt.bf16.partialorder %v3812_v42, 0 }
 0x868   : > { %v3738_v46 = vpop.f32.mrb[124].mxu0  ;;  %vm3829_vm4 = vcmp.gt.bf16.partialorder %v3813_v43, 0  ;;  %v3845_v47 = vmul.bf16 1009007652, %v3813_v43 }
 0x869   : > { %v3740_v48 = vpop.f32.mrb[125].mxu0  ;;  %v3860_v51 = vsel %vm3828_vm5, %v3812_v42, %v3844_v45 }
 0x86a   : > { %v3742_v49 = vpop.f32.mrb[126].mxu0  ;;  %v3861_v18 = vsel %vm3829_vm4, %v3813_v43, %v3845_v47 }
 0x86b   : > { %v3761_v50 = vpack.c.bf16 %v3742_v49, %v3738_v46  ;;  %v3744_v10 = vpop.f32.mrb[127].mxu0  ;;  %4079 = vmatprep.mubr.bf16.mxu1 %v3861_v18 }
 0x86c   : > { %v3762_v52 = vpack.c.bf16 %v3744_v10, %v3740_v48  ;;  %4080 = vmatmul.mubr.bf16.gmra.mrb[144].mxu1 %v3860_v51 }
 0x86d   : > { %v3814_v53 = vadd.bf16 %v6580_v23, %v3761_v50 }
 0x86e   : > { %v3815_v54 = vadd.bf16 %v6583_v26, %v3762_v52 }
 0x86f   : > { %v3846_v56 = vmul.bf16 1009007652, %v3814_v53  ;;  %vm3830_vm7 = vcmp.gt.bf16.partialorder %v3814_v53, 0 }
 0x870   : > { %vm3831_vm6 = vcmp.gt.bf16.partialorder %v3815_v54, 0  ;;  %v3847_v58 = vmul.bf16 1009007652, %v3815_v54 }
 0x871   : > { %v3862_v60 = vsel %vm3830_vm7, %v3814_v53, %v3846_v56 }
 0x872   : > { %v3863_v59 = vsel %vm3831_vm6, %v3815_v54, %v3847_v58 }
 0x873   : > { %4087 = vmatprep.mubr.bf16.mxu1 %v3863_v59 }
 0x874   : > { %4088 = vmatmul.mubr.bf16.gmra.mrb[148].mxu1 %v3862_v60 }
 0x90f   : > { %v4985_v62 = vpop.f32.mrb[128].mxu0 }
 0x910   : > { %v4986_v23 = vpop.f32.mrb[129].mxu0 }
 0x911   : > { %v4987_v0 = vadd.f32 %v4986_v23, %v4985_v62  ;;  %v4988_v26 = vpop.f32.mrb[130].mxu0 }
 0x912   : > { %v4989_v1 = vpop.f32.mrb[131].mxu0 }
 0x913   : > { %v4034_v25 = vadd.f32 %v4987_v0, %v6607_v63  ;;  %v4990_v2 = vadd.f32 %v4989_v1, %v4988_v26 }
 0x915   : > { %v6616_v27 = vand.u32 2147483647, %v4034_v25  ;;  %v4037_v4 = vadd.f32 %v4990_v2, %v6607_v63 }
 0x917   : > { %v6619_v6 = vand.u32 2147483647, %v4037_v4  ;;  %v4991_v8 = vpop.f32.mrb[132].mxu0  ;;  %v6624_v16 = vsel %vm6612_vm10, %v6616_v27, -inf }
 0x918   : > { %v4992_v9 = vpop.f32.mrb[133].mxu0  ;;  %4133 = vmax.xlane.f32.xlu0 %v6624_v16 }
 0x919   : > { %v4993_v11 = vadd.f32 %v4992_v9, %v4991_v8  ;;  %v4994_v13 = vpop.f32.mrb[134].mxu0  ;;  %v6631_v57 = vsel %vm6612_vm10, %v6619_v6, -inf }
 0x91a   : > { %v4995_v14 = vpop.f32.mrb[135].mxu0 }
 0x91b   : > { %v4042_v15 = vadd.f32 %v4993_v11, %v6607_v63  ;;  %v4996_v17 = vadd.f32 %v4995_v14, %v4994_v13 }
 0x91c   : > { %4135 = vmax.xlane.f32.xlu0 %v6631_v57 }
 0x91d   : > { %v6634_v37 = vand.u32 2147483647, %v4042_v15  ;;  %v4045_v19 = vadd.f32 %v4996_v17, %v6607_v63 }
 0x91f   : > { %v6637_v20 = vand.u32 2147483647, %v4045_v19  ;;  %v4997_v21 = vpop.f32.mrb[128].mxu1  ;;  %v6642_v39 = vsel %vm6612_vm10, %v6634_v37, -inf }
 0x920   : > { %v4998_v41 = vpop.f32.mrb[129].mxu1  ;;  %4137 = vmax.xlane.f32.xlu1 %v6642_v39 }
 0x921   : > { %v4999_v22 = vadd.f32 %v4998_v41, %v4997_v21  ;;  %v5000_v5 = vpop.f32.mrb[130].mxu1  ;;  %v6649_v30 = vsel %vm6612_vm10, %v6637_v20, -inf }
 0x922   : > { %v5001_v44 = vpop.f32.mrb[131].mxu1 }
 0x923   : > { %v4050_v24 = vadd.f32 %v4999_v22, %v6607_v63  ;;  %v5002_v29 = vadd.f32 %v5001_v44, %v5000_v5 }
 0x924   : > { %4139 = vmax.xlane.f32.xlu1 %v6649_v30 }
 0x925   : > { %v6652_v31 = vand.u32 2147483647, %v4050_v24  ;;  %v4053_v28 = vadd.f32 %v5002_v29, %v6607_v63 }
 0x927   : > { %v6655_v32 = vand.u32 2147483647, %v4053_v28  ;;  %v5003_v33 = vpop.f32.mrb[132].mxu1  ;;  %v6660_v7 = vsel %vm6612_vm10, %v6652_v31, -inf }
 0x928   : > { %v5004_v34 = vpop.f32.mrb[133].mxu1  ;;  %4141 = vmax.xlane.f32.xlu0 %v6660_v7 }
 0x929   : > { %v5005_v55 = vadd.f32 %v5004_v34, %v5003_v33  ;;  %v5006_v35 = vpop.f32.mrb[134].mxu1  ;;  %v6666_v36 = vsel %vm6612_vm10, %v6655_v32, -inf }
 0x92a   : > { %v5007_v38 = vpop.f32.mrb[135].mxu1  ;;  %4143 = vmax.xlane.f32.xlu1 %v6666_v36 }
 0x92b   : > { %v4058_v40 = vadd.f32 %v5005_v55, %v6607_v63  ;;  %v5008_v12 = vadd.f32 %v5007_v38, %v5006_v35 }
 0x92d   : > { %v6670_v42 = vand.u32 2147483647, %v4058_v40  ;;  %v4061_v43 = vadd.f32 %v5008_v12, %v6607_v63 }
 0x92f   : > { %v6673_v45 = vand.u32 2147483647, %v4061_v43  ;;  %v5009_v46 = vpop.f32.mrb[136].mxu1  ;;  %v6678_v47 = vsel %vm6612_vm10, %v6670_v42, -inf }
 0x930   : > { %v5010_v48 = vpop.f32.mrb[137].mxu1  ;;  %4145 = vmax.xlane.f32.xlu0 %v6678_v47 }
 0x931   : > { %v5011_v49 = vadd.f32 %v5010_v48, %v5009_v46  ;;  %v5012_v18 = vpop.f32.mrb[138].mxu1  ;;  %v6684_v50 = vsel %vm6612_vm10, %v6673_v45, -inf }
 0x932   : > { %v5013_v10 = vpop.f32.mrb[139].mxu1  ;;  %4147 = vmax.xlane.f32.xlu1 %v6684_v50 }
 0x933   : > { %v4066_v51 = vadd.f32 %v5011_v49, %v6607_v63  ;;  %v5014_v52 = vadd.f32 %v5013_v10, %v5012_v18 }
 0x935   : > { %v6688_v53 = vand.u32 2147483647, %v4066_v51  ;;  %v4069_v54 = vadd.f32 %v5014_v52, %v6607_v63 }
 0x937   : > { %v6691_v56 = vand.u32 2147483647, %v4069_v54  ;;  %v5015_v58 = vpop.f32.mrb[140].mxu1  ;;  %v6696_v59 = vsel %vm6612_vm10, %v6688_v53, -inf }
 0x938   : > { %v5016_v60 = vpop.f32.mrb[141].mxu1  ;;  %4149 = vmax.xlane.f32.xlu0 %v6696_v59 }
 0x939   : > { %v5017_v62 = vadd.f32 %v5016_v60, %v5015_v58  ;;  %v5018_v23 = vpop.f32.mrb[142].mxu1  ;;  %v6702_v0 = vsel %vm6612_vm10, %v6691_v56, -inf }
 0x93a   : > { %v5019_v26 = vpop.f32.mrb[143].mxu1  ;;  %4151 = vmax.xlane.f32.xlu1 %v6702_v0 }
 0x93b   : > { %v4074_v1 = vadd.f32 %v5017_v62, %v6607_v63  ;;  %v5020_v25 = vadd.f32 %v5019_v26, %v5018_v23 }
 0x93d   : > { %v6706_v2 = vand.u32 2147483647, %v4074_v1  ;;  %v4077_v4 = vadd.f32 %v5020_v25, %v6607_v63 }
 0x93f   : > { %v6709_v8 = vand.u32 2147483647, %v4077_v4  ;;  %v5021_v9 = vpop.f32.mrb[144].mxu1  ;;  %v6714_v11 = vsel %vm6612_vm10, %v6706_v2, -inf }
 0x940   : > { %v5022_v13 = vpop.f32.mrb[145].mxu1  ;;  %4153 = vmax.xlane.f32.xlu0 %v6714_v11 }
 0x941   : > { %v5023_v14 = vadd.f32 %v5022_v13, %v5021_v9  ;;  %v5024_v15 = vpop.f32.mrb[146].mxu1  ;;  %v6720_v17 = vsel %vm6612_vm10, %v6709_v8, -inf }
 0x942   : > { %v5025_v19 = vpop.f32.mrb[147].mxu1  ;;  %4155 = vmax.xlane.f32.xlu1 %v6720_v17 }
 0x943   : > { %v4082_v21 = vadd.f32 %v5023_v14, %v6607_v63  ;;  %v5026_v41 = vadd.f32 %v5025_v19, %v5024_v15 }
 0x945   : > { %v6724_v22 = vand.u32 2147483647, %v4082_v21  ;;  %v4085_v5 = vadd.f32 %v5026_v41, %v6607_v63 }
 0x947   : > { %v6727_v44 = vand.u32 2147483647, %v4085_v5  ;;  %v5027_v24 = vpop.f32.mrb[148].mxu1  ;;  %v6732_v29 = vsel %vm6612_vm10, %v6724_v22, -inf }
 0x948   : > { %4157 = vmax.xlane.f32.xlu0 %v6732_v29  ;;  %v5028_v28 = vpop.f32.mrb[149].mxu1 }
 0x949   : > { %v5029_v33 = vadd.f32 %v5028_v28, %v5027_v24  ;;  %v5030_v34 = vpop.f32.mrb[150].mxu1  ;;  %v6738_v55 = vsel %vm6612_vm10, %v6727_v44, -inf }
 0x94a   : > { %4159 = vmax.xlane.f32.xlu1 %v6738_v55  ;;  %v5031_v35 = vpop.f32.mrb[151].mxu1 }
 0x94b   : > { %v4090_v38 = vadd.f32 %v5029_v33, %v6607_v63  ;;  %v5032_v40 = vadd.f32 %v5031_v35, %v5030_v34 }
 0x94d   : > { %v6742_v12 = vand.u32 2147483647, %v4090_v38  ;;  %v4093_v43 = vadd.f32 %v5032_v40, %v6607_v63 }
 0x94f   : > { %v6745_v46 = vand.u32 2147483647, %v4093_v43  ;;  %v6750_v48 = vsel %vm6612_vm10, %v6742_v12, -inf }
 0x950   : > { %4161 = vmax.xlane.f32.xlu0 %v6750_v48 }
 0x951   : > { %v6756_v49 = vsel %vm6612_vm10, %v6745_v46, -inf }
 0x952   : > { %4163 = vmax.xlane.f32.xlu1 %v6756_v49 }
 0x9a5   : > { %v4134_v18 = vpop.xlane.xlu0 %4133 }
 0x9a6   : > { %v4165_v10 = vsub.f32 %v6624_v16, %v4134_v18 }
 0x9a8   : > { %v4181_v63 = vmul.f32 1.442695, %v4165_v10 }
 0x9a9   : > { %v4136_v51 = vpop.xlane.xlu0 %4135 }
 0x9aa   : > { %5535 = vpow2.f32 %v4181_v63  ;;  %v4166_v52 = vsub.f32 %v6631_v57, %v4136_v51 }
 0x9ac   : > { %v4183_v54 = vmul.f32 1.442695, %v4166_v52 }
 0x9ad   : > { %v4138_v58 = vpop.xlane.xlu1 %4137 }
 0x9ae   : > { %5537 = vpow2.f32 %v4183_v54  ;;  %v4167_v60 = vsub.f32 %v6642_v39, %v4138_v58 }
 0x9b0   : > { %v4185_v62 = vmul.f32 1.442695, %v4167_v60 }
 0x9b1   : > { %v4140_v23 = vpop.xlane.xlu1 %4139 }
 0x9b2   : > { %5539 = vpow2.f32 %v4185_v62  ;;  %v4168_v3 = vsub.f32 %v6649_v30, %v4140_v23 }
 0x9b4   : > { %v6763_v26 = vpop.eup %5535  ;;  %v4187_v1 = vmul.f32 1.442695, %v4168_v3 }
 0x9b5   : > { %v4142_v25 = vpop.xlane.xlu0 %4141  ;;  %4213 = vadd.xlane.f32.xlu0 %v6763_v26 }
 0x9b6   : > { %5541 = vpow2.f32 %v4187_v1  ;;  %v4169_v16 = vsub.f32 %v6660_v7, %v4142_v25 }
 0x9b7   : > { %v4144_v57 = vpop.xlane.xlu1 %4143 }
 0x9b8   : > { %v6767_v4 = vpop.eup %5537  ;;  %v4189_v9 = vmul.f32 1.442695, %v4169_v16  ;;  %v4170_v39 = vsub.f32 %v6666_v36, %v4144_v57 }
 0x9b9   : > { %4215 = vadd.xlane.f32.xlu1 %v6767_v4 }
 0x9ba   : > { %5543 = vpow2.f32 %v4189_v9  ;;  %v4191_v13 = vmul.f32 1.442695, %v4170_v39 }
 0x9bc   : > { %v6771_v30 = vpop.eup %5539  ;;  %5545 = vpow2.f32 %v4191_v13 }
 0x9bd   : > { %v4146_v14 = vpop.xlane.xlu0 %4145  ;;  %4217 = vadd.xlane.f32.xlu0 %v6771_v30 }
 0x9be   : > { %v4171_v15 = vsub.f32 %v6678_v47, %v4146_v14  ;;  %v4881_v14 = vmul.f32 -1.442695, %v6619_v6 }
 0x9bf   : > { %v4148_v19 = vpop.xlane.xlu1 %4147 }
 0x9c0   : > { %v6775_v7 = vpop.eup %5541  ;;  %v4193_v21 = vmul.f32 1.442695, %v4171_v15  ;;  %v4172_v41 = vsub.f32 %v6684_v50, %v4148_v19  ;;  %v4882_v15 = vmul.f32 -1.442695, %v6634_v37  ;;  %v4883_v19 = vmul.f32 -1.442695, %v6637_v20 }
 0x9c1   : > { %4219 = vadd.xlane.f32.xlu1 %v6775_v7 }
 0x9c2   : > { %5547 = vpow2.f32 %v4193_v21  ;;  %v4195_v36 = vmul.f32 1.442695, %v4172_v41  ;;  %v4884_v41 = vmul.f32 -1.442695, %v6652_v31 }
 0x9c4   : > { %v6779_v5 = vpop.eup %5543  ;;  %5549 = vpow2.f32 %v4195_v36 }
 0x9c5   : > { %v4150_v24 = vpop.xlane.xlu0 %4149  ;;  %4221 = vadd.xlane.f32.xlu0 %v6779_v5 }
 0x9c6   : > { %v6782_v28 = vpop.eup %5545  ;;  %v4173_v47 = vsub.f32 %v6696_v59, %v4150_v24 }
 0x9c7   : > { %v4152_v33 = vpop.xlane.xlu1 %4151  ;;  %4223 = vadd.xlane.f32.xlu1 %v6782_v28 }
 0x9c8   : > { %v4197_v34 = vmul.f32 1.442695, %v4173_v47  ;;  %v4174_v50 = vsub.f32 %v6702_v0, %v4152_v33  ;;  %v4885_v47 = vmul.f32 -1.442695, %v6655_v32 }
 0x9ca   : > { %5551 = vpow2.f32 %v4197_v34  ;;  %v4199_v35 = vmul.f32 1.442695, %v4174_v50 }
 0x9cc   : > { %v6787_v38 = vpop.eup %5547  ;;  %5553 = vpow2.f32 %v4199_v35  ;;  %v4886_v35 = vmul.f32 -1.442695, %v6670_v42 }
 0x9cd   : > { %v4154_v40 = vpop.xlane.xlu0 %4153  ;;  %4225 = vadd.xlane.f32.xlu0 %v6787_v38 }
 0x9ce   : > { %v6790_v43 = vpop.eup %5549  ;;  %v4175_v18 = vsub.f32 %v6714_v11, %v4154_v40 }
 0x9cf   : > { %v4156_v10 = vpop.xlane.xlu1 %4155  ;;  %4227 = vadd.xlane.f32.xlu1 %v6790_v43 }
 0x9d0   : > { %v4201_v59 = vmul.f32 1.442695, %v4175_v18  ;;  %v4176_v63 = vsub.f32 %v6720_v17, %v4156_v10 }
 0x9d2   : > { %5555 = vpow2.f32 %v4201_v59  ;;  %v4203_v0 = vmul.f32 1.442695, %v4176_v63  ;;  %v4887_v59 = vmul.f32 -1.442695, %v6673_v45 }
 0x9d4   : > { %v6795_v51 = vpop.eup %5551  ;;  %5557 = vpow2.f32 %v4203_v0 }
 0x9d5   : > { %v4158_v52 = vpop.xlane.xlu0 %4157  ;;  %4229 = vadd.xlane.f32.xlu0 %v6795_v51 }
 0x9d6   : > { %v6798_v54 = vpop.eup %5553  ;;  %v4177_v58 = vsub.f32 %v6732_v29, %v4158_v52 }
 0x9d7   : > { %v4160_v60 = vpop.xlane.xlu1 %4159  ;;  %4231 = vadd.xlane.f32.xlu1 %v6798_v54 }
 0x9d8   : > { %v4205_v11 = vmul.f32 1.442695, %v4177_v58  ;;  %v4178_v62 = vsub.f32 %v6738_v55, %v4160_v60  ;;  %v4888_v60 = vmul.f32 -1.442695, %v6688_v53 }
 0x9da   : > { %5559 = vpow2.f32 %v4205_v11  ;;  %v4207_v17 = vmul.f32 1.442695, %v4178_v62 }
 0x9dc   : > { %v6803_v23 = vpop.eup %5555  ;;  %5561 = vpow2.f32 %v4207_v17 }
 0x9dd   : > { %4233 = vadd.xlane.f32.xlu0 %v6803_v23  ;;  %v4162_v3 = vpop.xlane.xlu0 %4161 }
 0x9de   : > { %v6806_v1 = vpop.eup %5557  ;;  %v4179_v25 = vsub.f32 %v6750_v48, %v4162_v3 }
 0x9df   : > { %4235 = vadd.xlane.f32.xlu1 %v6806_v1  ;;  %v4164_v29 = vpop.xlane.xlu1 %4163 }
 0x9e0   : > { %v4209_v16 = vmul.f32 1.442695, %v4179_v25  ;;  %v4180_v57 = vsub.f32 %v6756_v49, %v4164_v29  ;;  %v4880_v49 = vmul.f32 -1.442695, %v6616_v27 }
 0x9e2   : > { %5563 = vpow2.f32 %v4209_v16  ;;  %v4211_v55 = vmul.f32 1.442695, %v4180_v57 }
 0x9e4   : > { %v6811_v9 = vpop.eup %5559  ;;  %5565 = vpow2.f32 %v4211_v55  ;;  %v4889_v55 = vmul.f32 -1.442695, %v6691_v56 }
 0x9e5   : > { %4237 = vadd.xlane.f32.xlu0 %v6811_v9  ;;  %5567 = vpow2.f32 %v4880_v49 }
 0x9e6   : > { %v6814_v39 = vpop.eup %5561  ;;  %5569 = vpow2.f32 %v4881_v14 }
 0x9e7   : > { %4239 = vadd.xlane.f32.xlu1 %v6814_v39  ;;  %5571 = vpow2.f32 %v4882_v15 }
 0x9e8   : > { %5573 = vpow2.f32 %v4883_v19 }
 0x9e9   : > { %5575 = vpow2.f32 %v4884_v41 }
 0x9ec   : > { %v6817_v13 = vpop.eup %5563 }
 0x9ed   : > { %4241 = vadd.xlane.f32.xlu0 %v6817_v13 }
 0x9ee   : > { %v6820_v48 = vpop.eup %5565 }
 0x9ef   : > { %4243 = vadd.xlane.f32.xlu1 %v6820_v48  ;;  %v5568_v21 = vpop.eup %5567 }
 0x9f0   : > { %v4327_v36 = vadd.f32 1.0, %v5568_v21  ;;  %v5570_v24 = vpop.eup %5569 }
 0x9f1   : > { %v4328_v34 = vadd.f32 1.0, %v5570_v24  ;;  %v5572_v50 = vpop.eup %5571 }
 0x9f2   : > { %v4329_v18 = vadd.f32 1.0, %v5572_v50  ;;  %v5574_v10 = vpop.eup %5573 }
 0x9f3   : > { %v5576_v0 = vpop.eup %5575  ;;  %v4330_v58 = vadd.f32 1.0, %v5574_v10 }
 0x9f4   : > { %v4331_v25 = vadd.f32 1.0, %v5576_v0 }
 0xa42   : > { %v4214_v33 = vpop.xlane.xlu0 %4213 }
 0xa43   : > { %5577 = vrcp.f32 %v4214_v33 }
 0xa44   : > { %5579 = vrcp.f32 %v4327_v36 }
 0xa45   : > { %5581 = vpow2.f32 %v4885_v47 }
 0xa46   : > { %v4216_v40 = vpop.xlane.xlu1 %4215 }
 0xa47   : > { %5583 = vrcp.f32 %v4216_v40 }
 0xa48   : > { %5585 = vrcp.f32 %v4328_v34 }
 0xa49   : > { %5587 = vpow2.f32 %v4886_v35 }
 0xa4a   : > { %v4218_v63 = vpop.xlane.xlu0 %4217 }
 0xa4b   : > { %5589 = vrcp.f32 %v4218_v63 }
 0xa4c   : > { %5591 = vrcp.f32 %v4329_v18 }
 0xa4d   : > { %v5578_v52 = vpop.eup %5577  ;;  %5593 = vpow2.f32 %v4887_v59 }
 0xa4e   : > { %v4261_v11 = vmul.f32 %v5578_v52, %v6763_v26  ;;  %v4220_v62 = vpop.xlane.xlu1 %4219  ;;  %v5580_v17 = vpop.eup %5579 }
 0xa4f   : > { %5595 = vrcp.f32 %v4220_v62  ;;  %v5582_v3 = vpop.eup %5581 }
 0xa50   : > { %v4375_v29 = vsel %vm4278_vm11, %v5580_v17, %v4261_v11  ;;  %5597 = vrcp.f32 %v4330_v58  ;;  %v4332_v15 = vadd.f32 1.0, %v5582_v3 }
 0xa51   : > { %v5584_v16 = vpop.eup %5583  ;;  %v4391_v57 = vsel %vm4277_vm12, %v6616_v27, %v4375_v29  ;;  %5599 = vpow2.f32 %v4888_v60 }
 0xa52   : > { %4407 = vst [vmem:[%s6843_s17] sm:$0xff] %v4391_v57  ;;  %v4262_v26 = vmul.f32 %v5584_v16, %v6767_v4  ;;  %v4222_v49 = vpop.xlane.xlu0 %4221  ;;  %v5586_v14 = vpop.eup %5585  ;;  %v4890_v4 = vmul.f32 -1.442695, %v6706_v2  ;;  %v4893_v57 = vmul.f32 -1.442695, %v6727_v44 }
 0xa53   : > { %5601 = vrcp.f32 %v4222_v49  ;;  %v5588_v19 = vpop.eup %5587 }
 0xa54   : > { %5603 = vrcp.f32 %v4331_v25  ;;  %v4376_v27 = vsel %vm4278_vm11, %v5586_v14, %v4262_v26  ;;  %v4224_v21 = vpop.xlane.xlu1 %4223  ;;  %v4333_v34 = vadd.f32 1.0, %v5588_v19  ;;  %v4894_v19 = vmul.f32 -1.442695, %v6742_v12 }
 0xa55   : > { %v5590_v41 = vpop.eup %5589  ;;  %v4392_v36 = vsel %vm4277_vm12, %v6619_v6, %v4376_v27  ;;  %5605 = vrcp.f32 %v4224_v21  ;;  %v4891_v6 = vmul.f32 -1.442695, %v6709_v8 }
 0xa56   : > { %5607 = vpow2.f32 %v4889_v55  ;;  %4408 = vst [vmem:[%s6843_s17 + $0x8] sm:$0xff] %v4392_v36  ;;  %v4263_v24 = vmul.f32 %v5590_v41, %v6771_v30  ;;  %v5592_v47 = vpop.eup %5591 }
 0xa57   : > { %5609 = vrcp.f32 %v4332_v15  ;;  %v5594_v33 = vpop.eup %5593 }
 0xa58   : > { %v4377_v50 = vsel %vm4278_vm11, %v5592_v47, %v4263_v24  ;;  %5611 = vpow2.f32 %v4890_v4  ;;  %v4334_v59 = vadd.f32 1.0, %v5594_v33  ;;  %v4895_v33 = vmul.f32 -1.442695, %v6745_v46 }
 0xa59   : > { %v5596_v35 = vpop.eup %5595  ;;  %v4393_v40 = vsel %vm4277_vm12, %v6634_v37, %v4377_v50 }
 0xa5a   : > { %4409 = vst [vmem:[%s6843_s17 + $0x10] sm:$0xff] %v4393_v40  ;;  %v4264_v18 = vmul.f32 %v5596_v35, %v6775_v7  ;;  %v4226_v30 = vpop.xlane.xlu0 %4225  ;;  %v5598_v10 = vpop.eup %5597  ;;  %v4892_v7 = vmul.f32 -1.442695, %v6724_v22 }
 0xa5b   : > { %5613 = vrcp.f32 %v4226_v30  ;;  %v5600_v63 = vpop.eup %5599 }
 0xa5c   : > { %5615 = vrcp.f32 %v4333_v34  ;;  %v4378_v0 = vsel %vm4278_vm11, %v5598_v10, %v4264_v18  ;;  %v4228_v52 = vpop.xlane.xlu1 %4227  ;;  %v4335_v3 = vadd.f32 1.0, %v5600_v63 }
 0xa5d   : > { %v5602_v58 = vpop.eup %5601  ;;  %v4394_v37 = vsel %vm4277_vm12, %v6637_v20, %v4378_v0  ;;  %5617 = vrcp.f32 %v4228_v52 }
 0xa5e   : > { %v5604_v60 = vpop.eup %5603  ;;  %5619 = vpow2.f32 %v4891_v6  ;;  %4410 = vst [vmem:[%s6843_s17 + $0x18] sm:$0xff] %v4394_v37  ;;  %v4265_v11 = vmul.f32 %v5602_v58, %v6779_v5 }
 0xa5f   : > { %v5606_v62 = vpop.eup %5605  ;;  %5621 = vrcp.f32 %v4334_v59 }
 0xa60   : > { %v5608_v17 = vpop.eup %5607  ;;  %v4379_v25 = vsel %vm4278_vm11, %v5604_v60, %v4265_v11  ;;  %v4266_v29 = vmul.f32 %v5606_v62, %v6782_v28  ;;  %5623 = vpow2.f32 %v4892_v7 }
 0xa61   : > { %v5610_v20 = vpop.eup %5609  ;;  %v4395_v16 = vsel %vm4277_vm12, %v6652_v31, %v4379_v25  ;;  %v4336_v26 = vadd.f32 1.0, %v5608_v17 }
 0xa62   : > { %4411 = vst [vmem:[%s6843_s17 + $0x20] sm:$0xff] %v4395_v16  ;;  %v4380_v5 = vsel %vm4278_vm11, %v5610_v20, %v4266_v29  ;;  %v4230_v55 = vpop.xlane.xlu0 %4229  ;;  %v5612_v28 = vpop.eup %5611 }
 0xa63   : > { %v4396_v49 = vsel %vm4277_vm12, %v6655_v32, %v4380_v5  ;;  %5625 = vrcp.f32 %v4230_v55  ;;  %v4337_v36 = vadd.f32 1.0, %v5612_v28 }
 0xa64   : > { %5627 = vrcp.f32 %v4335_v3  ;;  %4412 = vst [vmem:[%s6843_s17 + $0x28] sm:$0xff] %v4396_v49  ;;  %v4232_v14 = vpop.xlane.xlu1 %4231 }
 0xa65   : > { %v5614_v15 = vpop.eup %5613  ;;  %5629 = vrcp.f32 %v4232_v14 }
 0xa66   : > { %v5616_v31 = vpop.eup %5615  ;;  %5631 = vpow2.f32 %v4893_v57  ;;  %v4267_v27 = vmul.f32 %v5614_v15, %v6787_v38 }
 0xa67   : > { %v5618_v21 = vpop.eup %5617  ;;  %5633 = vrcp.f32 %v4336_v26 }
 0xa68   : > { %v5620_v41 = vpop.eup %5619  ;;  %v4381_v32 = vsel %vm4278_vm11, %v5616_v31, %v4267_v27  ;;  %v4268_v4 = vmul.f32 %v5618_v21, %v6790_v43  ;;  %5635 = vpow2.f32 %v4894_v19 }
 0xa69   : > { %v5622_v24 = vpop.eup %5621  ;;  %v4397_v47 = vsel %vm4277_vm12, %v6670_v42, %v4381_v32  ;;  %v4338_v50 = vadd.f32 1.0, %v5620_v41 }
 0xa6a   : > { %4413 = vst [vmem:[%s6843_s17 + $0x30] sm:$0xff] %v4397_v47  ;;  %v4382_v38 = vsel %vm4278_vm11, %v5622_v24, %v4268_v4  ;;  %v4234_v34 = vpop.xlane.xlu0 %4233  ;;  %v5624_v43 = vpop.eup %5623 }
 0xa6b   : > { %v4398_v35 = vsel %vm4277_vm12, %v6673_v45, %v4382_v38  ;;  %5637 = vrcp.f32 %v4234_v34  ;;  %v4339_v59 = vadd.f32 1.0, %v5624_v43 }
 0xa6c   : > { %5639 = vrcp.f32 %v4337_v36  ;;  %4414 = vst [vmem:[%s6843_s17 + $0x38] sm:$0xff] %v4398_v35  ;;  %v4236_v40 = vpop.xlane.xlu1 %4235 }
 0xa6d   : > { %v5626_v42 = vpop.eup %5625  ;;  %5641 = vrcp.f32 %v4236_v40 }
 0xa6e   : > { %v5628_v6 = vpop.eup %5627  ;;  %5643 = vpow2.f32 %v4895_v33  ;;  %v4269_v18 = vmul.f32 %v5626_v42, %v6795_v51 }
 0xa6f   : > { %v5630_v30 = vpop.eup %5629  ;;  %5645 = vrcp.f32 %v4338_v50 }
 0xa70   : > { %v5632_v10 = vpop.eup %5631  ;;  %v4383_v45 = vsel %vm4278_vm11, %v5628_v6, %v4269_v18  ;;  %v4270_v63 = vmul.f32 %v5630_v30, %v6798_v54 }
 0xa71   : > { %v5634_v0 = vpop.eup %5633  ;;  %v4399_v52 = vsel %vm4277_vm12, %v6688_v53, %v4383_v45  ;;  %v4340_v37 = vadd.f32 1.0, %v5632_v10 }
 0xa72   : > { %4415 = vst [vmem:[%s6843_s17 + $0x40] sm:$0xff] %v4399_v52  ;;  %v4384_v58 = vsel %vm4278_vm11, %v5634_v0, %v4270_v63  ;;  %v4238_v51 = vpop.xlane.xlu0 %4237  ;;  %v5636_v7 = vpop.eup %5635 }
 0xa73   : > { %v4400_v60 = vsel %vm4277_vm12, %v6691_v56, %v4384_v58  ;;  %5647 = vrcp.f32 %v4238_v51  ;;  %v4341_v25 = vadd.f32 1.0, %v5636_v7 }
 0xa74   : > { %5649 = vrcp.f32 %v4339_v59  ;;  %4416 = vst [vmem:[%s6843_s17 + $0x48] sm:$0xff] %v4400_v60  ;;  %v4240_v54 = vpop.xlane.xlu1 %4239 }
 0xa75   : > { %v5638_v11 = vpop.eup %5637  ;;  %5651 = vrcp.f32 %v4240_v54 }
 0xa76   : > { %v5640_v62 = vpop.eup %5639  ;;  %v4271_v53 = vmul.f32 %v5638_v11, %v6803_v23  ;;  %5653 = vrcp.f32 %v4340_v37 }
 0xa77   : > { %v5642_v17 = vpop.eup %5641 }
 0xa78   : > { %v5644_v3 = vpop.eup %5643  ;;  %v4385_v29 = vsel %vm4278_vm11, %v5640_v62, %v4271_v53  ;;  %v4272_v56 = vmul.f32 %v5642_v17, %v6806_v1 }
 0xa79   : > { %v5646_v20 = vpop.eup %5645  ;;  %v4401_v16 = vsel %vm4277_vm12, %v6706_v2, %v4385_v29  ;;  %v4342_v5 = vadd.f32 1.0, %v5644_v3 }
 0xa7a   : > { %4417 = vst [vmem:[%s6843_s17 + $0x50] sm:$0xff] %v4401_v16  ;;  %v4386_v57 = vsel %vm4278_vm11, %v5646_v20, %v4272_v56  ;;  %v4242_v23 = vpop.xlane.xlu0 %4241 }
 0xa7b   : > { %v4402_v55 = vsel %vm4277_vm12, %v6709_v8, %v4386_v57  ;;  %5655 = vrcp.f32 %v4242_v23 }
 0xa7c   : > { %5657 = vrcp.f32 %v4341_v25  ;;  %4418 = vst [vmem:[%s6843_s17 + $0x58] sm:$0xff] %v4402_v55  ;;  %v4244_v1 = vpop.xlane.xlu1 %4243 }
 0xa7d   : > { %v5648_v26 = vpop.eup %5647  ;;  %5659 = vrcp.f32 %v4244_v1 }
 0xa7e   : > { %v5650_v2 = vpop.eup %5649  ;;  %v4273_v49 = vmul.f32 %v5648_v26, %v6811_v9  ;;  %5661 = vrcp.f32 %v4342_v5 }
 0xa7f   : > { %v5652_v28 = vpop.eup %5651 }
 0xa80   : > { %v4387_v14 = vsel %vm4278_vm11, %v5650_v2, %v4273_v49  ;;  %v4274_v15 = vmul.f32 %v5652_v28, %v6814_v39  ;;  %v5654_v8 = vpop.eup %5653 }
 0xa81   : > { %v4403_v31 = vsel %vm4277_vm12, %v6724_v22, %v4387_v14 }
 0xa82   : > { %4419 = vst [vmem:[%s6843_s17 + $0x60] sm:$0xff] %v4403_v31  ;;  %v4388_v19 = vsel %vm4278_vm11, %v5654_v8, %v4274_v15 }
 0xa83   : > { %v4404_v9 = vsel %vm4277_vm12, %v6727_v44, %v4388_v19 }
 0xa84   : > { %4420 = vst [vmem:[%s6843_s17 + $0x68] sm:$0xff] %v4404_v9 }
 0xa85   : > { %v5656_v27 = vpop.eup %5655 }
 0xa86   : > { %v5658_v21 = vpop.eup %5657  ;;  %v4275_v39 = vmul.f32 %v5656_v27, %v6817_v13 }
 0xa87   : > { %v5660_v22 = vpop.eup %5659 }
 0xa88   : > { %v4389_v41 = vsel %vm4278_vm11, %v5658_v21, %v4275_v39  ;;  %v4276_v36 = vmul.f32 %v5660_v22, %v6820_v48  ;;  %v5662_v32 = vpop.eup %5661 }
 0xa89   : > { %v4405_v44 = vsel %vm4277_vm12, %v6742_v12, %v4389_v41 }
 0xa8a   : > { %4421 = vst [vmem:[%s6843_s17 + $0x70] sm:$0xff] %v4405_v44  ;;  %v4390_v13 = vsel %vm4278_vm11, %v5662_v32, %v4276_v36 }
 0xa8b   : > { %v4406_v48 = vsel %vm4277_vm12, %v6745_v46, %v4390_v13 }
 0xa8c   : > { %4422 = vst [vmem:[%s6843_s17 + $0x78] sm:$0xff] %v4406_v48 }
 0xa8d   : > { %5876 = shalt.err (!%p5873_p8)
}
 0xa8e   : > { %s5877_s9 = scalar_lea.hbm %s6955_s7, 2048  ;;  %s5881_s28 = scalar_lea.hbm %s7077_s16, 4096 }
 0xa8f   : > { %p5878_p4 = scmp.ne.s32.totalorder %s6955_s7, %s5877_s9  ;;  %p5882_p1 = scmp.lt.u32.totalorder %s6955_s7, %s7077_s16 }
 0xa90   : > { %p5883_p11 = scmp.lt.u32.totalorder %s5881_s28, %s5877_s9  ;;  %p5885_p2 = scmp.lt.u32.totalorder %s5877_s9, %s6955_s7 }
 0xa91   : > { %p5879_p3 = pnand %p5878_p4, %p7078_p13 }
 0xa92   : > { %p5884_p12 = por %p5883_p11, %p5882_p1 }
 0xa93   : > { %p5880_p10 = pneg %p5879_p3 }
 0xa94   : > { %p5886_p6 = por %p5885_p2, %p5884_p12 }
 0xa96   : > { %p5887_p9 = pnand %p5886_p6, %p5880_p10 }
 0xa98   : > { %5890 = shalt.err (!%p5887_p9)
}
 0xa99   : > { %s5961_s19 = smov 128   ;;  %s5962_s14 = smov 8  }
 0xa9a   : > { %5073 = dma.vmem_to_hbm [thread:$0]  (%p7078_p13), %s6957_s11, 2048, %s6955_s7, %s4424_s27, %s5961_s19, %s5961_s19, %s5962_s14  }
 0xa9b PF: > { %s4452_s17 = sand.u32 1, %s5933_s21   ;;  %p7079_p0 = scmp.ne.s32.totalorder %s7060_s26, 0 }
 0xa9c   : > { %p7080_p5 = scmp.ge.s32.totalorder %s5945_s24, 2  ;;  %s4453_s4 = scalar_lea.sflag [#allocation4], %s4452_s17 }
 0xa9e   : > { %p5099_p7 = pnand %p7080_p5, %p7079_p0 }
 0xaa0   : > { %5928 = dma.done.wait (!%p5099_p7), %s4453_s4, 2048  }
 0xaa1   : > { %5930 = vsyncadd (!%p5099_p7), %s4453_s4, 4294965248  ;;  %s7081_s6 = sld [smem:[#allocation21_spill]]  ;;  %s7082_s23 = sld [smem:[#allocation22_spill]] }
 0xaa2   : > { %p30_p8 = scmp.ge.s32.totalorder %s6197_s25, 4   ;;  %s7083_s21 = smov %s5937_s22 }
 0xaa3   : > { %s7085_s24 = smov %s6197_s25 }
 0xaa4   :  { %32 = sbr.rel (!%p30_p8) target bundleno = 20 (0x14), region = 154 }
 0xaa7   : > { %s7084_s22 = smov %s7081_s6 }
 0xaab   :  { %4458 = vsyncpa [#allocation3], 1 }
 0xaac   :  { %4460 = vsyncpa [#allocation3 + $0x1], 1 }
 0xaad   :  { %4461 = vsyncpa [#allocation6], 1 }
 0xaae   :  { %4463 = vsyncpa [#allocation6 + $0x1], 1 }
 0xaaf   :  { %4464 = vsyncpa [#allocation9], 1 }
 0xab0   :  { %4465 = vsyncpa [#allocation12], 1 }
 0xab1   :  { %4466 = vsyncpa [#allocation4], 1 }
 0xab2   :  { %4468 = vsyncpa [#allocation4 + $0x1], 1 }

</bundles_post_ra>
